<compile_context>
chip_gen: v7x
topology: tpu7x:2x2x1
jax: 0.10.0
libtpu: 0.0.40
codegen_flags: <defaults>
</compile_context>

<pallas_src>
import math
from functools import partial

import numpy as np
import jax
import jax.numpy as jnp
from jax import lax
from jax.experimental import pallas as pl
from jax.experimental.pallas import tpu as pltpu

NEG_SLOPE = 0.2            # LeakyReLU(0.2)


# ----------------------------------------------------------------------------
# In-kernel building blocks (activations are (C, P): channels on sublanes,
# row-major flattened spatial on lanes).
# ----------------------------------------------------------------------------
def _leaky_relu(z):
    return jnp.where(z >= 0, z, NEG_SLOPE * z)


def _im2col_3x3(a, mask_ref, w_img, p):
    """(Cin, P) -> (9*Cin, P) im2col for a 3x3 / stride-1 / pad-1 conv.

    Each tap is an XLU lane-rotation of the row-major image; the precomputed
    mask zeroes (a) taps that fall outside the image (the conv's zero pad),
    and (b) lanes >= h*w (the lane padding of the half/quarter scales), so
    junk in padded lanes never reaches valid outputs.  Tap order (dh, dw)
    matches the (kh, kw, cin) weight packing.
    """
    taps = []
    for dh in (-1, 0, 1):
        for dw in (-1, 0, 1):
            d = dh * w_img + dw           # want tap[n] = a[n + d]
            shifted = a if d == 0 else pltpu.roll(a, shift=(-d) % p, axis=1)
            taps.append(shifted)
    return jnp.concatenate(taps, axis=0) * mask_ref[...]


def _conv_mxu(a, w_ref, b_ref):
    """One (Cout, K) x (K, N) MXU matmul + bias + LeakyReLU(0.2)."""
    z = jnp.dot(w_ref[...], a, preferred_element_type=jnp.float32)
    return _leaky_relu(z + b_ref[...])


def _lane_cat(parts):
    return parts[0] if len(parts) == 1 else jnp.concatenate(parts, axis=1)


def _chan_cat(parts):
    return parts[0] if len(parts) == 1 else jnp.concatenate(parts, axis=0)


def _rp_kernel(x_ref,
               w1_ref, b1_ref, w2_ref, b2_ref, w3_ref, b3_ref,
               w4_ref, b4_ref, w5_ref, b5_ref, w6_ref, b6_ref,
               d2f_ref, d2h_ref, d4f_ref, u2h_ref, u2q_ref, u4q_ref,
               mf_ref, mh_ref, mq_ref,
               o_ref, *, wf, wh, wq, p1, p2, p3):
    """Entire RP_module forward for one batch element, fully VMEM-resident."""
    x = x_ref[0]                                           # (16, p1)

    spatial = lambda a, m_ref: jnp.dot(a, m_ref[...],
                                       preferred_element_type=jnp.float32)
    down2_f = lambda a: spatial(a, d2f_ref)                # full    -> half
    down2_h = lambda a: spatial(a, d2h_ref)                # half    -> quarter
    down4_f = lambda a: spatial(a, d4f_ref)                # full    -> quarter
    up2_h = lambda a: spatial(a, u2h_ref)                  # half    -> full
    up2_q = lambda a: spatial(a, u2q_ref)                  # quarter -> half
    up4_q = lambda a: spatial(a, u4q_ref)                  # quarter -> full

    im2col_f = lambda a: _im2col_3x3(a, mf_ref, wf, p1)
    im2col_h = lambda a: _im2col_3x3(a, mh_ref, wh, p2)
    im2col_q = lambda a: _im2col_3x3(a, mq_ref, wq, p3)

    # ---- conv1 (3x3): both scales share weights -> one matmul, N = p1+p2 ---
    z1 = _conv_mxu(_lane_cat([im2col_f(x), im2col_h(down2_f(x))]),
                   w1_ref, b1_ref)
    x_b1_1, x_b2_1 = z1[:, :p1], z1[:, p1:p1 + p2]

    # ---- conv2 (1x1): three branches -> one matmul, N = p1+p2+p3 -----------
    a2 = _lane_cat([
        _chan_cat([x_b1_1, up2_h(x_b2_1)]),
        _chan_cat([down2_f(x_b1_1), x_b2_1]),
        _chan_cat([down4_f(x_b1_1), down2_h(x_b2_1)]),
    ])
    z2 = _conv_mxu(a2, w2_ref, b2_ref)
    x_b1_2 = z2[:, :p1]
    x_b2_2 = z2[:, p1:p1 + p2]
    x_b3_2 = z2[:, p1 + p2:p1 + p2 + p3]

    # ---- conv3 (3x3): three scales -> one matmul ---------------------------
    z3 = _conv_mxu(_lane_cat([im2col_f(x_b1_2), im2col_h(x_b2_2),
                              im2col_q(x_b3_2)]), w3_ref, b3_ref)
    x_b1_3 = z3[:, :p1]
    x_b2_3 = z3[:, p1:p1 + p2]
    x_b3_3 = z3[:, p1 + p2:p1 + p2 + p3]

    # ---- conv4 (1x1): two branches -> one matmul ---------------------------
    a4 = _lane_cat([
        _chan_cat([x_b1_3, up2_h(x_b2_3), up4_q(x_b3_3)]),
        _chan_cat([down2_f(x_b1_3), x_b2_3, up2_q(x_b3_3)]),
    ])
    z4 = _conv_mxu(a4, w4_ref, b4_ref)
    x_b1_4, x_b2_4 = z4[:, :p1], z4[:, p1:p1 + p2]

    # ---- conv5 (3x3): two scales -> one matmul -----------------------------
    z5 = _conv_mxu(_lane_cat([im2col_f(x_b1_4), im2col_h(x_b2_4)]),
                   w5_ref, b5_ref)
    x_b1_5, x_b2_5 = z5[:, :p1], z5[:, p1:p1 + p2]

    # ---- conv6 (1x1): full scale only --------------------------------------
    o_ref[0] = _conv_mxu(_chan_cat([x_b1_5, up2_h(x_b2_5)]), w6_ref, b6_ref)


# ----------------------------------------------------------------------------
# pallas_call wrapper.
# ----------------------------------------------------------------------------
def _rp_pallas_call(x2, conv_args, mats, *, wf, wh, wq, p1, p2, p3):
    B, C, HW = x2.shape
    kernel = partial(_rp_kernel, wf=wf, wh=wh, wq=wq, p1=p1, p2=p2, p3=p3)

    in_specs = [pl.BlockSpec((1, C, HW), lambda b: (b, 0, 0))]
    # Grid-invariant operands (weights / biases / spatial ops / masks): the
    # constant index_map means they are DMA'd into VMEM once, not per step.
    # TODO(synk): pipeline_mode=pl.Buffered(1) would also drop their second
    # VMEM buffer, but constants are <1 MiB now so the win is marginal.
    in_specs += [pl.BlockSpec(a.shape, lambda b: (0, 0))
                 for a in (*conv_args, *mats)]

    # Advisory cost: the real conv + spatial-operator matmul work.
    flops_conv = 2 * 16 * (144 * (p1 + p2) + 32 * (p1 + p2 + p3)
                           + 144 * (p1 + p2 + p3) + 48 * (p1 + p2)
                           + 144 * (p1 + p2) + 32 * p1)
    flops_spatial = 2 * 16 * (3 * p1 * p2 + p2 * p3 + 2 * p1 * p3
                              + 3 * p2 * p1 + p3 * p2 + p3 * p1)
    const_bytes = sum(int(np.prod(a.shape)) * 4 for a in (*conv_args, *mats))
    cost = pl.CostEstimate(
        flops=B * (flops_conv + flops_spatial),
        transcendentals=0,
        bytes_accessed=2 * B * C * HW * 4 + const_bytes)

    return pl.pallas_call(
        kernel,
        out_shape=jax.ShapeDtypeStruct((B, C, HW), jnp.float32),
        grid_spec=pltpu.PrefetchScalarGridSpec(
            num_scalar_prefetch=0,
            grid=(B,),
            in_specs=in_specs,
            out_specs=pl.BlockSpec((1, C, HW), lambda b: (b, 0, 0)),
        ),
        compiler_params=pltpu.CompilerParams(
            dimension_semantics=("parallel",),   # one batch elem per TC on v7x
            vmem_limit_bytes=32 * 1024 * 1024,
        ),
        cost_estimate=cost,
    )(x2, *conv_args, *mats)


@jax.jit
def rp_module_forward(x_nchw, packed_params, consts):
    """RP_module forward.  x_nchw: (B, 16, H, W) float32 (PyTorch NCHW)."""
    B, C, H, W = x_nchw.shape
    # NCHW flattens to the internal (C, H*W) layout with a free reshape.
    x2 = x_nchw.astype(jnp.float32).reshape(B, C, H * W)

    conv_args = []
    for name in ("conv1", "conv2", "conv3", "conv4", "conv5", "conv6"):
        conv_args += list(packed_params[name])
    mats = [consts[k] for k in ("down2_full", "down2_half", "down4_full",
                                "up2_half", "up2_quarter", "up4_quarter",
                                "mask_full", "mask_half", "mask_quarter")]

    p1 = H * W
    p2 = consts["mask_half"].shape[1]
    p3 = consts["mask_quarter"].shape[1]
    out2 = _rp_pallas_call(x2, conv_args, mats,
                           wf=W, wh=W // 2, wq=W // 4, p1=p1, p2=p2, p3=p3)
    return out2.reshape(B, C, H, W)


# ----------------------------------------------------------------------------
# Precomputed constants (built OUTSIDE jit): spatial operators as matrices and
# 3x3-conv boundary masks for the roll-based im2col.
# ----------------------------------------------------------------------------
def _round_up(n, m):
    return ((n + m - 1) // m) * m


def _avg_pool_nchw(x, stride):
    """torch.nn.AvgPool2d(kernel_size=(2, 2), stride=stride) on NCHW."""
    s = lax.reduce_window(x, 0.0, lax.add,
                          window_dimensions=(1, 1, 2, 2),
                          window_strides=(1, 1, stride, stride),
                          padding="VALID")
    return s * 0.25


def _upsample_nchw(x, scale):
    """torch.nn.Upsample(scale_factor, mode='bilinear', align_corners=False)."""
    n, c, h, w = x.shape
    return jax.image.resize(x, (n, c, h * scale, w * scale), method="bilinear",
                            precision=lax.Precision.HIGHEST)


def _linear_spatial_matrix(op, h, w):
    """Matrix M (h*w, ho*wo) s.t. (C, h*w) @ M applies the per-channel linear
    spatial op `op` (built by running the reference op on identity basis
    images, so semantics match torch AvgPool2d / Upsample exactly)."""
    n = h * w
    basis = jnp.eye(n, dtype=jnp.float32).reshape(n, 1, h, w)
    out = op(basis)
    return out.reshape(n, -1)


def _pad_matrix(m, p_rows, p_cols):
    out = np.zeros((p_rows, p_cols), np.float32)
    m = np.asarray(m)
    out[: m.shape[0], : m.shape[1]] = m
    return jnp.asarray(out)


def _conv3x3_mask(h, w, p, cin=16):
    """(9*cin, p) 0/1 mask for the roll-based im2col: tap-k rows are 1 where
    the tap lies inside the image AND the lane is a real pixel (lane < h*w)."""
    m = np.zeros((9 * cin, p), np.float32)
    k = 0
    for dh in (-1, 0, 1):
        for dw in (-1, 0, 1):
            for i in range(h):
                for j in range(w):
                    if 0 <= i + dh < h and 0 <= j + dw < w:
                        m[k * cin:(k + 1) * cin, i * w + j] = 1.0
            k += 1
    return jnp.asarray(m)


def make_spatial_constants(h, w):
    """Operators for the three scales.  Half / quarter spatial axes are padded
    to 128 lanes so every in-kernel tensor is lane-dense and every slice /
    concat offset is 128-aligned.  Padded rows/cols are zero, so junk in
    padded lanes is always multiplied by zero downstream."""
    assert h % 4 == 0 and w % 4 == 0
    assert (h * w) % 128 == 0, "full-scale H*W must be a multiple of 128"
    p1 = h * w
    p2 = max(128, _round_up((h // 2) * (w // 2), 128))
    p3 = max(128, _round_up((h // 4) * (w // 4), 128))

    d2 = partial(_avg_pool_nchw, stride=2)
    d4 = partial(_avg_pool_nchw, stride=4)
    u2 = partial(_upsample_nchw, scale=2)
    u4 = partial(_upsample_nchw, scale=4)

    def mat(op, h_in, w_in, p_in, p_out):
        return _pad_matrix(_linear_spatial_matrix(op, h_in, w_in), p_in, p_out)

    return {
        "down2_full": mat(d2, h, w, p1, p2),
        "down2_half": mat(d2, h // 2, w // 2, p2, p3),
        "down4_full": mat(d4, h, w, p1, p3),
        "up2_half": mat(u2, h // 2, w // 2, p2, p1),
        "up2_quarter": mat(u2, h // 4, w // 4, p3, p2),
        "up4_quarter": mat(u4, h // 4, w // 4, p3, p1),
        "mask_full": _conv3x3_mask(h, w, p1),
        "mask_half": _conv3x3_mask(h // 2, w // 2, p2),
        "mask_quarter": _conv3x3_mask(h // 4, w // 4, p3),
    }


# ----------------------------------------------------------------------------
# Parameters (PyTorch layout) + packing into the kernel layout.
# ----------------------------------------------------------------------------
def make_conv_params(key, cin, cout, k):
    wkey, bkey = jax.random.split(key)
    fan_in = cin * k * k
    bound = 1.0 / math.sqrt(fan_in)
    w = jax.random.uniform(wkey, (cout, cin, k, k), jnp.float32, -bound, bound)
    b = jax.random.uniform(bkey, (cout,), jnp.float32, -bound, bound)
    return w, b            # PyTorch layout: (Cout, Cin, kh, kw), (Cout,)


def make_rp_params(key):
    keys = jax.random.split(key, 6)
    return {
        "conv1": make_conv_params(keys[0], 16, 16, 3),
        "conv2": make_conv_params(keys[1], 32, 16, 1),
        "conv3": make_conv_params(keys[2], 16, 16, 3),
        "conv4": make_conv_params(keys[3], 48, 16, 1),
        "conv5": make_conv_params(keys[4], 16, 16, 3),
        "conv6": make_conv_params(keys[5], 32, 16, 1),
    }


def pack_conv_params(w, b):
    """PyTorch (Cout,Cin,kh,kw) + (Cout,) -> (Cout, kh*kw*Cin), (Cout, 1)."""
    cout, cin, kh, kw = w.shape
    w_packed = jnp.transpose(w, (0, 2, 3, 1)).reshape(cout, kh * kw * cin)
    return w_packed.astype(jnp.float32), b.reshape(cout, 1).astype(jnp.float32)


# ----------------------------------------------------------------------------
# Pure-JAX (XLA) reference with identical semantics, for correctness checks.
# ----------------------------------------------------------------------------
def _conv_ref(x, w, b, padding):
    out = lax.conv_general_dilated(
        x, w, window_strides=(1, 1),
        padding=[(padding, padding), (padding, padding)],
        dimension_numbers=("NCHW", "OIHW", "NCHW"),
        precision=lax.Precision.HIGHEST)
    out = out + b.reshape(1, -1, 1, 1)
    return jnp.where(out >= 0, out, NEG_SLOPE * out)


def rp_reference(x, raw_params):
    conv = lambda name, t, p: _conv_ref(t, raw_params[name][0], raw_params[name][1], p)
    c1 = lambda t: conv("conv1", t, 1)
    c2 = lambda t: conv("conv2", t, 0)
    c3 = lambda t: conv("conv3", t, 1)
    c4 = lambda t: conv("conv4", t, 0)
    c5 = lambda t: conv("conv5", t, 1)
    c6 = lambda t: conv("conv6", t, 0)
    down2 = partial(_avg_pool_nchw, stride=2)
    down4 = partial(_avg_pool_nchw, stride=4)
    up2 = partial(_upsample_nchw, scale=2)
    up4 = partial(_upsample_nchw, scale=4)
    cat = lambda ts: jnp.concatenate(ts, axis=1)

    x_b1_1 = c1(x)
    x_b2_1 = c1(down2(x))
    x_b1_2 = c2(cat([x_b1_1, up2(x_b2_1)]))
    x_b2_2 = c2(cat([down2(x_b1_1), x_b2_1]))
    x_b3_2 = c2(cat([down4(x_b1_1), down2(x_b2_1)]))
    x_b1_3 = c3(x_b1_2)
    x_b2_3 = c3(x_b2_2)
    x_b3_3 = c3(x_b3_2)
    x_b1_4 = c4(cat([x_b1_3, up2(x_b2_3), up4(x_b3_3)]))
    x_b2_4 = c4(cat([down2(x_b1_3), x_b2_3, up2(x_b3_3)]))
    x_b1_5 = c5(x_b1_4)
    x_b2_5 = c5(x_b2_4)
    return c6(cat([x_b1_5, up2(x_b2_5)]))


# ----------------------------------------------------------------------------
if __name__ == "__main__":
    key = jax.random.PRNGKey(0)
    pkey, xkey = jax.random.split(key)

    # Input: batch=2, channels=16 (required by conv1), 16x16 spatial
    # (divisible by 4 so the multi-scale branches line up).
    B, C, H, W = 2, 16, 16, 16

    raw_params = make_rp_params(pkey)
    packed_params = {k: pack_conv_params(*v) for k, v in raw_params.items()}
    consts = make_spatial_constants(H, W)

    x = jax.random.normal(xkey, (B, C, H, W), jnp.float32)

    out = rp_module_forward(x, packed_params, consts)
    out = jax.block_until_ready(out)

    assert out.shape == (B, C, H, W), out.shape
    assert bool(jnp.isfinite(out).all())

    ref = rp_reference(x, raw_params)
    max_err = float(jnp.max(jnp.abs(out - ref)))
    # The reformulation is exact in f32; residual error is only the MXU's
    # f32-emulation pass count (chip/default dependent), so keep some margin.
    assert max_err < 2e-2, f"mismatch vs reference: max |err| = {max_err}"

    print("KERNEL_OK")
</pallas_src>

<mosaic_0001>
module attributes {stable_mosaic.version = 11 : i64} {
  func.func @_rp_kernel(%arg0: i32, %arg1: memref<1x16x256xf32, #tpu.memory_space<vmem>>, %arg2: memref<16x144xf32, #tpu.memory_space<vmem>>, %arg3: memref<16x1xf32, #tpu.memory_space<vmem>>, %arg4: memref<16x32xf32, #tpu.memory_space<vmem>>, %arg5: memref<16x1xf32, #tpu.memory_space<vmem>>, %arg6: memref<16x144xf32, #tpu.memory_space<vmem>>, %arg7: memref<16x1xf32, #tpu.memory_space<vmem>>, %arg8: memref<16x48xf32, #tpu.memory_space<vmem>>, %arg9: memref<16x1xf32, #tpu.memory_space<vmem>>, %arg10: memref<16x144xf32, #tpu.memory_space<vmem>>, %arg11: memref<16x1xf32, #tpu.memory_space<vmem>>, %arg12: memref<16x32xf32, #tpu.memory_space<vmem>>, %arg13: memref<16x1xf32, #tpu.memory_space<vmem>>, %arg14: memref<256x128xf32, #tpu.memory_space<vmem>>, %arg15: memref<128x128xf32, #tpu.memory_space<vmem>>, %arg16: memref<256x128xf32, #tpu.memory_space<vmem>>, %arg17: memref<128x256xf32, #tpu.memory_space<vmem>>, %arg18: memref<128x128xf32, #tpu.memory_space<vmem>>, %arg19: memref<128x256xf32, #tpu.memory_space<vmem>>, %arg20: memref<144x256xf32, #tpu.memory_space<vmem>>, %arg21: memref<144x128xf32, #tpu.memory_space<vmem>>, %arg22: memref<144x128xf32, #tpu.memory_space<vmem>>, %arg23: memref<1x16x256xf32, #tpu.memory_space<vmem>>) attributes {dimension_semantics = [#tpu.dimension_semantics<parallel>], iteration_bounds = array<i64: 2>, scalar_prefetch = 0 : i64, scratch_operands = 0 : i64, tpu.core_type = #tpu.core_type<tc>, window_params = [{transform_indices = @transform_0, window_bounds = array<i64: 1, 16, 256>}, {pipeline_mode = #tpu.pipeline_mode<synchronous>, transform_indices = @transform_1, window_bounds = array<i64: 16, 144>}, {pipeline_mode = #tpu.pipeline_mode<synchronous>, transform_indices = @transform_2, window_bounds = array<i64: 16, 1>}, {pipeline_mode = #tpu.pipeline_mode<synchronous>, transform_indices = @transform_3, window_bounds = array<i64: 16, 32>}, {pipeline_mode = #tpu.pipeline_mode<synchronous>, transform_indices = @transform_4, window_bounds = array<i64: 16, 1>}, {pipeline_mode = #tpu.pipeline_mode<synchronous>, transform_indices = @transform_5, window_bounds = array<i64: 16, 144>}, {pipeline_mode = #tpu.pipeline_mode<synchronous>, transform_indices = @transform_6, window_bounds = array<i64: 16, 1>}, {pipeline_mode = #tpu.pipeline_mode<synchronous>, transform_indices = @transform_7, window_bounds = array<i64: 16, 48>}, {pipeline_mode = #tpu.pipeline_mode<synchronous>, transform_indices = @transform_8, window_bounds = array<i64: 16, 1>}, {pipeline_mode = #tpu.pipeline_mode<synchronous>, transform_indices = @transform_9, window_bounds = array<i64: 16, 144>}, {pipeline_mode = #tpu.pipeline_mode<synchronous>, transform_indices = @transform_10, window_bounds = array<i64: 16, 1>}, {pipeline_mode = #tpu.pipeline_mode<synchronous>, transform_indices = @transform_11, window_bounds = array<i64: 16, 32>}, {pipeline_mode = #tpu.pipeline_mode<synchronous>, transform_indices = @transform_12, window_bounds = array<i64: 16, 1>}, {pipeline_mode = #tpu.pipeline_mode<synchronous>, transform_indices = @transform_13, window_bounds = array<i64: 256, 128>}, {pipeline_mode = #tpu.pipeline_mode<synchronous>, transform_indices = @transform_14, window_bounds = array<i64: 128, 128>}, {pipeline_mode = #tpu.pipeline_mode<synchronous>, transform_indices = @transform_15, window_bounds = array<i64: 256, 128>}, {pipeline_mode = #tpu.pipeline_mode<synchronous>, transform_indices = @transform_16, window_bounds = array<i64: 128, 256>}, {pipeline_mode = #tpu.pipeline_mode<synchronous>, transform_indices = @transform_17, window_bounds = array<i64: 128, 128>}, {pipeline_mode = #tpu.pipeline_mode<synchronous>, transform_indices = @transform_18, window_bounds = array<i64: 128, 256>}, {pipeline_mode = #tpu.pipeline_mode<synchronous>, transform_indices = @transform_19, window_bounds = array<i64: 144, 256>}, {pipeline_mode = #tpu.pipeline_mode<synchronous>, transform_indices = @transform_20, window_bounds = array<i64: 144, 128>}, {pipeline_mode = #tpu.pipeline_mode<synchronous>, transform_indices = @transform_21, window_bounds = array<i64: 144, 128>}, {transform_indices = @transform_22, window_bounds = array<i64: 1, 16, 256>}]} {
    %c0 = arith.constant 0 : index
    %c0_0 = arith.constant 0 : index
    %c0_1 = arith.constant 0 : index
    %0 = vector.load %arg1[%c0, %c0_0, %c0_1] : memref<1x16x256xf32, #tpu.memory_space<vmem>>, vector<1x16x256xf32>
    %1 = vector.shape_cast %0 : vector<1x16x256xf32> to vector<16x256xf32>
    %c17_i32 = arith.constant 17 : i32
    %2 = tpu.dynamic_rotate %1 by %c17_i32 dim 1 : vector<16x256xf32>, i32 -> vector<16x256xf32>
    %c16_i32 = arith.constant 16 : i32
    %3 = tpu.dynamic_rotate %1 by %c16_i32 dim 1 : vector<16x256xf32>, i32 -> vector<16x256xf32>
    %c15_i32 = arith.constant 15 : i32
    %4 = tpu.dynamic_rotate %1 by %c15_i32 dim 1 : vector<16x256xf32>, i32 -> vector<16x256xf32>
    %c1_i32 = arith.constant 1 : i32
    %5 = tpu.dynamic_rotate %1 by %c1_i32 dim 1 : vector<16x256xf32>, i32 -> vector<16x256xf32>
    %c255_i32 = arith.constant 255 : i32
    %6 = tpu.dynamic_rotate %1 by %c255_i32 dim 1 : vector<16x256xf32>, i32 -> vector<16x256xf32>
    %c241_i32 = arith.constant 241 : i32
    %7 = tpu.dynamic_rotate %1 by %c241_i32 dim 1 : vector<16x256xf32>, i32 -> vector<16x256xf32>
    %c240_i32 = arith.constant 240 : i32
    %8 = tpu.dynamic_rotate %1 by %c240_i32 dim 1 : vector<16x256xf32>, i32 -> vector<16x256xf32>
    %c239_i32 = arith.constant 239 : i32
    %9 = tpu.dynamic_rotate %1 by %c239_i32 dim 1 : vector<16x256xf32>, i32 -> vector<16x256xf32>
    %10 = tpu.concatenate %2, %3, %4, %5, %1, %6, %7, %8, %9 in 0 : vector<16x256xf32>, vector<16x256xf32>, vector<16x256xf32>, vector<16x256xf32>, vector<16x256xf32>, vector<16x256xf32>, vector<16x256xf32>, vector<16x256xf32>, vector<16x256xf32> -> vector<144x256xf32>
    %c0_2 = arith.constant 0 : index
    %c0_3 = arith.constant 0 : index
    %11 = vector.load %arg20[%c0_2, %c0_3] : memref<144x256xf32, #tpu.memory_space<vmem>>, vector<144x256xf32>
    %12 = arith.mulf %10, %11 : vector<144x256xf32>
    %c0_4 = arith.constant 0 : index
    %c0_5 = arith.constant 0 : index
    %13 = vector.load %arg14[%c0_4, %c0_5] : memref<256x128xf32, #tpu.memory_space<vmem>>, vector<256x128xf32>
    %cst = arith.constant dense<0.000000e+00> : vector<16x128xf32>
    %14 = tpu.matmul %1, %13, %cst {dimension_numbers = #tpu.dot_dimension_numbers<[1], [0], [0], [1], [0, 0, 1, 1], [], []>} : vector<16x256xf32>, vector<256x128xf32>, vector<16x128xf32> -> vector<16x128xf32>
    %c9_i32 = arith.constant 9 : i32
    %15 = tpu.dynamic_rotate %14 by %c9_i32 dim 1 : vector<16x128xf32>, i32 -> vector<16x128xf32>
    %c8_i32 = arith.constant 8 : i32
    %16 = tpu.dynamic_rotate %14 by %c8_i32 dim 1 : vector<16x128xf32>, i32 -> vector<16x128xf32>
    %c7_i32 = arith.constant 7 : i32
    %17 = tpu.dynamic_rotate %14 by %c7_i32 dim 1 : vector<16x128xf32>, i32 -> vector<16x128xf32>
    %c1_i32_6 = arith.constant 1 : i32
    %18 = tpu.dynamic_rotate %14 by %c1_i32_6 dim 1 : vector<16x128xf32>, i32 -> vector<16x128xf32>
    %c127_i32 = arith.constant 127 : i32
    %19 = tpu.dynamic_rotate %14 by %c127_i32 dim 1 : vector<16x128xf32>, i32 -> vector<16x128xf32>
    %c121_i32 = arith.constant 121 : i32
    %20 = tpu.dynamic_rotate %14 by %c121_i32 dim 1 : vector<16x128xf32>, i32 -> vector<16x128xf32>
    %c120_i32 = arith.constant 120 : i32
    %21 = tpu.dynamic_rotate %14 by %c120_i32 dim 1 : vector<16x128xf32>, i32 -> vector<16x128xf32>
    %c119_i32 = arith.constant 119 : i32
    %22 = tpu.dynamic_rotate %14 by %c119_i32 dim 1 : vector<16x128xf32>, i32 -> vector<16x128xf32>
    %23 = tpu.concatenate %15, %16, %17, %18, %14, %19, %20, %21, %22 in 0 : vector<16x128xf32>, vector<16x128xf32>, vector<16x128xf32>, vector<16x128xf32>, vector<16x128xf32>, vector<16x128xf32>, vector<16x128xf32>, vector<16x128xf32>, vector<16x128xf32> -> vector<144x128xf32>
    %c0_7 = arith.constant 0 : index
    %c0_8 = arith.constant 0 : index
    %24 = vector.load %arg21[%c0_7, %c0_8] : memref<144x128xf32, #tpu.memory_space<vmem>>, vector<144x128xf32>
    %25 = arith.mulf %23, %24 : vector<144x128xf32>
    %26 = tpu.concatenate %12, %25 in 1 : vector<144x256xf32>, vector<144x128xf32> -> vector<144x384xf32>
    %c0_9 = arith.constant 0 : index
    %c0_10 = arith.constant 0 : index
    %27 = vector.load %arg2[%c0_9, %c0_10] : memref<16x144xf32, #tpu.memory_space<vmem>>, vector<16x144xf32>
    %cst_11 = arith.constant dense<0.000000e+00> : vector<16x384xf32>
    %28 = tpu.matmul %27, %26, %cst_11 {dimension_numbers = #tpu.dot_dimension_numbers<[1], [0], [0], [1], [0, 0, 1, 1], [], []>} : vector<16x144xf32>, vector<144x384xf32>, vector<16x384xf32> -> vector<16x384xf32>
    %c0_12 = arith.constant 0 : index
    %c0_13 = arith.constant 0 : index
    %29 = vector.load %arg3[%c0_12, %c0_13] : memref<16x1xf32, #tpu.memory_space<vmem>>, vector<16x1xf32>
    %30 = vector.broadcast %29 : vector<16x1xf32> to vector<16x384xf32>
    %31 = arith.addf %28, %30 : vector<16x384xf32>
    %cst_14 = arith.constant 0.000000e+00 : f32
    %32 = vector.broadcast %cst_14 : f32 to vector<16x384xf32>
    %33 = arith.cmpf oge, %31, %32 : vector<16x384xf32>
    %cst_15 = arith.constant 2.000000e-01 : f32
    %34 = vector.broadcast %cst_15 : f32 to vector<16x384xf32>
    %35 = arith.mulf %34, %31 : vector<16x384xf32>
    %36 = arith.select %33, %31, %35 : vector<16x384xi1>, vector<16x384xf32>
    %37 = vector.extract_strided_slice %36 {offsets = [0, 0], sizes = [16, 256], strides = [1, 1]} : vector<16x384xf32> to vector<16x256xf32>
    %38 = vector.extract_strided_slice %36 {offsets = [0, 256], sizes = [16, 128], strides = [1, 1]} : vector<16x384xf32> to vector<16x128xf32>
    %c0_16 = arith.constant 0 : index
    %c0_17 = arith.constant 0 : index
    %39 = vector.load %arg17[%c0_16, %c0_17] : memref<128x256xf32, #tpu.memory_space<vmem>>, vector<128x256xf32>
    %cst_18 = arith.constant dense<0.000000e+00> : vector<16x256xf32>
    %40 = tpu.matmul %38, %39, %cst_18 {dimension_numbers = #tpu.dot_dimension_numbers<[1], [0], [0], [1], [0, 0, 1, 1], [], []>} : vector<16x128xf32>, vector<128x256xf32>, vector<16x256xf32> -> vector<16x256xf32>
    %41 = tpu.concatenate %37, %40 in 0 : vector<16x256xf32>, vector<16x256xf32> -> vector<32x256xf32>
    %c0_19 = arith.constant 0 : index
    %c0_20 = arith.constant 0 : index
    %42 = vector.load %arg14[%c0_19, %c0_20] : memref<256x128xf32, #tpu.memory_space<vmem>>, vector<256x128xf32>
    %cst_21 = arith.constant dense<0.000000e+00> : vector<16x128xf32>
    %43 = tpu.matmul %37, %42, %cst_21 {dimension_numbers = #tpu.dot_dimension_numbers<[1], [0], [0], [1], [0, 0, 1, 1], [], []>} : vector<16x256xf32>, vector<256x128xf32>, vector<16x128xf32> -> vector<16x128xf32>
    %44 = tpu.concatenate %43, %38 in 0 : vector<16x128xf32>, vector<16x128xf32> -> vector<32x128xf32>
    %c0_22 = arith.constant 0 : index
    %c0_23 = arith.constant 0 : index
    %45 = vector.load %arg16[%c0_22, %c0_23] : memref<256x128xf32, #tpu.memory_space<vmem>>, vector<256x128xf32>
    %cst_24 = arith.constant dense<0.000000e+00> : vector<16x128xf32>
    %46 = tpu.matmul %37, %45, %cst_24 {dimension_numbers = #tpu.dot_dimension_numbers<[1], [0], [0], [1], [0, 0, 1, 1], [], []>} : vector<16x256xf32>, vector<256x128xf32>, vector<16x128xf32> -> vector<16x128xf32>
    %c0_25 = arith.constant 0 : index
    %c0_26 = arith.constant 0 : index
    %47 = vector.load %arg15[%c0_25, %c0_26] : memref<128x128xf32, #tpu.memory_space<vmem>>, vector<128x128xf32>
    %cst_27 = arith.constant dense<0.000000e+00> : vector<16x128xf32>
    %48 = tpu.matmul %38, %47, %cst_27 {dimension_numbers = #tpu.dot_dimension_numbers<[1], [0], [0], [1], [0, 0, 1, 1], [], []>} : vector<16x128xf32>, vector<128x128xf32>, vector<16x128xf32> -> vector<16x128xf32>
    %49 = tpu.concatenate %46, %48 in 0 : vector<16x128xf32>, vector<16x128xf32> -> vector<32x128xf32>
    %50 = tpu.concatenate %41, %44, %49 in 1 : vector<32x256xf32>, vector<32x128xf32>, vector<32x128xf32> -> vector<32x512xf32>
    %c0_28 = arith.constant 0 : index
    %c0_29 = arith.constant 0 : index
    %51 = vector.load %arg4[%c0_28, %c0_29] : memref<16x32xf32, #tpu.memory_space<vmem>>, vector<16x32xf32>
    %cst_30 = arith.constant dense<0.000000e+00> : vector<16x512xf32>
    %52 = tpu.matmul %51, %50, %cst_30 {dimension_numbers = #tpu.dot_dimension_numbers<[1], [0], [0], [1], [0, 0, 1, 1], [], []>} : vector<16x32xf32>, vector<32x512xf32>, vector<16x512xf32> -> vector<16x512xf32>
    %c0_31 = arith.constant 0 : index
    %c0_32 = arith.constant 0 : index
    %53 = vector.load %arg5[%c0_31, %c0_32] : memref<16x1xf32, #tpu.memory_space<vmem>>, vector<16x1xf32>
    %54 = vector.broadcast %53 : vector<16x1xf32> to vector<16x512xf32>
    %55 = arith.addf %52, %54 : vector<16x512xf32>
    %cst_33 = arith.constant 0.000000e+00 : f32
    %56 = vector.broadcast %cst_33 : f32 to vector<16x512xf32>
    %57 = arith.cmpf oge, %55, %56 : vector<16x512xf32>
    %cst_34 = arith.constant 2.000000e-01 : f32
    %58 = vector.broadcast %cst_34 : f32 to vector<16x512xf32>
    %59 = arith.mulf %58, %55 : vector<16x512xf32>
    %60 = arith.select %57, %55, %59 : vector<16x512xi1>, vector<16x512xf32>
    %61 = vector.extract_strided_slice %60 {offsets = [0, 0], sizes = [16, 256], strides = [1, 1]} : vector<16x512xf32> to vector<16x256xf32>
    %62 = vector.extract_strided_slice %60 {offsets = [0, 256], sizes = [16, 128], strides = [1, 1]} : vector<16x512xf32> to vector<16x128xf32>
    %63 = vector.extract_strided_slice %60 {offsets = [0, 384], sizes = [16, 128], strides = [1, 1]} : vector<16x512xf32> to vector<16x128xf32>
    %c17_i32_35 = arith.constant 17 : i32
    %64 = tpu.dynamic_rotate %61 by %c17_i32_35 dim 1 : vector<16x256xf32>, i32 -> vector<16x256xf32>
    %c16_i32_36 = arith.constant 16 : i32
    %65 = tpu.dynamic_rotate %61 by %c16_i32_36 dim 1 : vector<16x256xf32>, i32 -> vector<16x256xf32>
    %c15_i32_37 = arith.constant 15 : i32
    %66 = tpu.dynamic_rotate %61 by %c15_i32_37 dim 1 : vector<16x256xf32>, i32 -> vector<16x256xf32>
    %c1_i32_38 = arith.constant 1 : i32
    %67 = tpu.dynamic_rotate %61 by %c1_i32_38 dim 1 : vector<16x256xf32>, i32 -> vector<16x256xf32>
    %c255_i32_39 = arith.constant 255 : i32
    %68 = tpu.dynamic_rotate %61 by %c255_i32_39 dim 1 : vector<16x256xf32>, i32 -> vector<16x256xf32>
    %c241_i32_40 = arith.constant 241 : i32
    %69 = tpu.dynamic_rotate %61 by %c241_i32_40 dim 1 : vector<16x256xf32>, i32 -> vector<16x256xf32>
    %c240_i32_41 = arith.constant 240 : i32
    %70 = tpu.dynamic_rotate %61 by %c240_i32_41 dim 1 : vector<16x256xf32>, i32 -> vector<16x256xf32>
    %c239_i32_42 = arith.constant 239 : i32
    %71 = tpu.dynamic_rotate %61 by %c239_i32_42 dim 1 : vector<16x256xf32>, i32 -> vector<16x256xf32>
    %72 = tpu.concatenate %64, %65, %66, %67, %61, %68, %69, %70, %71 in 0 : vector<16x256xf32>, vector<16x256xf32>, vector<16x256xf32>, vector<16x256xf32>, vector<16x256xf32>, vector<16x256xf32>, vector<16x256xf32>, vector<16x256xf32>, vector<16x256xf32> -> vector<144x256xf32>
    %c0_43 = arith.constant 0 : index
    %c0_44 = arith.constant 0 : index
    %73 = vector.load %arg20[%c0_43, %c0_44] : memref<144x256xf32, #tpu.memory_space<vmem>>, vector<144x256xf32>
    %74 = arith.mulf %72, %73 : vector<144x256xf32>
    %c9_i32_45 = arith.constant 9 : i32
    %75 = tpu.dynamic_rotate %62 by %c9_i32_45 dim 1 : vector<16x128xf32>, i32 -> vector<16x128xf32>
    %c8_i32_46 = arith.constant 8 : i32
    %76 = tpu.dynamic_rotate %62 by %c8_i32_46 dim 1 : vector<16x128xf32>, i32 -> vector<16x128xf32>
    %c7_i32_47 = arith.constant 7 : i32
    %77 = tpu.dynamic_rotate %62 by %c7_i32_47 dim 1 : vector<16x128xf32>, i32 -> vector<16x128xf32>
    %c1_i32_48 = arith.constant 1 : i32
    %78 = tpu.dynamic_rotate %62 by %c1_i32_48 dim 1 : vector<16x128xf32>, i32 -> vector<16x128xf32>
    %c127_i32_49 = arith.constant 127 : i32
    %79 = tpu.dynamic_rotate %62 by %c127_i32_49 dim 1 : vector<16x128xf32>, i32 -> vector<16x128xf32>
    %c121_i32_50 = arith.constant 121 : i32
    %80 = tpu.dynamic_rotate %62 by %c121_i32_50 dim 1 : vector<16x128xf32>, i32 -> vector<16x128xf32>
    %c120_i32_51 = arith.constant 120 : i32
    %81 = tpu.dynamic_rotate %62 by %c120_i32_51 dim 1 : vector<16x128xf32>, i32 -> vector<16x128xf32>
    %c119_i32_52 = arith.constant 119 : i32
    %82 = tpu.dynamic_rotate %62 by %c119_i32_52 dim 1 : vector<16x128xf32>, i32 -> vector<16x128xf32>
    %83 = tpu.concatenate %75, %76, %77, %78, %62, %79, %80, %81, %82 in 0 : vector<16x128xf32>, vector<16x128xf32>, vector<16x128xf32>, vector<16x128xf32>, vector<16x128xf32>, vector<16x128xf32>, vector<16x128xf32>, vector<16x128xf32>, vector<16x128xf32> -> vector<144x128xf32>
    %c0_53 = arith.constant 0 : index
    %c0_54 = arith.constant 0 : index
    %84 = vector.load %arg21[%c0_53, %c0_54] : memref<144x128xf32, #tpu.memory_space<vmem>>, vector<144x128xf32>
    %85 = arith.mulf %83, %84 : vector<144x128xf32>
    %c5_i32 = arith.constant 5 : i32
    %86 = tpu.dynamic_rotate %63 by %c5_i32 dim 1 : vector<16x128xf32>, i32 -> vector<16x128xf32>
    %c4_i32 = arith.constant 4 : i32
    %87 = tpu.dynamic_rotate %63 by %c4_i32 dim 1 : vector<16x128xf32>, i32 -> vector<16x128xf32>
    %c3_i32 = arith.constant 3 : i32
    %88 = tpu.dynamic_rotate %63 by %c3_i32 dim 1 : vector<16x128xf32>, i32 -> vector<16x128xf32>
    %c1_i32_55 = arith.constant 1 : i32
    %89 = tpu.dynamic_rotate %63 by %c1_i32_55 dim 1 : vector<16x128xf32>, i32 -> vector<16x128xf32>
    %c127_i32_56 = arith.constant 127 : i32
    %90 = tpu.dynamic_rotate %63 by %c127_i32_56 dim 1 : vector<16x128xf32>, i32 -> vector<16x128xf32>
    %c125_i32 = arith.constant 125 : i32
    %91 = tpu.dynamic_rotate %63 by %c125_i32 dim 1 : vector<16x128xf32>, i32 -> vector<16x128xf32>
    %c124_i32 = arith.constant 124 : i32
    %92 = tpu.dynamic_rotate %63 by %c124_i32 dim 1 : vector<16x128xf32>, i32 -> vector<16x128xf32>
    %c123_i32 = arith.constant 123 : i32
    %93 = tpu.dynamic_rotate %63 by %c123_i32 dim 1 : vector<16x128xf32>, i32 -> vector<16x128xf32>
    %94 = tpu.concatenate %86, %87, %88, %89, %63, %90, %91, %92, %93 in 0 : vector<16x128xf32>, vector<16x128xf32>, vector<16x128xf32>, vector<16x128xf32>, vector<16x128xf32>, vector<16x128xf32>, vector<16x128xf32>, vector<16x128xf32>, vector<16x128xf32> -> vector<144x128xf32>
    %c0_57 = arith.constant 0 : index
    %c0_58 = arith.constant 0 : index
    %95 = vector.load %arg22[%c0_57, %c0_58] : memref<144x128xf32, #tpu.memory_space<vmem>>, vector<144x128xf32>
    %96 = arith.mulf %94, %95 : vector<144x128xf32>
    %97 = tpu.concatenate %74, %85, %96 in 1 : vector<144x256xf32>, vector<144x128xf32>, vector<144x128xf32> -> vector<144x512xf32>
    %c0_59 = arith.constant 0 : index
    %c0_60 = arith.constant 0 : index
    %98 = vector.load %arg6[%c0_59, %c0_60] : memref<16x144xf32, #tpu.memory_space<vmem>>, vector<16x144xf32>
    %cst_61 = arith.constant dense<0.000000e+00> : vector<16x512xf32>
    %99 = tpu.matmul %98, %97, %cst_61 {dimension_numbers = #tpu.dot_dimension_numbers<[1], [0], [0], [1], [0, 0, 1, 1], [], []>} : vector<16x144xf32>, vector<144x512xf32>, vector<16x512xf32> -> vector<16x512xf32>
    %c0_62 = arith.constant 0 : index
    %c0_63 = arith.constant 0 : index
    %100 = vector.load %arg7[%c0_62, %c0_63] : memref<16x1xf32, #tpu.memory_space<vmem>>, vector<16x1xf32>
    %101 = vector.broadcast %100 : vector<16x1xf32> to vector<16x512xf32>
    %102 = arith.addf %99, %101 : vector<16x512xf32>
    %cst_64 = arith.constant 0.000000e+00 : f32
    %103 = vector.broadcast %cst_64 : f32 to vector<16x512xf32>
    %104 = arith.cmpf oge, %102, %103 : vector<16x512xf32>
    %cst_65 = arith.constant 2.000000e-01 : f32
    %105 = vector.broadcast %cst_65 : f32 to vector<16x512xf32>
    %106 = arith.mulf %105, %102 : vector<16x512xf32>
    %107 = arith.select %104, %102, %106 : vector<16x512xi1>, vector<16x512xf32>
    %108 = vector.extract_strided_slice %107 {offsets = [0, 0], sizes = [16, 256], strides = [1, 1]} : vector<16x512xf32> to vector<16x256xf32>
    %109 = vector.extract_strided_slice %107 {offsets = [0, 256], sizes = [16, 128], strides = [1, 1]} : vector<16x512xf32> to vector<16x128xf32>
    %110 = vector.extract_strided_slice %107 {offsets = [0, 384], sizes = [16, 128], strides = [1, 1]} : vector<16x512xf32> to vector<16x128xf32>
    %c0_66 = arith.constant 0 : index
    %c0_67 = arith.constant 0 : index
    %111 = vector.load %arg17[%c0_66, %c0_67] : memref<128x256xf32, #tpu.memory_space<vmem>>, vector<128x256xf32>
    %cst_68 = arith.constant dense<0.000000e+00> : vector<16x256xf32>
    %112 = tpu.matmul %109, %111, %cst_68 {dimension_numbers = #tpu.dot_dimension_numbers<[1], [0], [0], [1], [0, 0, 1, 1], [], []>} : vector<16x128xf32>, vector<128x256xf32>, vector<16x256xf32> -> vector<16x256xf32>
    %c0_69 = arith.constant 0 : index
    %c0_70 = arith.constant 0 : index
    %113 = vector.load %arg19[%c0_69, %c0_70] : memref<128x256xf32, #tpu.memory_space<vmem>>, vector<128x256xf32>
    %cst_71 = arith.constant dense<0.000000e+00> : vector<16x256xf32>
    %114 = tpu.matmul %110, %113, %cst_71 {dimension_numbers = #tpu.dot_dimension_numbers<[1], [0], [0], [1], [0, 0, 1, 1], [], []>} : vector<16x128xf32>, vector<128x256xf32>, vector<16x256xf32> -> vector<16x256xf32>
    %115 = tpu.concatenate %108, %112, %114 in 0 : vector<16x256xf32>, vector<16x256xf32>, vector<16x256xf32> -> vector<48x256xf32>
    %c0_72 = arith.constant 0 : index
    %c0_73 = arith.constant 0 : index
    %116 = vector.load %arg14[%c0_72, %c0_73] : memref<256x128xf32, #tpu.memory_space<vmem>>, vector<256x128xf32>
    %cst_74 = arith.constant dense<0.000000e+00> : vector<16x128xf32>
    %117 = tpu.matmul %108, %116, %cst_74 {dimension_numbers = #tpu.dot_dimension_numbers<[1], [0], [0], [1], [0, 0, 1, 1], [], []>} : vector<16x256xf32>, vector<256x128xf32>, vector<16x128xf32> -> vector<16x128xf32>
    %c0_75 = arith.constant 0 : index
    %c0_76 = arith.constant 0 : index
    %118 = vector.load %arg18[%c0_75, %c0_76] : memref<128x128xf32, #tpu.memory_space<vmem>>, vector<128x128xf32>
    %cst_77 = arith.constant dense<0.000000e+00> : vector<16x128xf32>
    %119 = tpu.matmul %110, %118, %cst_77 {dimension_numbers = #tpu.dot_dimension_numbers<[1], [0], [0], [1], [0, 0, 1, 1], [], []>} : vector<16x128xf32>, vector<128x128xf32>, vector<16x128xf32> -> vector<16x128xf32>
    %120 = tpu.concatenate %117, %109, %119 in 0 : vector<16x128xf32>, vector<16x128xf32>, vector<16x128xf32> -> vector<48x128xf32>
    %121 = tpu.concatenate %115, %120 in 1 : vector<48x256xf32>, vector<48x128xf32> -> vector<48x384xf32>
    %c0_78 = arith.constant 0 : index
    %c0_79 = arith.constant 0 : index
    %122 = vector.load %arg8[%c0_78, %c0_79] : memref<16x48xf32, #tpu.memory_space<vmem>>, vector<16x48xf32>
    %cst_80 = arith.constant dense<0.000000e+00> : vector<16x384xf32>
    %123 = tpu.matmul %122, %121, %cst_80 {dimension_numbers = #tpu.dot_dimension_numbers<[1], [0], [0], [1], [0, 0, 1, 1], [], []>} : vector<16x48xf32>, vector<48x384xf32>, vector<16x384xf32> -> vector<16x384xf32>
    %c0_81 = arith.constant 0 : index
    %c0_82 = arith.constant 0 : index
    %124 = vector.load %arg9[%c0_81, %c0_82] : memref<16x1xf32, #tpu.memory_space<vmem>>, vector<16x1xf32>
    %125 = vector.broadcast %124 : vector<16x1xf32> to vector<16x384xf32>
    %126 = arith.addf %123, %125 : vector<16x384xf32>
    %cst_83 = arith.constant 0.000000e+00 : f32
    %127 = vector.broadcast %cst_83 : f32 to vector<16x384xf32>
    %128 = arith.cmpf oge, %126, %127 : vector<16x384xf32>
    %cst_84 = arith.constant 2.000000e-01 : f32
    %129 = vector.broadcast %cst_84 : f32 to vector<16x384xf32>
    %130 = arith.mulf %129, %126 : vector<16x384xf32>
    %131 = arith.select %128, %126, %130 : vector<16x384xi1>, vector<16x384xf32>
    %132 = vector.extract_strided_slice %131 {offsets = [0, 0], sizes = [16, 256], strides = [1, 1]} : vector<16x384xf32> to vector<16x256xf32>
    %133 = vector.extract_strided_slice %131 {offsets = [0, 256], sizes = [16, 128], strides = [1, 1]} : vector<16x384xf32> to vector<16x128xf32>
    %c17_i32_85 = arith.constant 17 : i32
    %134 = tpu.dynamic_rotate %132 by %c17_i32_85 dim 1 : vector<16x256xf32>, i32 -> vector<16x256xf32>
    %c16_i32_86 = arith.constant 16 : i32
    %135 = tpu.dynamic_rotate %132 by %c16_i32_86 dim 1 : vector<16x256xf32>, i32 -> vector<16x256xf32>
    %c15_i32_87 = arith.constant 15 : i32
    %136 = tpu.dynamic_rotate %132 by %c15_i32_87 dim 1 : vector<16x256xf32>, i32 -> vector<16x256xf32>
    %c1_i32_88 = arith.constant 1 : i32
    %137 = tpu.dynamic_rotate %132 by %c1_i32_88 dim 1 : vector<16x256xf32>, i32 -> vector<16x256xf32>
    %c255_i32_89 = arith.constant 255 : i32
    %138 = tpu.dynamic_rotate %132 by %c255_i32_89 dim 1 : vector<16x256xf32>, i32 -> vector<16x256xf32>
    %c241_i32_90 = arith.constant 241 : i32
    %139 = tpu.dynamic_rotate %132 by %c241_i32_90 dim 1 : vector<16x256xf32>, i32 -> vector<16x256xf32>
    %c240_i32_91 = arith.constant 240 : i32
    %140 = tpu.dynamic_rotate %132 by %c240_i32_91 dim 1 : vector<16x256xf32>, i32 -> vector<16x256xf32>
    %c239_i32_92 = arith.constant 239 : i32
    %141 = tpu.dynamic_rotate %132 by %c239_i32_92 dim 1 : vector<16x256xf32>, i32 -> vector<16x256xf32>
    %142 = tpu.concatenate %134, %135, %136, %137, %132, %138, %139, %140, %141 in 0 : vector<16x256xf32>, vector<16x256xf32>, vector<16x256xf32>, vector<16x256xf32>, vector<16x256xf32>, vector<16x256xf32>, vector<16x256xf32>, vector<16x256xf32>, vector<16x256xf32> -> vector<144x256xf32>
    %c0_93 = arith.constant 0 : index
    %c0_94 = arith.constant 0 : index
    %143 = vector.load %arg20[%c0_93, %c0_94] : memref<144x256xf32, #tpu.memory_space<vmem>>, vector<144x256xf32>
    %144 = arith.mulf %142, %143 : vector<144x256xf32>
    %c9_i32_95 = arith.constant 9 : i32
    %145 = tpu.dynamic_rotate %133 by %c9_i32_95 dim 1 : vector<16x128xf32>, i32 -> vector<16x128xf32>
    %c8_i32_96 = arith.constant 8 : i32
    %146 = tpu.dynamic_rotate %133 by %c8_i32_96 dim 1 : vector<16x128xf32>, i32 -> vector<16x128xf32>
    %c7_i32_97 = arith.constant 7 : i32
    %147 = tpu.dynamic_rotate %133 by %c7_i32_97 dim 1 : vector<16x128xf32>, i32 -> vector<16x128xf32>
    %c1_i32_98 = arith.constant 1 : i32
    %148 = tpu.dynamic_rotate %133 by %c1_i32_98 dim 1 : vector<16x128xf32>, i32 -> vector<16x128xf32>
    %c127_i32_99 = arith.constant 127 : i32
    %149 = tpu.dynamic_rotate %133 by %c127_i32_99 dim 1 : vector<16x128xf32>, i32 -> vector<16x128xf32>
    %c121_i32_100 = arith.constant 121 : i32
    %150 = tpu.dynamic_rotate %133 by %c121_i32_100 dim 1 : vector<16x128xf32>, i32 -> vector<16x128xf32>
    %c120_i32_101 = arith.constant 120 : i32
    %151 = tpu.dynamic_rotate %133 by %c120_i32_101 dim 1 : vector<16x128xf32>, i32 -> vector<16x128xf32>
    %c119_i32_102 = arith.constant 119 : i32
    %152 = tpu.dynamic_rotate %133 by %c119_i32_102 dim 1 : vector<16x128xf32>, i32 -> vector<16x128xf32>
    %153 = tpu.concatenate %145, %146, %147, %148, %133, %149, %150, %151, %152 in 0 : vector<16x128xf32>, vector<16x128xf32>, vector<16x128xf32>, vector<16x128xf32>, vector<16x128xf32>, vector<16x128xf32>, vector<16x128xf32>, vector<16x128xf32>, vector<16x128xf32> -> vector<144x128xf32>
    %c0_103 = arith.constant 0 : index
    %c0_104 = arith.constant 0 : index
    %154 = vector.load %arg21[%c0_103, %c0_104] : memref<144x128xf32, #tpu.memory_space<vmem>>, vector<144x128xf32>
    %155 = arith.mulf %153, %154 : vector<144x128xf32>
    %156 = tpu.concatenate %144, %155 in 1 : vector<144x256xf32>, vector<144x128xf32> -> vector<144x384xf32>
    %c0_105 = arith.constant 0 : index
    %c0_106 = arith.constant 0 : index
    %157 = vector.load %arg10[%c0_105, %c0_106] : memref<16x144xf32, #tpu.memory_space<vmem>>, vector<16x144xf32>
    %cst_107 = arith.constant dense<0.000000e+00> : vector<16x384xf32>
    %158 = tpu.matmul %157, %156, %cst_107 {dimension_numbers = #tpu.dot_dimension_numbers<[1], [0], [0], [1], [0, 0, 1, 1], [], []>} : vector<16x144xf32>, vector<144x384xf32>, vector<16x384xf32> -> vector<16x384xf32>
    %c0_108 = arith.constant 0 : index
    %c0_109 = arith.constant 0 : index
    %159 = vector.load %arg11[%c0_108, %c0_109] : memref<16x1xf32, #tpu.memory_space<vmem>>, vector<16x1xf32>
    %160 = vector.broadcast %159 : vector<16x1xf32> to vector<16x384xf32>
    %161 = arith.addf %158, %160 : vector<16x384xf32>
    %cst_110 = arith.constant 0.000000e+00 : f32
    %162 = vector.broadcast %cst_110 : f32 to vector<16x384xf32>
    %163 = arith.cmpf oge, %161, %162 : vector<16x384xf32>
    %cst_111 = arith.constant 2.000000e-01 : f32
    %164 = vector.broadcast %cst_111 : f32 to vector<16x384xf32>
    %165 = arith.mulf %164, %161 : vector<16x384xf32>
    %166 = arith.select %163, %161, %165 : vector<16x384xi1>, vector<16x384xf32>
    %167 = vector.extract_strided_slice %166 {offsets = [0, 0], sizes = [16, 256], strides = [1, 1]} : vector<16x384xf32> to vector<16x256xf32>
    %168 = vector.extract_strided_slice %166 {offsets = [0, 256], sizes = [16, 128], strides = [1, 1]} : vector<16x384xf32> to vector<16x128xf32>
    %c0_112 = arith.constant 0 : index
    %c0_113 = arith.constant 0 : index
    %169 = vector.load %arg17[%c0_112, %c0_113] : memref<128x256xf32, #tpu.memory_space<vmem>>, vector<128x256xf32>
    %cst_114 = arith.constant dense<0.000000e+00> : vector<16x256xf32>
    %170 = tpu.matmul %168, %169, %cst_114 {dimension_numbers = #tpu.dot_dimension_numbers<[1], [0], [0], [1], [0, 0, 1, 1], [], []>} : vector<16x128xf32>, vector<128x256xf32>, vector<16x256xf32> -> vector<16x256xf32>
    %171 = tpu.concatenate %167, %170 in 0 : vector<16x256xf32>, vector<16x256xf32> -> vector<32x256xf32>
    %c0_115 = arith.constant 0 : index
    %c0_116 = arith.constant 0 : index
    %172 = vector.load %arg12[%c0_115, %c0_116] : memref<16x32xf32, #tpu.memory_space<vmem>>, vector<16x32xf32>
    %cst_117 = arith.constant dense<0.000000e+00> : vector<16x256xf32>
    %173 = tpu.matmul %172, %171, %cst_117 {dimension_numbers = #tpu.dot_dimension_numbers<[1], [0], [0], [1], [0, 0, 1, 1], [], []>} : vector<16x32xf32>, vector<32x256xf32>, vector<16x256xf32> -> vector<16x256xf32>
    %c0_118 = arith.constant 0 : index
    %c0_119 = arith.constant 0 : index
    %174 = vector.load %arg13[%c0_118, %c0_119] : memref<16x1xf32, #tpu.memory_space<vmem>>, vector<16x1xf32>
    %175 = vector.broadcast %174 : vector<16x1xf32> to vector<16x256xf32>
    %176 = arith.addf %173, %175 : vector<16x256xf32>
    %cst_120 = arith.constant 0.000000e+00 : f32
    %177 = vector.broadcast %cst_120 : f32 to vector<16x256xf32>
    %178 = arith.cmpf oge, %176, %177 : vector<16x256xf32>
    %cst_121 = arith.constant 2.000000e-01 : f32
    %179 = vector.broadcast %cst_121 : f32 to vector<16x256xf32>
    %180 = arith.mulf %179, %176 : vector<16x256xf32>
    %181 = arith.select %178, %176, %180 : vector<16x256xi1>, vector<16x256xf32>
    %c0_122 = arith.constant 0 : index
    %c0_123 = arith.constant 0 : index
    %c0_124 = arith.constant 0 : index
    %182 = vector.load %arg23[%c0_122, %c0_123, %c0_124] : memref<1x16x256xf32, #tpu.memory_space<vmem>>, vector<1x16x256xf32>
    %183 = vector.shape_cast %182 : vector<1x16x256xf32> to vector<16x256xf32>
    %184 = vector.shape_cast %181 : vector<16x256xf32> to vector<1x16x256xf32>
    tpu.vector_store %arg23[%c0_122, %c0_123, %c0_124], %184 {strides = array<i32>} : memref<1x16x256xf32, #tpu.memory_space<vmem>>, vector<1x16x256xf32>,
    return
  }
  func.func @transform_0(%arg0: i32) -> (i32, i32, i32) {
    %c0_i32 = arith.constant 0 : i32
    %c0_i32_0 = arith.constant 0 : i32
    %c0_i32_1 = arith.constant 0 : i32
    return %arg0, %c0_i32, %c0_i32_0 : i32, i32, i32
  }
  func.func @transform_1(%arg0: i32) -> (i32, i32) {
    %c0_i32 = arith.constant 0 : i32
    %c0_i32_0 = arith.constant 0 : i32
    %c0_i32_1 = arith.constant 0 : i32
    return %c0_i32, %c0_i32_0 : i32, i32
  }
  func.func @transform_2(%arg0: i32) -> (i32, i32) {
    %c0_i32 = arith.constant 0 : i32
    %c0_i32_0 = arith.constant 0 : i32
    %c0_i32_1 = arith.constant 0 : i32
    return %c0_i32, %c0_i32_0 : i32, i32
  }
  func.func @transform_3(%arg0: i32) -> (i32, i32) {
    %c0_i32 = arith.constant 0 : i32
    %c0_i32_0 = arith.constant 0 : i32
    %c0_i32_1 = arith.constant 0 : i32
    return %c0_i32, %c0_i32_0 : i32, i32
  }
  func.func @transform_4(%arg0: i32) -> (i32, i32) {
    %c0_i32 = arith.constant 0 : i32
    %c0_i32_0 = arith.constant 0 : i32
    %c0_i32_1 = arith.constant 0 : i32
    return %c0_i32, %c0_i32_0 : i32, i32
  }
  func.func @transform_5(%arg0: i32) -> (i32, i32) {
    %c0_i32 = arith.constant 0 : i32
    %c0_i32_0 = arith.constant 0 : i32
    %c0_i32_1 = arith.constant 0 : i32
    return %c0_i32, %c0_i32_0 : i32, i32
  }
  func.func @transform_6(%arg0: i32) -> (i32, i32) {
    %c0_i32 = arith.constant 0 : i32
    %c0_i32_0 = arith.constant 0 : i32
    %c0_i32_1 = arith.constant 0 : i32
    return %c0_i32, %c0_i32_0 : i32, i32
  }
  func.func @transform_7(%arg0: i32) -> (i32, i32) {
    %c0_i32 = arith.constant 0 : i32
    %c0_i32_0 = arith.constant 0 : i32
    %c0_i32_1 = arith.constant 0 : i32
    return %c0_i32, %c0_i32_0 : i32, i32
  }
  func.func @transform_8(%arg0: i32) -> (i32, i32) {
    %c0_i32 = arith.constant 0 : i32
    %c0_i32_0 = arith.constant 0 : i32
    %c0_i32_1 = arith.constant 0 : i32
    return %c0_i32, %c0_i32_0 : i32, i32
  }
  func.func @transform_9(%arg0: i32) -> (i32, i32) {
    %c0_i32 = arith.constant 0 : i32
    %c0_i32_0 = arith.constant 0 : i32
    %c0_i32_1 = arith.constant 0 : i32
    return %c0_i32, %c0_i32_0 : i32, i32
  }
  func.func @transform_10(%arg0: i32) -> (i32, i32) {
    %c0_i32 = arith.constant 0 : i32
    %c0_i32_0 = arith.constant 0 : i32
    %c0_i32_1 = arith.constant 0 : i32
    return %c0_i32, %c0_i32_0 : i32, i32
  }
  func.func @transform_11(%arg0: i32) -> (i32, i32) {
    %c0_i32 = arith.constant 0 : i32
    %c0_i32_0 = arith.constant 0 : i32
    %c0_i32_1 = arith.constant 0 : i32
    return %c0_i32, %c0_i32_0 : i32, i32
  }
  func.func @transform_12(%arg0: i32) -> (i32, i32) {
    %c0_i32 = arith.constant 0 : i32
    %c0_i32_0 = arith.constant 0 : i32
    %c0_i32_1 = arith.constant 0 : i32
    return %c0_i32, %c0_i32_0 : i32, i32
  }
  func.func @transform_13(%arg0: i32) -> (i32, i32) {
    %c0_i32 = arith.constant 0 : i32
    %c0_i32_0 = arith.constant 0 : i32
    %c0_i32_1 = arith.constant 0 : i32
    return %c0_i32, %c0_i32_0 : i32, i32
  }
  func.func @transform_14(%arg0: i32) -> (i32, i32) {
    %c0_i32 = arith.constant 0 : i32
    %c0_i32_0 = arith.constant 0 : i32
    %c0_i32_1 = arith.constant 0 : i32
    return %c0_i32, %c0_i32_0 : i32, i32
  }
  func.func @transform_15(%arg0: i32) -> (i32, i32) {
    %c0_i32 = arith.constant 0 : i32
    %c0_i32_0 = arith.constant 0 : i32
    %c0_i32_1 = arith.constant 0 : i32
    return %c0_i32, %c0_i32_0 : i32, i32
  }
  func.func @transform_16(%arg0: i32) -> (i32, i32) {
    %c0_i32 = arith.constant 0 : i32
    %c0_i32_0 = arith.constant 0 : i32
    %c0_i32_1 = arith.constant 0 : i32
    return %c0_i32, %c0_i32_0 : i32, i32
  }
  func.func @transform_17(%arg0: i32) -> (i32, i32) {
    %c0_i32 = arith.constant 0 : i32
    %c0_i32_0 = arith.constant 0 : i32
    %c0_i32_1 = arith.constant 0 : i32
    return %c0_i32, %c0_i32_0 : i32, i32
  }
  func.func @transform_18(%arg0: i32) -> (i32, i32) {
    %c0_i32 = arith.constant 0 : i32
    %c0_i32_0 = arith.constant 0 : i32
    %c0_i32_1 = arith.constant 0 : i32
    return %c0_i32, %c0_i32_0 : i32, i32
  }
  func.func @transform_19(%arg0: i32) -> (i32, i32) {
    %c0_i32 = arith.constant 0 : i32
    %c0_i32_0 = arith.constant 0 : i32
    %c0_i32_1 = arith.constant 0 : i32
    return %c0_i32, %c0_i32_0 : i32, i32
  }
  func.func @transform_20(%arg0: i32) -> (i32, i32) {
    %c0_i32 = arith.constant 0 : i32
    %c0_i32_0 = arith.constant 0 : i32
    %c0_i32_1 = arith.constant 0 : i32
    return %c0_i32, %c0_i32_0 : i32, i32
  }
  func.func @transform_21(%arg0: i32) -> (i32, i32) {
    %c0_i32 = arith.constant 0 : i32
    %c0_i32_0 = arith.constant 0 : i32
    %c0_i32_1 = arith.constant 0 : i32
    return %c0_i32, %c0_i32_0 : i32, i32
  }
  func.func @transform_22(%arg0: i32) -> (i32, i32, i32) {
    %c0_i32 = arith.constant 0 : i32
    %c0_i32_0 = arith.constant 0 : i32
    %c0_i32_1 = arith.constant 0 : i32
    return %arg0, %c0_i32, %c0_i32_0 : i32, i32, i32
  }
}

</mosaic_0001>

<bundles_post_ra>
// kernel: rp_module_forward.1
= control target key start
LH: loop header
LB: loop body
LE: loop exit
PB: predicated region body
PF: predicated region fallthrough
CT: control target
= control target key end

     0   :  { %s7196_s0 = inlined_call_operand.vmem [shape: f32[2,16,256], index: 0, kind: input, shape index: {}]   ;;  %s7197_s1 = inlined_call_operand.hbm [shape: f32[16,144], index: 1, kind: input, shape index: {}]   ;;  %s7198_s2 = inlined_call_operand.vmem [shape: f32[16,1], index: 2, kind: input, shape index: {}]   ;;  %s7199_s3 = inlined_call_operand.hbm [shape: f32[16,32], index: 3, kind: input, shape index: {}]   ;;  %s7200_s4 = inlined_call_operand.vmem [shape: f32[16,1], index: 4, kind: input, shape index: {}]   ;;  %s7201_s5 = inlined_call_operand.hbm [shape: f32[16,144], index: 5, kind: input, shape index: {}]   ;;  %s7202_s6 = inlined_call_operand.vmem [shape: f32[16,1], index: 6, kind: input, shape index: {}]   ;;  %s7203_s7 = inlined_call_operand.hbm [shape: f32[16,48], index: 7, kind: input, shape index: {}]   ;;  %s7204_s8 = inlined_call_operand.vmem [shape: f32[16,1], index: 8, kind: input, shape index: {}]   ;;  %s7205_s9 = inlined_call_operand.hbm [shape: f32[16,144], index: 9, kind: input, shape index: {}]   ;;  %s7206_s10 = inlined_call_operand.vmem [shape: f32[16,1], index: 10, kind: input, shape index: {}]   ;;  %s7207_s11 = inlined_call_operand.vmem [shape: f32[16,32], index: 11, kind: input, shape index: {}]   ;;  %s7208_s12 = inlined_call_operand.vmem [shape: f32[16,1], index: 12, kind: input, shape index: {}]   ;;  %s7209_s13 = inlined_call_operand.vmem [shape: f32[256,128], index: 13, kind: input, shape index: {}]   ;;  %s7210_s14 = inlined_call_operand.hbm [shape: f32[128,128], index: 14, kind: input, shape index: {}]   ;;  %s7211_s15 = inlined_call_operand.hbm [shape: f32[256,128], index: 15, kind: input, shape index: {}]   ;;  %s7212_s16 = inlined_call_operand.hbm [shape: f32[128,256], index: 16, kind: input, shape index: {}]   ;;  %s7213_s17 = inlined_call_operand.hbm [shape: f32[128,128], index: 17, kind: input, shape index: {}]   ;;  %s7214_s18 = inlined_call_operand.hbm [shape: f32[128,256], index: 18, kind: input, shape index: {}]   ;;  %s7215_s19 = inlined_call_operand.vmem [shape: f32[144,256], index: 19, kind: input, shape index: {}]   ;;  %s7216_s20 = inlined_call_operand.vmem [shape: f32[144,128], index: 20, kind: input, shape index: {}]   ;;  %s7217_s21 = inlined_call_operand.hbm [shape: f32[144,128], index: 21, kind: input, shape index: {}]   ;;  %s7218_s22 = inlined_call_operand.vmem [shape: f32[2,16,256], index: 22, kind: output, shape index: {}]  }
   0x1   :  { %7289 = sst [smem:[#allocation45_spill]] %s7196_s0 }
   0x2   :  { %7290 = sst [smem:[#allocation46_spill]] %s7197_s1 }
   0x3   :  { %7291 = sst [smem:[#allocation47_spill]] %s7198_s2 }
   0x4   :  { %7292 = sst [smem:[#allocation48_spill]] %s7199_s3 }
   0x5   :  { %7293 = sst [smem:[#allocation49_spill]] %s7200_s4 }
   0x6   :  { %7294 = sst [smem:[#allocation50_spill]] %s7201_s5 }
   0x7   :  { %7295 = sst [smem:[#allocation51_spill]] %s7202_s6 }
   0x8   :  { %7296 = sst [smem:[#allocation52_spill]] %s7203_s7 }
   0x9   :  { %7297 = sst [smem:[#allocation53_spill]] %s7204_s8 }
   0xa   :  { %7298 = sst [smem:[#allocation54_spill]] %s7205_s9 }
   0xb   :  { %7299 = sst [smem:[#allocation55_spill]] %s7206_s10 }
   0xc   :  { %7300 = sst [smem:[#allocation56_spill]] %s7207_s11 }
   0xd   :  { %7301 = sst [smem:[#allocation57_spill]] %s7208_s12 }
   0xe   :  { %7302 = sst [smem:[#allocation58_spill]] %s7218_s22 }
   0xf   :  { %27 = vsyncpa [#allocation3], 0 }
  0x10   :  { %28 = vsyncpa [#allocation5], 0 }
  0x11   :  { %29 = vsyncpa [#allocation8], 0 }
  0x12   :  { %30 = vsyncpa [#allocation11], 0 }
  0x13   :  { %31 = vsyncpa [#allocation14], 0 }
  0x14   :  { %32 = vsyncpa [#allocation17], 0  ;;  %s5321_s3 = smov 0  }
  0x15 LB: > { %7303 = sst [smem:[#allocation25_spill]] %s5166_s3  ;;  %s5168_s28 = smov [#allocation4]   ;;  %s5166_s3 = sphi %s5321_s3, %s38_s3  }
  0x16   : > { %s564_s29 = sshll.u32 %s5168_s28, 4  ;;  %s5327_s30 = sadd.s32 4294967295, %s5166_s3   ;;  %s5332_s29 = int_to_ptr.vmem [resolvable:$true] %s564_s29 }
  0x17   : > { %p3696_p0 = scmp.ge.s32.totalorder %s5166_s3, 1  ;;  %p536_p1 = scmp.lt.s32.totalorder %s5166_s3, 3 }
  0x18   : > { %p7229_p2 = scmp.eq.s32.totalorder %s5327_s30, 0  ;;  %s5169_s0 = smov [#allocation7]  }
  0x19   : > { %p5334_p3 = pnand %p3696_p0, %p536_p1  ;;  %s596_s23 = sshll.u32 %s5169_s0, 4  ;;  %s5340_s23 = int_to_ptr.vmem [resolvable:$true] %s596_s23 }
  0x1a   : > { %s5170_s5 = smov [#allocation10]   ;;  %s7306_s26 = sld [smem:[#allocation48_spill]] }
  0x1b   : > { %s7304_s4 = scalar_select %p5334_p3, 1, 0 }
  0x1c   : > { %p4642_p4 = pneg %p5334_p3  ;;  %s637_s24 = sshll.u32 %s5170_s5, 4  ;;  %s5348_s24 = int_to_ptr.vmem [resolvable:$true] %s637_s24 }
  0x1e   : > { %p5344_p5 = pnand %p7229_p2, %p4642_p4 }
  0x20   : > { %s4828_s2 = scalar_lea.hbm %s7306_s26, 256  ;;  %p5358_p7 = pneg %p5344_p5 }
  0x21   : > { %p4829_p6 = scmp.ne.s32.totalorder %s7306_s26, %s4828_s2  ;;  %p4835_p10 = scmp.lt.u32.totalorder %s4828_s2, %s7306_s26 }
  0x23   : > { %p4831_p8 = pnand %p5358_p7, %p4829_p6 }
  0x25   : > { %p4832_p9 = pneg %p4831_p8 }
  0x27   : > { %p4837_p11 = pnand %p4835_p10, %p4832_p9 }
  0x29   : > { %4840 = shalt.err (!%p4837_p11)
}
  0x2a   : > { %s4841_s6 = scalar_lea.vmem %s5332_s29, 256  ;;  %p4849_p1 = scmp.lt.s32.totalorder %s5332_s29, %s5332_s29 }
  0x2b   : > { %p4842_p12 = scmp.ne.s32.totalorder %s5332_s29, %s4841_s6  ;;  %p4850_p4 = scmp.lt.s32.totalorder %s4841_s6, %s4841_s6 }
  0x2d   : > { %p4844_p13 = pnand %p4842_p12, %p5358_p7  ;;  %p4851_p6 = por %p4850_p4, %p4849_p1 }
  0x2f   : > { %p4845_p0 = pneg %p4844_p13 }
  0x31   : > { %p4852_p8 = pnand %p4851_p6, %p4845_p0 }
  0x33   : > { %4855 = shalt.err (!%p4852_p8)
}
  0x34   : > { %s7231_s25 = smov 128   ;;  %s7233_s3 = smov 8  }
  0x35   : > { %4648 = dma.hbm_to_vmem [thread:$0]  (!%p5344_p5), %s7306_s26, 256, %s5332_s29, [#allocation5], %s7231_s25, %s7231_s25, %s7233_s3  }
  0x36   : > { %s7308_s7 = sld [smem:[#allocation52_spill]] }
  0x3c   : > { %s4856_s6 = scalar_lea.hbm %s7308_s7, 256 }
  0x3d   : > { %p4857_p9 = scmp.ne.s32.totalorder %s7308_s7, %s4856_s6  ;;  %p4863_p12 = scmp.lt.u32.totalorder %s4856_s6, %s7308_s7 }
  0x3f   : > { %p4859_p10 = pnand %p4857_p9, %p5358_p7 }
  0x41   : > { %p4860_p11 = pneg %p4859_p10 }
  0x43   : > { %p4865_p13 = pnand %p4863_p12, %p4860_p11 }
  0x45   : > { %4868 = shalt.err (!%p4865_p13)
}
  0x46   : > { %s4869_s29 = scalar_lea.vmem %s5340_s23, 256  ;;  %p4877_p6 = scmp.lt.s32.totalorder %s5340_s23, %s5340_s23 }
  0x47   : > { %p4870_p0 = scmp.ne.s32.totalorder %s5340_s23, %s4869_s29  ;;  %p4878_p8 = scmp.lt.s32.totalorder %s4869_s29, %s4869_s29 }
  0x49   : > { %p4872_p1 = pnand %p4870_p0, %p5358_p7  ;;  %p4879_p9 = por %p4878_p8, %p4877_p6 }
  0x4b   : > { %p4873_p4 = pneg %p4872_p1 }
  0x4d   : > { %p4880_p10 = pnand %p4879_p9, %p4873_p4 }
  0x4f   : > { %4883 = shalt.err (!%p4880_p10)
}
  0x50   : > { %4654 = dma.hbm_to_vmem [thread:$0]  (!%p5344_p5), %s7308_s7, 256, %s5340_s23, [#allocation8], %s7231_s25, %s7231_s25, %s7233_s3  }
  0x51   : > { %s4884_s2 = scalar_lea.hbm %s7210_s14, 2048 }
  0x52   : > { %p4885_p11 = scmp.ne.s32.totalorder %s7210_s14, %s4884_s2  ;;  %p4891_p0 = scmp.lt.u32.totalorder %s4884_s2, %s7210_s14 }
  0x54   : > { %p4887_p12 = pnand %p4885_p11, %p5358_p7 }
  0x56   : > { %p4888_p13 = pneg %p4887_p12 }
  0x58   : > { %p4893_p1 = pnand %p4891_p0, %p4888_p13 }
  0x5a   : > { %4896 = shalt.err (!%p4893_p1)
}
  0x5b   : > { %s4897_s23 = scalar_lea.vmem %s5348_s24, 2048  ;;  %p4905_p9 = scmp.lt.s32.totalorder %s5348_s24, %s5348_s24 }
  0x5c   : > { %p4898_p4 = scmp.ne.s32.totalorder %s5348_s24, %s4897_s23  ;;  %p4906_p10 = scmp.lt.s32.totalorder %s4897_s23, %s4897_s23 }
  0x5e   : > { %p4900_p6 = pnand %p4898_p4, %p5358_p7  ;;  %p4907_p11 = por %p4906_p10, %p4905_p9 }
  0x60   : > { %p4901_p8 = pneg %p4900_p6 }
  0x62   : > { %p4908_p12 = pnand %p4907_p11, %p4901_p8 }
  0x64   : > { %4911 = shalt.err (!%p4908_p12)
}
  0x65   : > { %4660 = dma.hbm_to_vmem [thread:$0]  (!%p5344_p5), %s7210_s14, 2048, %s5348_s24, [#allocation11], %s7231_s25, %s7231_s25, %s7233_s3  }
  0x66   : > { %s5173_s11 = smov [#allocation13]   ;;  %s5174_s22 = smov [#allocation16]  }
  0x67   : > { %s663_s12 = sshll.u32 %s5173_s11, 4  ;;  %s689_s2 = sshll.u32 %s5174_s22, 4  ;;  %s664_s12 = int_to_ptr.vmem [resolvable:$true] %s663_s12  ;;  %s5434_s2 = int_to_ptr.vmem [resolvable:$true] %s689_s2 }
  0x68   : > { %s4912_s5 = scalar_lea.hbm %s7212_s16, 4096 }
  0x69   : > { %p4913_p13 = scmp.ne.s32.totalorder %s7212_s16, %s4912_s5  ;;  %p4919_p4 = scmp.lt.u32.totalorder %s4912_s5, %s7212_s16 }
  0x6b   : > { %p4915_p0 = pnand %p4913_p13, %p5358_p7 }
  0x6d   : > { %p4916_p1 = pneg %p4915_p0 }
  0x6f   : > { %p4921_p6 = pnand %p4919_p4, %p4916_p1 }
  0x71   : > { %4924 = shalt.err (!%p4921_p6)
}
  0x72   : > { %s4925_s10 = scalar_lea.vmem %s664_s12, 4096  ;;  %p4933_p11 = scmp.lt.s32.totalorder %s664_s12, %s664_s12 }
  0x73   : > { %p4926_p8 = scmp.ne.s32.totalorder %s664_s12, %s4925_s10  ;;  %p4934_p12 = scmp.lt.s32.totalorder %s4925_s10, %s4925_s10 }
  0x75   : > { %p4928_p9 = pnand %p4926_p8, %p5358_p7  ;;  %p4935_p2 = por %p4934_p12, %p4933_p11 }
  0x77   : > { %p4929_p10 = pneg %p4928_p9 }
  0x79   : > { %p4936_p3 = pnand %p4935_p2, %p4929_p10 }
  0x7b   : > { %4939 = shalt.err (!%p4936_p3)
}
  0x7c   : > { %s5175_s11 = smov 256   ;;  %s5176_s22 = smov 16  }
  0x7d   : > { %4666 = dma.hbm_to_vmem [thread:$0]  (!%p5344_p5), %s7212_s16, 4096, %s664_s12, [#allocation14], %s5175_s11, %s5175_s11, %s5176_s22  }
  0x7e   : > { %s4940_s23 = scalar_lea.hbm %s7214_s18, 4096 }
  0x7f   : > { %p4941_p2 = scmp.ne.s32.totalorder %s7214_s18, %s4940_s23  ;;  %p4947_p0 = scmp.lt.u32.totalorder %s4940_s23, %s7214_s18 }
  0x81   : > { %p4943_p3 = pnand %p4941_p2, %p5358_p7 }
  0x83   : > { %p4944_p13 = pneg %p4943_p3 }
  0x85   : > { %p4949_p1 = pnand %p4947_p0, %p4944_p13 }
  0x87   : > { %4952 = shalt.err (!%p4949_p1)
}
  0x88   : > { %s4953_s12 = scalar_lea.vmem %s5434_s2, 4096  ;;  %p4961_p9 = scmp.lt.s32.totalorder %s5434_s2, %s5434_s2 }
  0x89   : > { %p4954_p4 = scmp.ne.s32.totalorder %s5434_s2, %s4953_s12  ;;  %p4962_p10 = scmp.lt.s32.totalorder %s4953_s12, %s4953_s12 }
  0x8b   : > { %p4956_p6 = pnand %p4954_p4, %p5358_p7  ;;  %p4963_p11 = por %p4962_p10, %p4961_p9 }
  0x8d   : > { %p4957_p8 = pneg %p4956_p6 }
  0x8f   : > { %p4964_p12 = pnand %p4963_p11, %p4957_p8 }
  0x91   : > { %4967 = shalt.err (!%p4964_p12)
}
  0x92   : > { %4672 = dma.hbm_to_vmem [thread:$0]  (!%p5344_p5), %s7214_s18, 4096, %s5434_s2, [#allocation17], %s5175_s11, %s5175_s11, %s5176_s22  }
  0x93   : > { %s5177_s28 = smov [#allocation2]   ;;  %s5178_s6 = smov [#allocation6]  }
  0x94   : > { %s548_s5 = sshll.u32 %s5177_s28, 4  ;;  %s580_s23 = sshll.u32 %s5178_s6, 4  ;;  %s549_s5 = int_to_ptr.vmem [resolvable:$true] %s548_s5  ;;  %s5483_s23 = int_to_ptr.vmem [resolvable:$true] %s580_s23 }
  0x95   : > { %s7309_s10 = sld [smem:[#allocation46_spill]] }
  0x9b   : > { %s4968_s12 = scalar_lea.hbm %s7309_s10, 512 }
  0x9c   : > { %p4969_p2 = scmp.ne.s32.totalorder %s7309_s10, %s4968_s12  ;;  %p4975_p0 = scmp.lt.u32.totalorder %s4968_s12, %s7309_s10 }
  0x9e   : > { %p4971_p3 = pnand %p4969_p2, %p5358_p7 }
  0xa0   : > { %p4972_p13 = pneg %p4971_p3 }
  0xa2   : > { %p4977_p1 = pnand %p4975_p0, %p4972_p13 }
  0xa4   : > { %4980 = shalt.err (!%p4977_p1)
}
  0xa5   : > { %s4981_s27 = scalar_lea.vmem %s549_s5, 512  ;;  %p4989_p9 = scmp.lt.s32.totalorder %s549_s5, %s549_s5 }
  0xa6   : > { %p4982_p4 = scmp.ne.s32.totalorder %s549_s5, %s4981_s27  ;;  %p4990_p10 = scmp.lt.s32.totalorder %s4981_s27, %s4981_s27 }
  0xa8   : > { %p4984_p6 = pnand %p4982_p4, %p5358_p7  ;;  %p4991_p11 = por %p4990_p10, %p4989_p9 }
  0xaa   : > { %p4985_p8 = pneg %p4984_p6 }
  0xac   : > { %p4992_p12 = pnand %p4991_p11, %p4985_p8 }
  0xae   : > { %4995 = shalt.err (!%p4992_p12)
}
  0xaf   : > { %4645 = dma.hbm_to_vmem [thread:$0]  (!%p5344_p5), %s7309_s10, 512, %s549_s5, [#allocation3], %s5175_s11, %s5175_s11, %s5176_s22  }
  0xb0   : > { %s7310_s29 = sld [smem:[#allocation50_spill]] }
  0xb6   : > { %s4996_s24 = scalar_lea.hbm %s7310_s29, 512 }
  0xb7   : > { %p4997_p2 = scmp.ne.s32.totalorder %s7310_s29, %s4996_s24  ;;  %p5003_p0 = scmp.lt.u32.totalorder %s4996_s24, %s7310_s29 }
  0xb9   : > { %p4999_p3 = pnand %p4997_p2, %p5358_p7 }
  0xbb   : > { %p5000_p13 = pneg %p4999_p3 }
  0xbd   : > { %p5005_p1 = pnand %p5003_p0, %p5000_p13 }
  0xbf   : > { %5008 = shalt.err (!%p5005_p1)
}
  0xc0   : > { %s5009_s5 = scalar_lea.vmem %s5483_s23, 512  ;;  %p5017_p9 = scmp.lt.s32.totalorder %s5483_s23, %s5483_s23 }
  0xc1   : > { %p5010_p4 = scmp.ne.s32.totalorder %s5483_s23, %s5009_s5  ;;  %p5018_p10 = scmp.lt.s32.totalorder %s5009_s5, %s5009_s5 }
  0xc3   : > { %p5012_p6 = pnand %p5010_p4, %p5358_p7  ;;  %p5019_p11 = por %p5018_p10, %p5017_p9 }
  0xc5   : > { %p5013_p8 = pneg %p5012_p6 }
  0xc7   : > { %p5020_p12 = pnand %p5019_p11, %p5013_p8 }
  0xc9   : > { %5023 = shalt.err (!%p5020_p12)
}
  0xca   : > { %4651 = dma.hbm_to_vmem [thread:$0]  (!%p5344_p5), %s7310_s29, 512, %s5483_s23, [#allocation5], %s5175_s11, %s5175_s11, %s5176_s22  }
  0xcb   : > { %s5179_s28 = smov [#allocation9]   ;;  %s5180_s24 = smov [#allocation12]  }
  0xcc   : > { %s612_s6 = sshll.u32 %s5179_s28, 4  ;;  %s650_s12 = sshll.u32 %s5180_s24, 4  ;;  %s613_s6 = int_to_ptr.vmem [resolvable:$true] %s612_s6  ;;  %s5532_s12 = int_to_ptr.vmem [resolvable:$true] %s650_s12 }
  0xcd   : > { %s7311_s9 = sld [smem:[#allocation54_spill]] }
  0xd3   : > { %s5024_s27 = scalar_lea.hbm %s7311_s9, 512 }
  0xd4   : > { %p5025_p2 = scmp.ne.s32.totalorder %s7311_s9, %s5024_s27  ;;  %p5031_p0 = scmp.lt.u32.totalorder %s5024_s27, %s7311_s9 }
  0xd6   : > { %p5027_p3 = pnand %p5025_p2, %p5358_p7 }
  0xd8   : > { %p5028_p13 = pneg %p5027_p3 }
  0xda   : > { %p5033_p1 = pnand %p5031_p0, %p5028_p13 }
  0xdc   : > { %5036 = shalt.err (!%p5033_p1)
}
  0xdd   : > { %s5037_s3 = scalar_lea.vmem %s613_s6, 512  ;;  %p5045_p9 = scmp.lt.s32.totalorder %s613_s6, %s613_s6 }
  0xde   : > { %p5038_p4 = scmp.ne.s32.totalorder %s613_s6, %s5037_s3  ;;  %p5046_p10 = scmp.lt.s32.totalorder %s5037_s3, %s5037_s3 }
  0xe0   : > { %p5040_p6 = pnand %p5038_p4, %p5358_p7  ;;  %p5047_p11 = por %p5046_p10, %p5045_p9 }
  0xe2   : > { %p5041_p8 = pneg %p5040_p6 }
  0xe4   : > { %p5048_p12 = pnand %p5047_p11, %p5041_p8 }
  0xe6   : > { %5051 = shalt.err (!%p5048_p12)
}
  0xe7   : > { %4657 = dma.hbm_to_vmem [thread:$0]  (!%p5344_p5), %s7311_s9, 512, %s613_s6, [#allocation8], %s5175_s11, %s5175_s11, %s5176_s22  }
  0xe8   : > { %s5052_s2 = scalar_lea.hbm %s7211_s15, 4096 }
  0xe9   : > { %p5053_p2 = scmp.ne.s32.totalorder %s7211_s15, %s5052_s2  ;;  %p5059_p0 = scmp.lt.u32.totalorder %s5052_s2, %s7211_s15 }
  0xeb   : > { %p5055_p3 = pnand %p5053_p2, %p5358_p7 }
  0xed   : > { %p5056_p13 = pneg %p5055_p3 }
  0xef   : > { %p5061_p1 = pnand %p5059_p0, %p5056_p13 }
  0xf1   : > { %5064 = shalt.err (!%p5061_p1)
}
  0xf2   : > { %s5065_s11 = scalar_lea.vmem %s5532_s12, 4096  ;;  %p5073_p9 = scmp.lt.s32.totalorder %s5532_s12, %s5532_s12 }
  0xf3   : > { %p5066_p4 = scmp.ne.s32.totalorder %s5532_s12, %s5065_s11  ;;  %p5074_p10 = scmp.lt.s32.totalorder %s5065_s11, %s5065_s11 }
  0xf5   : > { %p5068_p6 = pnand %p5066_p4, %p5358_p7  ;;  %p5075_p11 = por %p5074_p10, %p5073_p9 }
  0xf7   : > { %p5069_p8 = pneg %p5068_p6 }
  0xf9   : > { %p5076_p12 = pnand %p5075_p11, %p5069_p8 }
  0xfb   : > { %5079 = shalt.err (!%p5076_p12)
}
  0xfc   : > { %s7312_s22 = smov 8   ;;  %s7313_s6 = smov 128  }
  0xfd   : > { %4663 = dma.hbm_to_vmem [thread:$0]  (!%p5344_p5), %s7211_s15, 4096, %s5532_s12, [#allocation11], %s7313_s6, %s7313_s6, %s7312_s22  }
  0xfe   : > { %s5181_s28 = smov [#allocation15]   ;;  %s5182_s25 = smov [#allocation18]  }
  0xff   : > { %s676_s24 = sshll.u32 %s5181_s28, 4  ;;  %s708_s2 = sshll.u32 %s5182_s25, 4  ;;  %s677_s24 = int_to_ptr.vmem [resolvable:$true] %s676_s24  ;;  %s5581_s2 = int_to_ptr.vmem [resolvable:$true] %s708_s2 }
 0x100   : > { %s5080_s7 = scalar_lea.hbm %s7213_s17, 2048 }
 0x101   : > { %p5081_p2 = scmp.ne.s32.totalorder %s7213_s17, %s5080_s7  ;;  %p5087_p0 = scmp.lt.u32.totalorder %s5080_s7, %s7213_s17 }
 0x103   : > { %p5083_p3 = pnand %p5081_p2, %p5358_p7 }
 0x105   : > { %p5084_p13 = pneg %p5083_p3 }
 0x107   : > { %p5089_p1 = pnand %p5087_p0, %p5084_p13 }
 0x109   : > { %5092 = shalt.err (!%p5089_p1)
}
 0x10a   : > { %s5093_s10 = scalar_lea.vmem %s677_s24, 2048  ;;  %p5101_p9 = scmp.lt.s32.totalorder %s677_s24, %s677_s24 }
 0x10b   : > { %p5094_p4 = scmp.ne.s32.totalorder %s677_s24, %s5093_s10  ;;  %p5102_p10 = scmp.lt.s32.totalorder %s5093_s10, %s5093_s10 }
 0x10d   : > { %p5096_p6 = pnand %p5094_p4, %p5358_p7  ;;  %p5103_p11 = por %p5102_p10, %p5101_p9 }
 0x10f   : > { %p5097_p8 = pneg %p5096_p6 }
 0x111   : > { %p5104_p12 = pnand %p5103_p11, %p5097_p8 }
 0x113   : > { %5107 = shalt.err (!%p5104_p12)
}
 0x114   : > { %4669 = dma.hbm_to_vmem [thread:$0]  (!%p5344_p5), %s7213_s17, 2048, %s677_s24, [#allocation14], %s7313_s6, %s7313_s6, %s7312_s22  }
 0x115   : > { %s5108_s7 = scalar_lea.hbm %s7217_s21, 2304 }
 0x116   : > { %p5109_p2 = scmp.ne.s32.totalorder %s7217_s21, %s5108_s7  ;;  %p5115_p0 = scmp.lt.u32.totalorder %s5108_s7, %s7217_s21 }
 0x118   : > { %p5111_p3 = pnand %p5109_p2, %p5358_p7 }
 0x11a   : > { %p5112_p13 = pneg %p5111_p3 }
 0x11c   : > { %p5117_p1 = pnand %p5115_p0, %p5112_p13 }
 0x11e   : > { %5120 = shalt.err (!%p5117_p1)
}
 0x11f   : > { %s5121_s24 = scalar_lea.vmem %s5581_s2, 2304  ;;  %p5129_p9 = scmp.lt.s32.totalorder %s5581_s2, %s5581_s2 }
 0x120   : > { %p5122_p4 = scmp.ne.s32.totalorder %s5581_s2, %s5121_s24  ;;  %p5130_p10 = scmp.lt.s32.totalorder %s5121_s24, %s5121_s24 }
 0x122   : > { %p5124_p6 = pnand %p5122_p4, %p5358_p7  ;;  %p5131_p11 = por %p5130_p10, %p5129_p9 }
 0x124   : > { %p5125_p8 = pneg %p5124_p6 }
 0x126   : > { %p5132_p12 = pnand %p5131_p11, %p5125_p8 }
 0x128   : > { %5135 = shalt.err (!%p5132_p12)
}
 0x129   : > { %4675 = dma.hbm_to_vmem [thread:$0]  (!%p5344_p5), %s7217_s21, 2304, %s5581_s2, [#allocation17], %s7313_s6, %s7313_s6, %s7312_s22  }
 0x12a   : > { %p7314_p2 = scmp.ne.s32.totalorder %s7304_s4, 0 }
 0x12c   : > { %732 = sbr.rel (%p7314_p2) target bundleno = 3155 (0xc53), region = 108 }
 0x133   : > { %p7315_p7 = scmp.eq.s32.totalorder %s5327_s30, 0 }
 0x135   : > { %5141 = dma.done.wait (%p7315_p7), [#allocation3], 512   ;;  %p7316_p3 = pmov %p7315_p7 }
 0x137   : > { %5143 = vsyncadd (%p7316_p3), [#allocation3], 4294966784  ;;  %p7317_p13 = pmov %p7316_p3 }
 0x138   : > { %p7318_p0 = pmov %p7316_p3 }
 0x139   : > { %5145 = dma.done.wait (%p7317_p13), [#allocation5], 768  }
 0x13a   : > { %5147 = vsyncadd (%p7318_p0), [#allocation5], 4294966528  ;;  %p7319_p1 = pmov %p7318_p0 }
 0x13b   : > { %p7320_p5 = pmov %p7318_p0 }
 0x13c   : > { %5149 = dma.done.wait (%p7319_p1), [#allocation8], 768  }
 0x13d   : > { %5151 = vsyncadd (%p7320_p5), [#allocation8], 4294966528  ;;  %p7321_p4 = pmov %p7318_p0 }
 0x13e   : > { %p7322_p6 = pmov %p7318_p0 }
 0x13f   : > { %5153 = dma.done.wait (%p7321_p4), [#allocation11], 6144  }
 0x140   : > { %5155 = vsyncadd (%p7322_p6), [#allocation11], 4294961152  ;;  %p7323_p8 = pmov %p7318_p0 }
 0x141   : > { %p7324_p9 = pmov %p7318_p0 }
 0x142   : > { %5157 = dma.done.wait (%p7323_p8), [#allocation14], 6144  }
 0x143   : > { %5159 = vsyncadd (%p7324_p9), [#allocation14], 4294961152  ;;  %p7325_p10 = pmov %p7318_p0 }
 0x144   : > { %p7326_p11 = pmov %p7318_p0 }
 0x145   : > { %5161 = dma.done.wait (%p7325_p10), [#allocation17], 6400  }
 0x146   : > { %5163 = vsyncadd (%p7326_p11), [#allocation17], 4294960896  ;;  %p834_p12 = scmp.lt.s32.totalorder %s5327_s30, 1  ;;  %v1042_v0 = vld [vmem:[%s7209_s13 + $0x80] sm:$0xff]  ;;  %v1043_v1 = vld [vmem:[%s7209_s13 + $0x88] sm:$0xff]  ;;  %s7327_s24 = sld [smem:[#allocation45_spill]]  ;;  %v856_v54 = vlaneseq }
 0x147   : > { %v1026_v2 = vld [vmem:[%s7209_s13] sm:$0xff]  ;;  %v5669_v3 = vpack.c.bf16 %v1043_v1, %v1042_v0  ;;  %v1027_v4 = vld [vmem:[%s7209_s13 + $0x8] sm:$0xff]  ;;  %v1044_v5 = vld [vmem:[%s7209_s13 + $0x90] sm:$0xff]  ;;  %s7257_s5 = smov 17   ;;  %s7255_s23 = smov 16   ;;  %vm1217_vm4 = vcmask 130048  }
 0x148   : > { %s7395_s30 = smov (!%p834_p12, %s5327_s30), 1  ;;  %v1045_v6 = vld [vmem:[%s7209_s13 + $0x98] sm:$0xff]  ;;  %v5680_v7 = vpack.c.bf16 %v1027_v4, %v1026_v2  ;;  %v1028_v9 = vld [vmem:[%s7209_s13 + $0x10] sm:$0xff]  ;;  %v1046_v11 = vld [vmem:[%s7209_s13 + $0xa0] sm:$0xff]  ;;  %s7253_s27 = smov 15   ;;  %v5854_v55 = vand.u32 127, %v856_v54 }
 0x149   : > { %v5682_v8 = vpack.c.bf16 %v1045_v6, %v1044_v5  ;;  %v1029_v10 = vld [vmem:[%s7209_s13 + $0x18] sm:$0xff]  ;;  %4033 = vmatprep.subr.bf16.mxu0 %v5669_v3  ;;  %v1047_v12 = vld [vmem:[%s7209_s13 + $0xa8] sm:$0xff]  ;;  %s7236_s22 = sshll.u32 %s7395_s30, 5  ;;  %v1030_v15 = vld [vmem:[%s7209_s13 + $0x20] sm:$0xff]  ;;  %s7259_s7 = smov 1   ;;  %vm1790_vm15 = vcmask 261120  }
 0x14a   : > { %4035 = vmatpush3.bf16.msra.mxu0 %v5680_v7  ;;  %v5698_v13 = vpack.c.bf16 %v1029_v10, %v1028_v9  ;;  %v5702_v14 = vpack.c.bf16 %v1047_v12, %v1046_v11  ;;  %v1031_v16 = vld [vmem:[%s7209_s13 + $0x28] sm:$0xff]  ;;  %v1048_v17 = vld [vmem:[%s7209_s13 + $0xb0] sm:$0xff]  ;;  %v1049_v18 = vld [vmem:[%s7209_s13 + $0xb8] sm:$0xff]  ;;  %vm858_vm0 = vcmp.lt.s32.totalorder %v5854_v55, 17  ;;  %vm871_vm1 = vcmp.lt.s32.totalorder %v5854_v55, 16  ;;  %s7261_s6 = smov 8  }
 0x14b   : > { %4037 = vmatprep.subr.bf16.mxu0 %v5682_v8  ;;  %v5722_v19 = vpack.c.bf16 %v1031_v16, %v1030_v15  ;;  %v5725_v20 = vpack.c.bf16 %v1049_v18, %v1048_v17  ;;  %v1032_v21 = vld [vmem:[%s7209_s13 + $0x30] sm:$0xff]  ;;  %v1033_v22 = vld [vmem:[%s7209_s13 + $0x38] sm:$0xff]  ;;  %v1050_v23 = vld [vmem:[%s7209_s13 + $0xc0] sm:$0xff]  ;;  %vm884_vm2 = vcmp.lt.s32.totalorder %v5854_v55, 15  ;;  %vm897_vm3 = vcmp.lt.s32.totalorder %v5854_v55, 1  ;;  %s7263_s2 = smov 9  }
 0x14c   : > { %s838_s10 = scalar_lea.vmem %s7327_s24, %s7236_s22  ;;  %v1051_v24 = vld [vmem:[%s7209_s13 + $0xc8] sm:$0xff]  ;;  %v5745_v27 = vpack.c.bf16 %v1033_v22, %v1032_v21  ;;  %v1034_v30 = vld [vmem:[%s7209_s13 + $0x40] sm:$0xff]  ;;  %v1052_v32 = vld [vmem:[%s7209_s13 + $0xd0] sm:$0xff]  ;;  %s7247_s12 = smov 127   ;;  %vm910_vm5 = vcmp.lt.s32.totalorder %v5854_v55, 127  ;;  %vm923_vm6 = vcmp.lt.s32.totalorder %v5854_v55, 113 }
 0x14d   : > { %v5739_v25 = vld [vmem:[%s838_s10 + $0x8] sm:$0xff]  ;;  %v5742_v26 = vld [vmem:[%s838_s10 + $0x10] sm:$0xff]  ;;  %v5747_v28 = vld [vmem:[%s838_s10] sm:$0xff]  ;;  %v5752_v29 = vpack.c.bf16 %v1051_v24, %v1050_v23  ;;  %s7249_s24 = smov 7   ;;  %s7245_s4 = smov 121   ;;  %vm936_vm7 = vcmp.lt.s32.totalorder %v5854_v55, 112 }
 0x14e   : > { %4039 = vmatpush3.bf16.msra.mxu0 %v5698_v13  ;;  %1122 = vmatprep.mubr.f32.mxu0 %v5739_v25  ;;  %v1035_v31 = vld [vmem:[%s7209_s13 + $0x48] sm:$0xff]  ;;  %v1053_v33 = vld [vmem:[%s7209_s13 + $0xd8] sm:$0xff]  ;;  %v1036_v37 = vld [vmem:[%s7209_s13 + $0x50] sm:$0xff]  ;;  %s7237_s1 = smov 112   ;;  %s7243_s0 = smov 120   ;;  %vm949_vm8 = vcmp.lt.s32.totalorder %v5854_v55, 111 }
 0x14f   : > { %4041 = vmatprep.subr.bf16.mxu0 %v5702_v14  ;;  %850 = vrot.lane.b32.xlu1 %v5742_v26, %s7257_s5  ;;  %v5768_v34 = vld [vmem:[%s838_s10 + $0x18] sm:$0xff]  ;;  %v5771_v35 = vpack.c.bf16 %v1035_v31, %v1034_v30  ;;  %v5776_v36 = vpack.c.bf16 %v1053_v33, %v1052_v32  ;;  %v1054_v39 = vld [vmem:[%s7209_s13 + $0xe0] sm:$0xff]  ;;  %v1055_v40 = vld [vmem:[%s7209_s13 + $0xe8] sm:$0xff]  ;;  %s7239_s10 = smov 113   ;;  %s7241_s25 = smov 119  }
 0x150   : > { %848 = vrot.lane.b32.xlu0 %v5747_v28, %s7257_s5  ;;  %v1037_v38 = vld [vmem:[%s7209_s13 + $0x58] sm:$0xff]  ;;  %v5798_v42 = vpack.c.bf16 %v1055_v40, %v1054_v39  ;;  %v1038_v43 = vld [vmem:[%s7209_s13 + $0x60] sm:$0xff]  ;;  %v1039_v44 = vld [vmem:[%s7209_s13 + $0x68] sm:$0xff]  ;;  %s7265_s11 = smov 111   ;;  %s7333_s22 = sld [smem:[#allocation47_spill]] }
 0x151   : > { %v5793_v41 = vpack.c.bf16 %v1037_v38, %v1036_v37  ;;  %v1056_v45 = vld [vmem:[%s7209_s13 + $0xf0] sm:$0xff]  ;;  %v1057_v46 = vld [vmem:[%s7209_s13 + $0xf8] sm:$0xff]  ;;  %v5815_v47 = vpack.c.bf16 %v1039_v44, %v1038_v43  ;;  %v955_v56 = vld [vmem:[%s7215_s19 + $0x8] sm:$0xff]  ;;  %s7337_s3 = smov 121   ;;  %s7338_s28 = smov 120  }
 0x152   : > { %4043 = vmatpush3.bf16.msra.mxu0 %v5722_v19  ;;  %7329 = vst [vmem:[#allocation27_spill] sm:$0xff] %v5798_v42  ;;  %v5820_v48 = vpack.c.bf16 %v1057_v46, %v1056_v45  ;;  %v1040_v49 = vld [vmem:[%s7209_s13 + $0x70] sm:$0xff]  ;;  %v1041_v50 = vld [vmem:[%s7209_s13 + $0x78] sm:$0xff]  ;;  %v954_v58 = vld [vmem:[%s7215_s19] sm:$0xff]  ;;  %s7343_s9 = smov 111   ;;  %s7344_s8 = sld [smem:[#allocation53_spill]] }
 0x153   : > { %4045 = vmatprep.subr.bf16.mxu0 %v5725_v20  ;;  %854 = vrot.lane.b32.xlu1 %v5768_v34, %s7257_s5  ;;  %7328 = vst [vmem:[#allocation26_spill] sm:$0xff] %v5793_v41  ;;  %7330 = vst [vmem:[#allocation28_spill] sm:$0xff] %v5815_v47  ;;  %v5831_v51 = vpack.c.bf16 %v1041_v50, %v1040_v49  ;;  %v957_v57 = vld [vmem:[%s7215_s19 + $0x18] sm:$0xff]  ;;  %v956_v59 = vld [vmem:[%s7215_s19 + $0x10] sm:$0xff] }
 0x154   : > { %852 = vrot.lane.b32.xlu0 %v5739_v25, %s7257_s5  ;;  %7331 = vst [vmem:[#allocation29_spill] sm:$0xff] %v5820_v48  ;;  %v960_v15 = vld [vmem:[%s7215_s19 + $0x30] sm:$0xff]  ;;  %v961_v16 = vld [vmem:[%s7215_s19 + $0x38] sm:$0xff]  ;;  %v958_v17 = vld [vmem:[%s7215_s19 + $0x20] sm:$0xff] }
 0x155   : > { %7332 = vst [vmem:[#allocation30_spill] sm:$0xff] %v5831_v51  ;;  %v959_v18 = vld [vmem:[%s7215_s19 + $0x28] sm:$0xff]  ;;  %v964_v45 = vld [vmem:[%s7215_s19 + $0x50] sm:$0xff]  ;;  %v965_v46 = vld [vmem:[%s7215_s19 + $0x58] sm:$0xff] }
 0x156   : > { %4047 = vmatpush3.bf16.msra.mxu0 %v5745_v27  ;;  %v962_v49 = vld [vmem:[%s7215_s19 + $0x40] sm:$0xff]  ;;  %v963_v50 = vld [vmem:[%s7215_s19 + $0x48] sm:$0xff] }
 0x157   : > { %4049 = vmatprep.subr.bf16.mxu0 %v5752_v29  ;;  %865 = vrot.lane.b32.xlu1 %v5742_v26, %s7255_s23 }
 0x158   : > { %863 = vrot.lane.b32.xlu0 %v5747_v28, %s7255_s23 }
 0x15a   : > { %4051 = vmatpush3.bf16.msra.mxu0 %v5771_v35 }
 0x15b   : > { %4053 = vmatprep.subr.bf16.mxu0 %v5776_v36  ;;  %869 = vrot.lane.b32.xlu1 %v5768_v34, %s7255_s23 }
 0x15c   : > { %867 = vrot.lane.b32.xlu0 %v5739_v25, %s7255_s23 }
 0x15e   : > { %4055 = vmatpush3.bf16.msra.mxu0 %v5793_v41 }
 0x15f   : > { %4057 = vmatprep.subr.bf16.mxu0 %v5798_v42  ;;  %878 = vrot.lane.b32.xlu1 %v5742_v26, %s7253_s27 }
 0x160   : > { %876 = vrot.lane.b32.xlu0 %v5747_v28, %s7253_s27 }
 0x162   : > { %4059 = vmatpush3.bf16.msra.mxu0 %v5815_v47 }
 0x163   : > { %4061 = vmatprep.subr.bf16.mxu0 %v5820_v48  ;;  %882 = vrot.lane.b32.xlu1 %v5768_v34, %s7253_s27 }
 0x164   : > { %880 = vrot.lane.b32.xlu0 %v5739_v25, %s7253_s27 }
 0x166   : > { %4063 = vmatpush3.bf16.msra.mxu0 %v5831_v51 }
 0x167   : > { %891 = vrot.lane.b32.xlu1 %v5742_v26, %s7259_s7 }
 0x168   : > { %889 = vrot.lane.b32.xlu0 %v5747_v28, %s7259_s7 }
 0x169   : > { %1123 = vmatmul.mubr.f32.vlgmr.msra.gmra.mrb[0].mxu0 %v5747_v28 }
 0x16a   : > { %1127 = vmatprep.mubr.f32.mxu0 %v5768_v34 }
 0x16b   : > { %895 = vrot.lane.b32.xlu1 %v5768_v34, %s7259_s7 }
 0x16c   : > { %893 = vrot.lane.b32.xlu0 %v5739_v25, %s7259_s7 }
 0x16d   : > { %1128 = vmatmul.mubr.f32.gmra.mrb[2].mxu0 %v5742_v26 }
 0x1c1   : > { %v851_v52 = vpop.permute.xlu1 %850 }
 0x1c2   : > { %v849_v53 = vpop.permute.xlu0 %848 }
 0x1c5   : > { %v855_v60 = vpop.permute.xlu1 %854 }
 0x1c6   : > { %v853_v61 = vpop.permute.xlu0 %852  ;;  %v862_v62 = vsel %vm858_vm0, %v855_v60, %v851_v52  ;;  %v860_v1 = vsel %vm858_vm0, %v851_v52, %v855_v60 }
 0x1c7   : > { %v861_v63 = vsel %vm858_vm0, %v853_v61, %v849_v53  ;;  %v859_v0 = vsel %vm858_vm0, %v849_v53, %v853_v61  ;;  %v993_v4 = vmul.f32 %v957_v57, %v860_v1  ;;  %v992_v6 = vmul.f32 %v956_v59, %v862_v62 }
 0x1c8   : > { %v991_v2 = vmul.f32 %v955_v56, %v859_v0  ;;  %v990_v5 = vmul.f32 %v954_v58, %v861_v63 }
 0x1c9   : > { %v866_v9 = vpop.permute.xlu1 %865 }
 0x1ca   : > { %v864_v10 = vpop.permute.xlu0 %863  ;;  %v4064_v11 = vpack.c.bf16 %v993_v4, %v991_v2  ;;  %v4066_v12 = vpack.c.bf16 %v992_v6, %v990_v5  ;;  %v968_v4 = vld [vmem:[%s7215_s19 + $0x70] sm:$0xff]  ;;  %v969_v5 = vld [vmem:[%s7215_s19 + $0x78] sm:$0xff]  ;;  %v966_v6 = vld [vmem:[%s7215_s19 + $0x60] sm:$0xff] }
 0x1cc   : > { %4065 = vmatprep.subr.bf16.mxu1 %v4064_v11 }
 0x1cd   : > { %4067 = vmatpush1.bf16.msra.mxu1 %v4066_v12  ;;  %v870_v21 = vpop.permute.xlu1 %869 }
 0x1ce   : > { %v868_v22 = vpop.permute.xlu0 %867  ;;  %v873_v23 = vsel %vm871_vm1, %v866_v9, %v870_v21  ;;  %v875_v24 = vsel %vm871_vm1, %v870_v21, %v866_v9  ;;  %v967_v9 = vld [vmem:[%s7215_s19 + $0x68] sm:$0xff] }
 0x1cf   : > { %v872_v30 = vsel %vm871_vm1, %v864_v10, %v868_v22  ;;  %v874_v31 = vsel %vm871_vm1, %v868_v22, %v864_v10  ;;  %v996_v32 = vmul.f32 %v960_v15, %v875_v24  ;;  %v997_v33 = vmul.f32 %v961_v16, %v873_v23 }
 0x1d0   : > { %v994_v37 = vmul.f32 %v958_v17, %v874_v31  ;;  %v995_v38 = vmul.f32 %v959_v18, %v872_v30 }
 0x1d1   : > { %v879_v39 = vpop.permute.xlu1 %878 }
 0x1d2   : > { %v877_v40 = vpop.permute.xlu0 %876  ;;  %v4068_v43 = vpack.c.bf16 %v997_v33, %v995_v38  ;;  %v4070_v44 = vpack.c.bf16 %v996_v32, %v994_v37 }
 0x1d4   : > { %4069 = vmatprep.subr.bf16.mxu1 %v4068_v43 }
 0x1d5   : > { %4071 = vmatpush1.bf16.msra.mxu1 %v4070_v44  ;;  %v883_v52 = vpop.permute.xlu1 %882 }
 0x1d6   : > { %v881_v53 = vpop.permute.xlu0 %880  ;;  %v886_v54 = vsel %vm884_vm2, %v879_v39, %v883_v52  ;;  %v888_v56 = vsel %vm884_vm2, %v883_v52, %v879_v39  ;;  %v1173_v39 = vld [vmem:[%s7216_s20 + $0x40] sm:$0xff]  ;;  %v973_v52 = vld [vmem:[%s7215_s19 + $0x98] sm:$0xff] }
 0x1d7   : > { %v885_v57 = vsel %vm884_vm2, %v877_v40, %v881_v53  ;;  %v887_v58 = vsel %vm884_vm2, %v881_v53, %v877_v40  ;;  %v1000_v59 = vmul.f32 %v964_v45, %v888_v56  ;;  %v1001_v60 = vmul.f32 %v965_v46, %v886_v54  ;;  %v1174_v40 = vld [vmem:[%s7216_s20 + $0x48] sm:$0xff]  ;;  %v970_v56 = vld [vmem:[%s7215_s19 + $0x80] sm:$0xff] }
 0x1d8   : > { %v998_v61 = vmul.f32 %v962_v49, %v887_v58  ;;  %v999_v62 = vmul.f32 %v963_v50, %v885_v57  ;;  %v7251_v49 = vmov 0.0|0.0   ;;  %v971_v50 = vld [vmem:[%s7215_s19 + $0x88] sm:$0xff]  ;;  %v1009_v54 = vmul.f32 %v973_v52, %v5768_v34  ;;  %v972_v57 = vld [vmem:[%s7215_s19 + $0x90] sm:$0xff] }
 0x1d9   : > { %v892_v63 = vpop.permute.xlu1 %891  ;;  %4100 = vmatprep.subr.bf16.mxu0 %v7251_v49  ;;  %v1007_v53 = vmul.f32 %v971_v50, %v5739_v25  ;;  %v1006_v58 = vmul.f32 %v970_v56, %v5747_v28  ;;  %v975_v56 = vld [vmem:[%s7215_s19 + $0xa8] sm:$0xff] }
 0x1da   : > { %v890_v0 = vpop.permute.xlu0 %889  ;;  %v4072_v1 = vpack.c.bf16 %v1001_v60, %v999_v62  ;;  %v4074_v2 = vpack.c.bf16 %v1000_v59, %v998_v61  ;;  %v1008_v59 = vmul.f32 %v972_v57, %v5742_v26  ;;  %v1202_v62 = vld [vmem:[#allocation2 + $0x8] sm:$0xff] }
 0x1db   : > { %v4080_v60 = vpack.c.bf16 %v1009_v54, %v1007_v53  ;;  %3727 = vmatprep.mubr.msk.f32.mxu0 %vm1217_vm4, %v1202_v62  ;;  %3725 = vmatprep.mubr.msk.f32.mxu1 %vm1217_vm4, %v1202_v62  ;;  %v974_v54 = vld [vmem:[%s7215_s19 + $0xa0] sm:$0xff] }
 0x1dc   : > { %4073 = vmatprep.subr.bf16.mxu1 %v4072_v1  ;;  %v4082_v61 = vpack.c.bf16 %v1008_v59, %v1006_v58 }
 0x1dd   : > { %4075 = vmatpush1.bf16.msra.mxu1 %v4074_v2  ;;  %v896_v10 = vpop.permute.xlu1 %895 }
 0x1de   : > { %v894_v11 = vpop.permute.xlu0 %893  ;;  %v899_v12 = vsel %vm897_vm3, %v892_v63, %v896_v10  ;;  %v901_v15 = vsel %vm897_vm3, %v896_v10, %v892_v63  ;;  %v5198_v63 = vmov 0  }
 0x1df   : > { %v898_v16 = vsel %vm897_vm3, %v890_v0, %v894_v11  ;;  %v900_v17 = vsel %vm897_vm3, %v894_v11, %v890_v0  ;;  %v1004_v18 = vmul.f32 %v968_v4, %v901_v15  ;;  %v1005_v21 = vmul.f32 %v969_v5, %v899_v12  ;;  %4744 = vset.pattern.permute.xlu0 %v5198_v63  ;;  %v1205_v0 = vld [vmem:[%s7333_s22] sm:$0xff] }
 0x1e0   : > { %v1002_v22 = vmul.f32 %v966_v6, %v900_v17  ;;  %v1003_v23 = vmul.f32 %v967_v9, %v898_v16  ;;  %4745 = vset.pattern.permute.xlu1 %v5198_v63  ;;  %v1165_v15 = vld [vmem:[%s7216_s20] sm:$0xff]  ;;  %v1166_v16 = vld [vmem:[%s7216_s20 + $0x8] sm:$0xff] }
 0x1e2   : > { %v4076_v24 = vpack.c.bf16 %v1005_v21, %v1003_v23  ;;  %v4078_v30 = vpack.c.bf16 %v1004_v18, %v1002_v22  ;;  %v1167_v23 = vld [vmem:[%s7216_s20 + $0x10] sm:$0xff] }
 0x1e4   : > { %4077 = vmatprep.subr.bf16.mxu1 %v4076_v24  ;;  %v1168_v24 = vld [vmem:[%s7216_s20 + $0x18] sm:$0xff] }
 0x1e5   : > { %4079 = vmatpush1.bf16.msra.mxu1 %v4078_v30 }
 0x1e6   : > { %4081 = vmatprep.subr.bf16.mxu1 %v4080_v60 }
 0x1e9   : > { %4083 = vmatpush1.bf16.msra.mxu1 %v4082_v61 }
 0x23c   : > { %v3783_v31 = vpop.f32.mrb[0].mxu0 }
 0x23d   : > { %v3784_v32 = vpop.f32.mrb[1].mxu0 }
 0x23e   : > { %v3785_v33 = vadd.f32 %v3784_v32, %v3783_v31 }
 0x240   : > { %v3786_v37 = vpop.f32.mrb[2].mxu0  ;;  %1137 = vrot.lane.b32.xlu1 %v3785_v33, %s7261_s6  ;;  %1133 = vrot.lane.b32.xlu0 %v3785_v33, %s7263_s2  ;;  %v5951_v44 = vmul.f32 %v3785_v33, %v1173_v39  ;;  %v976_v39 = vld [vmem:[%s7215_s19 + $0xb0] sm:$0xff] }
 0x241   : > { %v3787_v38 = vpop.f32.mrb[3].mxu0 }
 0x242   : > { %v3788_v43 = vadd.f32 %v3787_v38, %v3786_v37  ;;  %v1169_v38 = vld [vmem:[%s7216_s20 + $0x20] sm:$0xff] }
 0x244   : > { %904 = vrot.lane.b32.xlu1 %v5742_v26, %s7247_s12  ;;  %1141 = vrot.lane.b32.xlu0 %v3785_v33, %s7249_s24  ;;  %v5953_v45 = vmul.f32 %v3788_v43, %v1174_v40  ;;  %v1170_v40 = vld [vmem:[%s7216_s20 + $0x28] sm:$0xff] }
 0x246   : > { %v4113_v46 = vpack.c.bf16 %v5953_v45, %v5951_v44 }
 0x248   : > { %908 = vrot.lane.b32.xlu1 %v5768_v34, %s7247_s12  ;;  %1145 = vrot.lane.b32.xlu0 %v3785_v33, %s7259_s7 }
 0x24c   : > { %917 = vrot.lane.b32.xlu1 %v5742_v26, %s7239_s10  ;;  %1149 = vrot.lane.b32.xlu0 %v3785_v33, %s7247_s12 }
 0x250   : > { %921 = vrot.lane.b32.xlu1 %v5768_v34, %s7239_s10  ;;  %1153 = vrot.lane.b32.xlu0 %v3785_v33, %s7245_s4 }
 0x254   : > { %930 = vrot.lane.b32.xlu1 %v5742_v26, %s7237_s1  ;;  %1135 = vrot.lane.b32.xlu0 %v3788_v43, %s7263_s2 }
 0x258   : > { %1139 = vrot.lane.b32.xlu1 %v3788_v43, %s7261_s6  ;;  %902 = vrot.lane.b32.xlu0 %v5747_v28, %s7247_s12 }
 0x25c   : > { %1143 = vrot.lane.b32.xlu1 %v3788_v43, %s7249_s24  ;;  %906 = vrot.lane.b32.xlu0 %v5739_v25, %s7247_s12  ;;  %s5202_s24 = smov 3  }
 0x260   : > { %1147 = vrot.lane.b32.xlu1 %v3788_v43, %s7259_s7  ;;  %1157 = vrot.lane.b32.xlu0 %v3785_v33, %s7243_s0 }
 0x264   : > { %934 = vrot.lane.b32.xlu1 %v5768_v34, %s7237_s1  ;;  %915 = vrot.lane.b32.xlu0 %v5747_v28, %s7239_s10 }
 0x268   : > { %1151 = vrot.lane.b32.xlu1 %v3788_v43, %s7247_s12  ;;  %919 = vrot.lane.b32.xlu0 %v5739_v25, %s7239_s10  ;;  %s7339_s10 = smov 119   ;;  %s5201_s12 = smov 4  }
 0x26c   : > { %1155 = vrot.lane.b32.xlu1 %v3788_v43, %s7245_s4  ;;  %1161 = vrot.lane.b32.xlu0 %v3785_v33, %s7241_s25  ;;  %s7334_s4 = sld [smem:[#allocation49_spill]] }
 0x270   : > { %1159 = vrot.lane.b32.xlu1 %v3788_v43, %s7243_s0  ;;  %928 = vrot.lane.b32.xlu0 %v5747_v28, %s7237_s1  ;;  %s7335_s0 = smov 7  }
 0x274   : > { %1163 = vrot.lane.b32.xlu1 %v3788_v43, %s7241_s25  ;;  %932 = vrot.lane.b32.xlu0 %v5739_v25, %s7237_s1  ;;  %v977_v43 = vld [vmem:[%s7215_s19 + $0xb8] sm:$0xff]  ;;  %s7336_s25 = smov 127   ;;  %s5200_s1 = smov 5  }
 0x278   : > { %943 = vrot.lane.b32.xlu1 %v5742_v26, %s7265_s11  ;;  %941 = vrot.lane.b32.xlu0 %v5747_v28, %s7265_s11  ;;  %v1206_v26 = vld [vmem:[%s7333_s22 + $0x8] sm:$0xff] }
 0x279   : > { %v1779_v28 = vld [vmem:[%s7334_s4 + $0x8] sm:$0xff] }
 0x27c   : > { %947 = vrot.lane.b32.xlu1 %v5768_v34, %s7265_s11  ;;  %945 = vrot.lane.b32.xlu0 %v5739_v25, %s7265_s11  ;;  %v1778_v25 = vld [vmem:[%s7334_s4] sm:$0xff] }
 0x280   : > { %1209 = vperm.xlu0 %4744, %v1205_v0   ;;  %1214 = vperm.xlu1 %4745, %v1206_v26   ;;  %v1171_v26 = vld [vmem:[%s7216_s20 + $0x30] sm:$0xff] }
 0x284   : > { %1787 = vperm.xlu0 %4744, %v1779_v28   ;;  %1782 = vperm.xlu1 %4745, %v1778_v25  }
 0x2b2   : > { %v1138_v34 = vpop.permute.xlu1 %1137  ;;  %v1134_v1 = vpop.permute.xlu0 %1133 }
 0x2b3   : > { %v1183_v21 = vmul.f32 %v1165_v15, %v1134_v1  ;;  %v1185_v33 = vmul.f32 %v1167_v23, %v1138_v34  ;;  %v1172_v34 = vld [vmem:[%s7216_s20 + $0x38] sm:$0xff] }
 0x2b6   : > { %v905_v2 = vpop.permute.xlu1 %904  ;;  %v1142_v4 = vpop.permute.xlu0 %1141 }
 0x2b7   : > { %v1187_v59 = vmul.f32 %v1169_v38, %v1142_v4  ;;  %v979_v38 = vld [vmem:[%s7215_s19 + $0xc8] sm:$0xff] }
 0x2ba   : > { %v909_v5 = vpop.permute.xlu1 %908  ;;  %v1146_v6 = vpop.permute.xlu0 %1145 }
 0x2bb   : > { %v912_v50 = vsel %vm910_vm5, %v905_v2, %v909_v5  ;;  %v914_v52 = vsel %vm910_vm5, %v909_v5, %v905_v2 }
 0x2bc   : > { %v1012_v63 = vmul.f32 %v976_v39, %v912_v50  ;;  %v1013_v0 = vmul.f32 %v977_v43, %v914_v52 }
 0x2be   : > { %v6031_v9 = vpop.permute.xlu1 %917  ;;  %v6033_v10 = vpop.permute.xlu0 %1149 }
 0x2c2   : > { %v6035_v11 = vpop.permute.xlu1 %921  ;;  %v6037_v12 = vpop.permute.xlu0 %1153 }
 0x2c6   : > { %v6045_v17 = vpop.permute.xlu1 %930  ;;  %v1136_v18 = vpop.permute.xlu0 %1135 }
 0x2c7   : > { %v1184_v22 = vmul.f32 %v1166_v16, %v1136_v18  ;;  %v1189_v16 = vmul.f32 %v1171_v26, %v1146_v6  ;;  %v980_v6 = vld [vmem:[%s7215_s19 + $0xd0] sm:$0xff] }
 0x2c9   : > { %v4101_v30 = vpack.c.bf16 %v1184_v22, %v1183_v21 }
 0x2ca   : > { %v1140_v31 = vpop.permute.xlu1 %1139  ;;  %v903_v32 = vpop.permute.xlu0 %902 }
 0x2cb   : > { %v1186_v37 = vmul.f32 %v1168_v24, %v1140_v31  ;;  %4102 = vmatpush1.bf16.msra.mxu0 %v4101_v30  ;;  %v1175_v24 = vld [vmem:[%s7216_s20 + $0x50] sm:$0xff]  ;;  %v1176_v30 = vld [vmem:[%s7216_s20 + $0x58] sm:$0xff] }
 0x2cc   : > { %4103 = vmatprep.subr.bf16.mxu0 %v7251_v49  ;;  %v981_v31 = vld [vmem:[%s7215_s19 + $0xd8] sm:$0xff]  ;;  %v1193_v43 = vmul.f32 %v1175_v24, %v6033_v10  ;;  %v1178_v10 = vld [vmem:[%s7216_s20 + $0x68] sm:$0xff] }
 0x2cd   : > { %v4104_v53 = vpack.c.bf16 %v1186_v37, %v1185_v33  ;;  %v927_v33 = vsel %vm923_vm6, %v6035_v11, %v6031_v9  ;;  %v978_v37 = vld [vmem:[%s7215_s19 + $0xc0] sm:$0xff] }
 0x2ce   : > { %v1144_v57 = vpop.permute.xlu1 %1143  ;;  %v907_v58 = vpop.permute.xlu0 %906 }
 0x2cf   : > { %v1188_v60 = vmul.f32 %v1170_v40, %v1144_v57  ;;  %v911_v61 = vsel %vm910_vm5, %v903_v32, %v907_v58  ;;  %v913_v62 = vsel %vm910_vm5, %v907_v58, %v903_v32  ;;  %4105 = vmatpush1.bf16.msra.mxu0 %v4104_v53  ;;  %v925_v32 = vsel %vm923_vm6, %v6031_v9, %v6035_v11 }
 0x2d0   : > { %v1010_v28 = vmul.f32 %v974_v54, %v911_v61  ;;  %v1011_v25 = vmul.f32 %v975_v56, %v913_v62  ;;  %4106 = vmatprep.subr.bf16.mxu0 %v7251_v49  ;;  %v1016_v9 = vmul.f32 %v980_v6, %v925_v32  ;;  %v1017_v11 = vmul.f32 %v981_v31, %v927_v33  ;;  %v1177_v54 = vld [vmem:[%s7216_s20 + $0x60] sm:$0xff]  ;;  %v1179_v62 = vld [vmem:[%s7216_s20 + $0x70] sm:$0xff] }
 0x2d1   : > { %v4107_v1 = vpack.c.bf16 %v1188_v60, %v1187_v59  ;;  %v1195_v45 = vmul.f32 %v1177_v54, %v6037_v12  ;;  %v986_v54 = vld [vmem:[%s7215_s19 + $0x100] sm:$0xff] }
 0x2d2   : > { %v1148_v2 = vpop.permute.xlu1 %1147  ;;  %v1158_v4 = vpop.permute.xlu0 %1157  ;;  %v4084_v5 = vpack.c.bf16 %v1013_v0, %v1011_v25  ;;  %v4086_v15 = vpack.c.bf16 %v1012_v63, %v1010_v28  ;;  %v1180_v63 = vld [vmem:[%s7216_s20 + $0x78] sm:$0xff] }
 0x2d3   : > { %v1190_v18 = vmul.f32 %v1172_v34, %v1148_v2  ;;  %4108 = vmatpush1.bf16.msra.mxu0 %v4107_v1  ;;  %v1197_v12 = vmul.f32 %v1179_v62, %v1158_v4  ;;  %v984_v34 = vld [vmem:[%s7215_s19 + $0xf0] sm:$0xff]  ;;  %v1181_v1 = vld [vmem:[%s7216_s20 + $0x80] sm:$0xff]  ;;  %v1182_v2 = vld [vmem:[%s7216_s20 + $0x88] sm:$0xff] }
 0x2d4   : > { %4085 = vmatprep.subr.bf16.mxu1 %v4084_v5  ;;  %4109 = vmatprep.subr.bf16.mxu0 %v7251_v49  ;;  %v985_v4 = vld [vmem:[%s7215_s19 + $0xf8] sm:$0xff] }
 0x2d5   : > { %v4110_v21 = vpack.c.bf16 %v1190_v18, %v1189_v16  ;;  %4087 = vmatpush1.bf16.msra.mxu1 %v4086_v15  ;;  %v982_v18 = vld [vmem:[%s7215_s19 + $0xe0] sm:$0xff] }
 0x2d6   : > { %v935_v22 = vpop.permute.xlu1 %934  ;;  %v916_v23 = vpop.permute.xlu0 %915 }
 0x2d7   : > { %4111 = vmatpush1.bf16.msra.mxu0 %v4110_v21  ;;  %v938_v5 = vsel %vm936_vm7, %v6045_v17, %v935_v22  ;;  %v940_v15 = vsel %vm936_vm7, %v935_v22, %v6045_v17  ;;  %v983_v21 = vld [vmem:[%s7215_s19 + $0xe8] sm:$0xff] }
 0x2d8   : > { %4112 = vmatprep.subr.bf16.mxu0 %v7251_v49  ;;  %v1020_v17 = vmul.f32 %v984_v34, %v938_v5  ;;  %v1021_v22 = vmul.f32 %v985_v4, %v940_v15  ;;  %v1394_v34 = vld [vmem:[#allocation13] sm:$0xff]  ;;  %v1401_v4 = vld [vmem:[#allocation13 + $0x38] sm:$0xff] }
 0x2da   : > { %v1152_v39 = vpop.permute.xlu1 %1151  ;;  %v920_v40 = vpop.permute.xlu0 %919 }
 0x2db   : > { %v1194_v50 = vmul.f32 %v1176_v30, %v1152_v39  ;;  %v924_v52 = vsel %vm923_vm6, %v916_v23, %v920_v40  ;;  %v926_v53 = vsel %vm923_vm6, %v920_v40, %v916_v23  ;;  %4114 = vmatpush1.bf16.msra.mxu0 %v4113_v46 }
 0x2dc   : > { %v1014_v56 = vmul.f32 %v978_v37, %v924_v52  ;;  %v1015_v57 = vmul.f32 %v979_v38, %v926_v53  ;;  %4115 = vmatprep.subr.bf16.mxu0 %v7251_v49  ;;  %v1201_v52 = vld [vmem:[#allocation2] sm:$0xff]  ;;  %v988_v53 = vld [vmem:[%s7215_s19 + $0x110] sm:$0xff] }
 0x2dd   : > { %v4116_v58 = vpack.c.bf16 %v1194_v50, %v1193_v43 }
 0x2de   : > { %v1156_v59 = vpop.permute.xlu1 %1155  ;;  %v1162_v60 = vpop.permute.xlu0 %1161  ;;  %v4088_v61 = vpack.c.bf16 %v1017_v11, %v1015_v57  ;;  %v4090_v44 = vpack.c.bf16 %v1016_v9, %v1014_v56  ;;  %v1204_v9 = vld [vmem:[#allocation2 + $0x18] sm:$0xff]  ;;  %v987_v56 = vld [vmem:[%s7215_s19 + $0x108] sm:$0xff] }
 0x2df   : > { %v1196_v46 = vmul.f32 %v1178_v10, %v1156_v59  ;;  %4117 = vmatpush1.bf16.msra.mxu0 %v4116_v58  ;;  %v1199_v6 = vmul.f32 %v1181_v1, %v1162_v60  ;;  %v989_v11 = vld [vmem:[%s7215_s19 + $0x118] sm:$0xff]  ;;  %v1396_v1 = vld [vmem:[#allocation13 + $0x10] sm:$0xff] }
 0x2e0   : > { %4089 = vmatprep.subr.bf16.mxu1 %v4088_v61  ;;  %4118 = vmatprep.subr.bf16.mxu0 %v7251_v49  ;;  %v6199_v5 = vpack.c.bf16 %v1396_v1, %v1394_v34  ;;  %v1594_v34 = vld [vmem:[#allocation12 + $0x80] sm:$0xff]  ;;  %v1595_v1 = vld [vmem:[#allocation12 + $0x88] sm:$0xff] }
 0x2e1   : > { %v4119_v0 = vpack.c.bf16 %v1196_v46, %v1195_v45  ;;  %4091 = vmatpush1.bf16.msra.mxu1 %v4090_v44  ;;  %v1203_v44 = vld [vmem:[#allocation2 + $0x10] sm:$0xff]  ;;  %v1395_v45 = vld [vmem:[#allocation13 + $0x8] sm:$0xff]  ;;  %v1397_v46 = vld [vmem:[#allocation13 + $0x18] sm:$0xff] }
 0x2e2   : > { %v1160_v26 = vpop.permute.xlu1 %1159  ;;  %v929_v28 = vpop.permute.xlu0 %928 }
 0x2e3   : > { %v1198_v25 = vmul.f32 %v1180_v63, %v1160_v26  ;;  %4120 = vmatpush1.bf16.msra.mxu0 %v4119_v0 }
 0x2e4   : > { %4121 = vmatprep.subr.bf16.mxu0 %v7251_v49 }
 0x2e5   : > { %v4122_v16 = vpack.c.bf16 %v1198_v25, %v1197_v12  ;;  %v6196_v25 = vpack.c.bf16 %v1397_v46, %v1395_v45  ;;  %v1420_v45 = vld [vmem:[#allocation13 + $0xd0] sm:$0xff] }
 0x2e6   : > { %v1164_v23 = vpop.permute.xlu1 %1163  ;;  %v933_v24 = vpop.permute.xlu0 %932 }
 0x2e7   : > { %v1200_v30 = vmul.f32 %v1182_v2, %v1164_v23  ;;  %v937_v31 = vsel %vm936_vm7, %v929_v28, %v933_v24  ;;  %v939_v32 = vsel %vm936_vm7, %v933_v24, %v929_v28  ;;  %4123 = vmatpush1.bf16.msra.mxu0 %v4122_v16  ;;  %v1399_v2 = vld [vmem:[#allocation13 + $0x28] sm:$0xff]  ;;  %v1398_v16 = vld [vmem:[#allocation13 + $0x20] sm:$0xff]  ;;  %v1405_v23 = vld [vmem:[#allocation13 + $0x58] sm:$0xff] }
 0x2e8   : > { %v1018_v33 = vmul.f32 %v982_v18, %v937_v31  ;;  %v1019_v37 = vmul.f32 %v983_v21, %v939_v32  ;;  %4124 = vmatprep.subr.bf16.mxu0 %v7251_v49  ;;  %v6203_v15 = vpack.c.bf16 %v1401_v4, %v1399_v2  ;;  %v1400_v18 = vld [vmem:[#allocation13 + $0x30] sm:$0xff]  ;;  %v1403_v21 = vld [vmem:[#allocation13 + $0x48] sm:$0xff]  ;;  %v4191_v2 = vpack.c.bf16 %v1595_v1, %v1594_v34  ;;  %v1582_v34 = vld [vmem:[#allocation12 + $0x20] sm:$0xff] }
 0x2e9   : > { %v4125_v38 = vpack.c.bf16 %v1200_v30, %v1199_v6  ;;  %v6208_v24 = vpack.c.bf16 %v1400_v18, %v1398_v16  ;;  %v6211_v6 = vpack.c.bf16 %v1405_v23, %v1403_v21  ;;  %v1402_v30 = vld [vmem:[#allocation13 + $0x40] sm:$0xff]  ;;  %v1404_v31 = vld [vmem:[#allocation13 + $0x50] sm:$0xff]  ;;  %v1407_v32 = vld [vmem:[#allocation13 + $0x68] sm:$0xff]  ;;  %v7268_v4 = vmov 0.0  }
 0x2ea   : > { %v944_v39 = vpop.permute.xlu1 %943  ;;  %v942_v40 = vpop.permute.xlu0 %941  ;;  %v4092_v43 = vpack.c.bf16 %v1021_v22, %v1019_v37  ;;  %v4094_v50 = vpack.c.bf16 %v1020_v17, %v1018_v33  ;;  %v1409_v17 = vld [vmem:[#allocation13 + $0x78] sm:$0xff]  ;;  %v6216_v22 = vpack.c.bf16 %v1404_v31, %v1402_v30  ;;  %v1406_v37 = vld [vmem:[#allocation13 + $0x60] sm:$0xff]  ;;  %v1686_v18 = vld [vmem:[#allocation10 + $0x8] sm:$0xff] }
 0x2eb   : > { %4126 = vmatpush1.bf16.msra.mxu0 %v4125_v38  ;;  %v6220_v33 = vpack.c.bf16 %v1409_v17, %v1407_v32  ;;  %v1408_v38 = vld [vmem:[#allocation13 + $0x70] sm:$0xff]  ;;  %v1685_v16 = vld [vmem:[#allocation10] sm:$0xff]  ;;  %v1579_v32 = vld [vmem:[#allocation12 + $0x8] sm:$0xff] }
 0x2ec   : > { %4093 = vmatprep.subr.bf16.mxu1 %v4092_v43  ;;  %4160 = vmatprep.subr.bf16.mxu0 %v5669_v3  ;;  %v6224_v43 = vpack.c.bf16 %v1408_v38, %v1406_v37  ;;  %v6259_v21 = vpack.c.bf16 %v1686_v18, %v1685_v16  ;;  %v1578_v31 = vld [vmem:[#allocation12] sm:$0xff]  ;;  %v1596_v38 = vld [vmem:[#allocation12 + $0x90] sm:$0xff]  ;;  %v1583_v1 = vld [vmem:[#allocation12 + $0x28] sm:$0xff] }
 0x2ed   : > { %4095 = vmatpush1.bf16.msra.mxu1 %v4094_v50  ;;  %v1600_v16 = vld [vmem:[#allocation12 + $0xb0] sm:$0xff]  ;;  %v1601_v18 = vld [vmem:[#allocation12 + $0xb8] sm:$0xff] }
 0x2ee   : > { %v948_v57 = vpop.permute.xlu1 %947  ;;  %v946_v10 = vpop.permute.xlu0 %945  ;;  %1366 = vmatmul.mubr.f32.vlgmr.msra.gmra.mrb[4].mxu0 %v1201_v52 }
 0x2ef   : > { %v951_v58 = vsel %vm949_vm8, %v944_v39, %v948_v57  ;;  %v953_v59 = vsel %vm949_vm8, %v948_v57, %v944_v39  ;;  %v950_v60 = vsel %vm949_vm8, %v942_v40, %v946_v10  ;;  %v952_v61 = vsel %vm949_vm8, %v946_v10, %v942_v40  ;;  %3728 = vmatprep.mubr.msk.f32.mxu0 %vm1217_vm4, %v1204_v9  ;;  %v1411_v39 = vld [vmem:[#allocation13 + $0x88] sm:$0xff]  ;;  %v1413_v40 = vld [vmem:[#allocation13 + $0x98] sm:$0xff]  ;;  %v1414_v57 = vld [vmem:[#allocation13 + $0xa0] sm:$0xff] }
 0x2f0   : > { %v1024_v62 = vmul.f32 %v988_v53, %v951_v58  ;;  %v1025_v63 = vmul.f32 %v989_v11, %v953_v59  ;;  %v1022_v0 = vmul.f32 %v986_v54, %v950_v60  ;;  %v1023_v26 = vmul.f32 %v987_v56, %v952_v61  ;;  %4162 = vmatpush3.bf16.msra.mxu0 %v5680_v7  ;;  %v1412_v53 = vld [vmem:[#allocation13 + $0x90] sm:$0xff]  ;;  %v1417_v11 = vld [vmem:[#allocation13 + $0xb8] sm:$0xff]  ;;  %v1419_v58 = vld [vmem:[#allocation13 + $0xc8] sm:$0xff] }
 0x2f1   : > { %4164 = vmatprep.subr.bf16.mxu0 %v5682_v8  ;;  %v6228_v50 = vpack.c.bf16 %v1413_v40, %v1411_v39  ;;  %v1416_v10 = vld [vmem:[#allocation13 + $0xb0] sm:$0xff]  ;;  %v1421_v59 = vld [vmem:[#allocation13 + $0xd8] sm:$0xff] }
 0x2f2   : > { %1371 = vmatmul.mubr.f32.gmra.mrb[6].mxu0 %v1203_v44  ;;  %v4096_v28 = vpack.c.bf16 %v1025_v63, %v1023_v26  ;;  %v4098_v12 = vpack.c.bf16 %v1024_v62, %v1022_v0  ;;  %v6240_v60 = vpack.c.bf16 %v1416_v10, %v1414_v57  ;;  %v6244_v61 = vpack.c.bf16 %v1421_v59, %v1419_v58  ;;  %v1423_v62 = vld [vmem:[#allocation13 + $0xe8] sm:$0xff]  ;;  %v1425_v63 = vld [vmem:[#allocation13 + $0xf8] sm:$0xff]  ;;  %v1422_v26 = vld [vmem:[#allocation13 + $0xe0] sm:$0xff] }
 0x2f3   : > { %v6252_v0 = vpack.c.bf16 %v1425_v63, %v1423_v62  ;;  %v1597_v39 = vld [vmem:[#allocation12 + $0x98] sm:$0xff]  ;;  %v1580_v57 = vld [vmem:[#allocation12 + $0x10] sm:$0xff]  ;;  %v1599_v62 = vld [vmem:[#allocation12 + $0xa8] sm:$0xff] }
 0x2f4   : > { %4097 = vmatprep.subr.bf16.mxu1 %v4096_v28  ;;  %4166 = vmatpush3.bf16.msra.mxu0 %v5698_v13  ;;  %v1424_v28 = vld [vmem:[#allocation13 + $0xf0] sm:$0xff]  ;;  %v1581_v10 = vld [vmem:[#allocation12 + $0x18] sm:$0xff] }
 0x2f5   : > { %4099 = vmatpush1.bf16.msra.mxu1 %v4098_v12  ;;  %4168 = vmatprep.subr.bf16.mxu0 %v5702_v14  ;;  %v6254_v12 = vpack.c.bf16 %v1424_v28, %v1422_v26  ;;  %v4197_v26 = vpack.c.bf16 %v1581_v10, %v1580_v57  ;;  %v1603_v57 = vld [vmem:[#allocation12 + $0xc8] sm:$0xff]  ;;  %v1687_v10 = vld [vmem:[#allocation10 + $0x10] sm:$0xff] }
 0x2f6   : > { %4128 = vmatprep.subr.bf16.mxu1 %v6196_v25 }
 0x2f8   : > { %1289 = vmatmul.mubr.f32.vlgmr.msra.gmra.mrb[0].mxu1 %v1201_v52  ;;  %4170 = vmatpush3.bf16.msra.mxu0 %v5722_v19  ;;  %v1410_v52 = vld [vmem:[#allocation13 + $0x80] sm:$0xff] }
 0x2f9   : > { %3726 = vmatprep.mubr.msk.f32.mxu1 %vm1217_vm4, %v1204_v9  ;;  %4130 = vmatpush1.bf16.msra.mxu1 %v6199_v5  ;;  %v1415_v9 = vld [vmem:[#allocation13 + $0xa8] sm:$0xff]  ;;  %v6232_v54 = vpack.c.bf16 %v1412_v53, %v1410_v52  ;;  %v4193_v53 = vpack.c.bf16 %v1579_v32, %v1578_v31 }
 0x2fa   : > { %4132 = vmatprep.subr.bf16.mxu1 %v6203_v15  ;;  %4172 = vmatprep.subr.bf16.mxu0 %v5725_v20  ;;  %v6236_v56 = vpack.c.bf16 %v1417_v11, %v1415_v9  ;;  %v4195_v11 = vpack.c.bf16 %v1597_v39, %v1596_v38  ;;  %v4203_v39 = vpack.c.bf16 %v1601_v18, %v1600_v16  ;;  %v1587_v16 = vld [vmem:[#allocation12 + $0x48] sm:$0xff] }
 0x2fc   : > { %1295 = vmatmul.mubr.f32.gmra.mrb[2].mxu1 %v1203_v44  ;;  %4174 = vmatpush3.bf16.msra.mxu0 %v5745_v27  ;;  %v1418_v44 = vld [vmem:[#allocation13 + $0xc0] sm:$0xff] }
 0x2fd   : > { %4134 = vmatpush1.bf16.msra.mxu1 %v6208_v24  ;;  %4176 = vmatprep.subr.bf16.mxu0 %v5752_v29  ;;  %v6248_v46 = vpack.c.bf16 %v1420_v45, %v1418_v44  ;;  %v1598_v45 = vld [vmem:[#allocation12 + $0xa0] sm:$0xff] }
 0x2fe   : > { %4136 = vmatprep.subr.bf16.mxu1 %v6211_v6  ;;  %1490 = vmatprep.mubr.f32.mxu1 %v7268_v4  ;;  %v4199_v28 = vpack.c.bf16 %v1599_v62, %v1598_v45 }
 0x2ff   : > { %v1210_v23 = vpop.permute.xlu0 %1209  ;;  %v1215_v40 = vpop.permute.xlu1 %1214 }
 0x300   : > { %4178 = vmatpush3.bf16.msra.mxu0 %v5771_v35 }
 0x301   : > { %4138 = vmatpush1.bf16.msra.mxu1 %v6216_v22  ;;  %4180 = vmatprep.subr.bf16.mxu0 %v5776_v36 }
 0x302   : > { %4140 = vmatprep.subr.bf16.mxu1 %v6220_v33 }
 0x304   : > { %4182 = vmatpush3.bf16.msra.mxu0 %v5793_v41  ;;  %v6559_v41 = vld [vmem:[%s7216_s20 + $0x18] sm:$0xff] }
 0x305   : > { %4142 = vmatpush1.bf16.msra.mxu1 %v6224_v43  ;;  %4184 = vmatprep.subr.bf16.mxu0 %v5798_v42 }
 0x306   : > { %4144 = vmatprep.subr.bf16.mxu1 %v6228_v50 }
 0x308   : > { %4186 = vmatpush3.bf16.msra.mxu0 %v5815_v47 }
 0x309   : > { %4146 = vmatpush1.bf16.msra.mxu1 %v6232_v54  ;;  %4188 = vmatprep.subr.bf16.mxu0 %v5820_v48  ;;  %v2192_v48 = vld [vmem:[#allocation18 + $0x18] sm:$0xff] }
 0x30a   : > { %4148 = vmatprep.subr.bf16.mxu1 %v6236_v56 }
 0x30c   : > { %4190 = vmatpush3.bf16.msra.mxu0 %v5831_v51  ;;  %v2191_v51 = vld [vmem:[#allocation18 + $0x10] sm:$0xff] }
 0x30d   : > { %4150 = vmatpush1.bf16.msra.mxu1 %v6240_v60  ;;  %4224 = vmatprep.subr.bf16.mxu0 %v6259_v21 }
 0x30e   : > { %4152 = vmatprep.subr.bf16.mxu1 %v6244_v61 }
 0x311   : > { %4154 = vmatpush1.bf16.msra.mxu1 %v6248_v46 }
 0x312   : > { %4156 = vmatprep.subr.bf16.mxu1 %v6252_v0 }
 0x315   : > { %4158 = vmatpush1.bf16.msra.mxu1 %v6254_v12 }
 0x316   : > { %4192 = vmatprep.subr.bf16.mxu1 %v4191_v2 }
 0x3c1   : > { %v1367_v30 = vpop.f32.mrb[4].mxu0 }
 0x3c2   : > { %v1368_v17 = vadd.f32 %v1367_v30, %v1210_v23  ;;  %v1369_v37 = vpop.f32.mrb[5].mxu0 }
 0x3c3   : > { %v4201_v37 = vpack.c.bf16 %v1583_v1, %v1582_v34  ;;  %v1586_v1 = vld [vmem:[#allocation12 + $0x40] sm:$0xff] }
 0x3c4   : > { %vm1378_vm9 = vcmp.ge.f32.partialorder %v1368_v17, 0.0  ;;  %v1384_v52 = vmul.f32 0.2, %v1368_v17 }
 0x3c5   : > { %v1372_v9 = vpop.f32.mrb[6].mxu0 }
 0x3c6   : > { %v6262_v58 = vsel %vm1378_vm9, %v1368_v17, %v1384_v52  ;;  %v1373_v59 = vadd.f32 %v1372_v9, %v1215_v40  ;;  %v1374_v44 = vpop.f32.mrb[7].mxu0  ;;  %v1584_v52 = vld [vmem:[#allocation12 + $0x30] sm:$0xff]  ;;  %v1602_v9 = vld [vmem:[#allocation12 + $0xc0] sm:$0xff] }
 0x3c7   : > { %1491 = vmatmul.mubr.f32.vlgmr.msra.gmra.mrb[4].mxu1 %v6262_v58 }
 0x3c8   : > { %v1387_v63 = vmul.f32 0.2, %v1373_v59  ;;  %4194 = vmatpush3.bf16.msra.mxu1 %v4193_v53  ;;  %1496 = vmatprep.mubr.f32.mxu1 %v7268_v4  ;;  %vm1381_vm10 = vcmp.ge.f32.partialorder %v1373_v59, 0.0  ;;  %v1585_v53 = vld [vmem:[#allocation12 + $0x38] sm:$0xff] }
 0x3c9   : > { %4196 = vmatprep.subr.bf16.mxu1 %v4195_v11 }
 0x3ca   : > { %v6266_v2 = vsel %vm1381_vm10, %v1373_v59, %v1387_v63  ;;  %v1688_v59 = vld [vmem:[#allocation10 + $0x18] sm:$0xff] }
 0x3cb   : > { %v1290_v30 = vpop.f32.mrb[0].mxu1  ;;  %1497 = vmatmul.mubr.f32.gmra.mrb[6].mxu1 %v6266_v2  ;;  %v4269_v31 = vpack.c.bf16 %v6266_v2, %v6262_v58 }
 0x3cc   : > { %v1291_v32 = vadd.f32 %v1290_v30, %v1210_v23  ;;  %4198 = vmatpush3.bf16.msra.mxu1 %v4197_v26  ;;  %v1292_v17 = vpop.f32.mrb[1].mxu1  ;;  %v4205_v26 = vpack.c.bf16 %v1585_v53, %v1584_v52 }
 0x3cd   : > { %v1293_v38 = vadd.f32 %v1292_v17, %v1210_v23  ;;  %4200 = vmatprep.subr.bf16.mxu1 %v4199_v28  ;;  %v4207_v23 = vpack.c.bf16 %v1603_v57, %v1602_v9  ;;  %v4227_v28 = vpack.c.bf16 %v1688_v59, %v1687_v10  ;;  %v1589_v57 = vld [vmem:[#allocation12 + $0x58] sm:$0xff]  ;;  %v1606_v10 = vld [vmem:[#allocation12 + $0xe0] sm:$0xff] }
 0x3ce   : > { %v1382_v11 = vmul.f32 0.2, %v1291_v32  ;;  %vm1376_vm11 = vcmp.ge.f32.partialorder %v1291_v32, 0.0 }
 0x3cf   : > { %v1383_v44 = vmul.f32 0.2, %v1293_v38  ;;  %v1296_v45 = vpop.f32.mrb[2].mxu1  ;;  %vm1377_vm12 = vcmp.ge.f32.partialorder %v1293_v38, 0.0 }
 0x3d0   : > { %v1297_v62 = vadd.f32 %v1296_v45, %v1215_v40  ;;  %4202 = vmatpush3.bf16.msra.mxu1 %v4201_v37  ;;  %v1298_v63 = vpop.f32.mrb[3].mxu1  ;;  %v6273_v18 = vsel %vm1376_vm11, %v1291_v32, %v1382_v11  ;;  %v1604_v45 = vld [vmem:[#allocation12 + $0xd0] sm:$0xff]  ;;  %v1605_v37 = vld [vmem:[#allocation12 + $0xd8] sm:$0xff]  ;;  %v4209_v32 = vpack.c.bf16 %v1587_v16, %v1586_v1  ;;  %v1591_v1 = vld [vmem:[#allocation12 + $0x68] sm:$0xff] }
 0x3d1   : > { %v1299_v30 = vadd.f32 %v1298_v63, %v1215_v40  ;;  %v6271_v34 = vsel %vm1377_vm12, %v1293_v38, %v1383_v44  ;;  %4204 = vmatprep.subr.bf16.mxu1 %v4203_v39  ;;  %v1689_v40 = vld [vmem:[#allocation10 + $0x20] sm:$0xff]  ;;  %v1690_v38 = vld [vmem:[#allocation10 + $0x28] sm:$0xff]  ;;  %v4211_v9 = vpack.c.bf16 %v1605_v37, %v1604_v45  ;;  %v1588_v11 = vld [vmem:[#allocation12 + $0x50] sm:$0xff] }
 0x3d2   : > { %v1385_v17 = vmul.f32 0.2, %v1297_v62  ;;  %1567 = vmatprep.mubr.f32.mxu0 %v6271_v34  ;;  %1674 = vmatprep.mubr.f32.mxu1 %v6271_v34  ;;  %vm1379_vm13 = vcmp.ge.f32.partialorder %v1297_v62, 0.0  ;;  %v4231_v59 = vpack.c.bf16 %v1690_v38, %v1689_v40  ;;  %v1607_v44 = vld [vmem:[#allocation12 + $0xe8] sm:$0xff]  ;;  %v1691_v63 = vld [vmem:[#allocation10 + $0x30] sm:$0xff]  ;;  %v1693_v45 = vld [vmem:[#allocation10 + $0x40] sm:$0xff] }
 0x3d3   : > { %v1386_v49 = vmul.f32 0.2, %v1299_v30  ;;  %1568 = vmatmul.mubr.f32.vlgmr.msra.gmra.mrb[8].mxu0 %v6273_v18  ;;  %vm1380_vm14 = vcmp.ge.f32.partialorder %v1299_v30, 0.0  ;;  %v1608_v16 = vld [vmem:[#allocation12 + $0xf0] sm:$0xff]  ;;  %v1694_v37 = vld [vmem:[#allocation10 + $0x48] sm:$0xff] }
 0x3d4   : > { %4206 = vmatpush3.bf16.msra.mxu1 %v4205_v26  ;;  %4226 = vmatpush3.bf16.msra.mxu0 %v6259_v21  ;;  %v6279_v39 = vsel %vm1379_vm13, %v1297_v62, %v1385_v17  ;;  %v1692_v26 = vld [vmem:[#allocation10 + $0x38] sm:$0xff]  ;;  %v4215_v62 = vpack.c.bf16 %v1607_v44, %v1606_v10  ;;  %v1592_v38 = vld [vmem:[#allocation12 + $0x70] sm:$0xff]  ;;  %v1697_v44 = vld [vmem:[#allocation10 + $0x60] sm:$0xff] }
 0x3d5   : > { %v1392_v52 = vsel %vm1380_vm14, %v1299_v30, %v1386_v49  ;;  %4208 = vmatprep.subr.bf16.mxu1 %v4207_v23  ;;  %4228 = vmatprep.subr.bf16.mxu0 %v4227_v28  ;;  %v4257_v53 = vpack.c.bf16 %v6279_v39, %v6273_v18  ;;  %v4213_v49 = vpack.c.bf16 %v1589_v57, %v1588_v11  ;;  %v1590_v23 = vld [vmem:[#allocation12 + $0x60] sm:$0xff]  ;;  %v1609_v17 = vld [vmem:[#allocation12 + $0xf8] sm:$0xff]  ;;  %v1695_v11 = vld [vmem:[#allocation10 + $0x50] sm:$0xff] }
 0x3d6   : > { %1572 = vmatprep.mubr.f32.mxu0 %v1392_v52  ;;  %v4255_v21 = vpack.c.bf16 %v1392_v52, %v6271_v34  ;;  %v4235_v30 = vpack.c.bf16 %v1692_v26, %v1691_v63  ;;  %v4217_v34 = vpack.c.bf16 %v1591_v1, %v1590_v23  ;;  %v4219_v40 = vpack.c.bf16 %v1609_v17, %v1608_v16  ;;  %v1698_v63 = vld [vmem:[#allocation10 + $0x68] sm:$0xff]  ;;  %v1699_v26 = vld [vmem:[#allocation10 + $0x70] sm:$0xff] }
 0x3d7   : > { %1573 = vmatmul.mubr.f32.gmra.mrb[10].mxu0 %v6279_v39  ;;  %v1777_v17 = vld [vmem:[#allocation4 + $0x8] sm:$0xff] }
 0x3d8   : > { %4210 = vmatpush3.bf16.msra.mxu1 %v4209_v32  ;;  %4230 = vmatpush3.bf16.msra.mxu0 %v4227_v28  ;;  %v4239_v28 = vpack.c.bf16 %v1694_v37, %v1693_v45  ;;  %v1593_v32 = vld [vmem:[#allocation12 + $0x78] sm:$0xff] }
 0x3d9   : > { %3979 = vmatprep.mubr.f32.mxu0 %v6262_v58  ;;  %4212 = vmatprep.subr.bf16.mxu1 %v4211_v9  ;;  %v1696_v9 = vld [vmem:[#allocation10 + $0x58] sm:$0xff]  ;;  %v4221_v57 = vpack.c.bf16 %v1593_v32, %v1592_v38 }
 0x3da   : > { %4232 = vmatprep.subr.bf16.mxu0 %v4231_v59  ;;  %v4243_v10 = vpack.c.bf16 %v1696_v9, %v1695_v11 }
 0x3dc   : > { %4214 = vmatpush3.bf16.msra.mxu1 %v4213_v49  ;;  %4234 = vmatpush3.bf16.msra.mxu0 %v4231_v59  ;;  %v4247_v59 = vpack.c.bf16 %v1698_v63, %v1697_v44  ;;  %v1700_v49 = vld [vmem:[#allocation10 + $0x78] sm:$0xff] }
 0x3dd   : > { %4216 = vmatprep.subr.bf16.mxu1 %v4215_v62  ;;  %4236 = vmatprep.subr.bf16.mxu0 %v4235_v30  ;;  %v4251_v62 = vpack.c.bf16 %v1700_v49, %v1699_v26  ;;  %v1783_v49 = vpop.permute.xlu1 %1782 }
 0x3e0   : > { %4218 = vmatpush3.bf16.msra.mxu1 %v4217_v34  ;;  %4238 = vmatpush3.bf16.msra.mxu0 %v4235_v30 }
 0x3e1   : > { %4220 = vmatprep.subr.bf16.mxu1 %v4219_v40  ;;  %4240 = vmatprep.subr.bf16.mxu0 %v4239_v28 }
 0x3e4   : > { %4222 = vmatpush3.bf16.msra.mxu1 %v4221_v57  ;;  %4242 = vmatpush3.bf16.msra.mxu0 %v4239_v28 }
 0x3e5   : > { %4256 = vmatprep.subr.bf16.mxu1 %v4255_v21  ;;  %4244 = vmatprep.subr.bf16.mxu0 %v4243_v10 }
 0x3e7   : > { %1675 = vmatmul.mubr.f32.vlgmr.msra.gmra.mrb[8].mxu1 %v6273_v18 }
 0x3e8   : > { %1679 = vmatprep.mubr.f32.mxu1 %v1392_v52  ;;  %4246 = vmatpush3.bf16.msra.mxu0 %v4243_v10  ;;  %v1776_v52 = vld [vmem:[#allocation4] sm:$0xff] }
 0x3e9   : > { %4258 = vmatpush1.bf16.msra.mxu1 %v4257_v53  ;;  %4248 = vmatprep.subr.bf16.mxu0 %v4247_v59 }
 0x3eb   : > { %1680 = vmatmul.mubr.f32.gmra.mrb[10].mxu1 %v6279_v39 }
 0x3ec   : > { %4250 = vmatpush3.bf16.msra.mxu0 %v4247_v59  ;;  %1861 = vmatprep.mubr.f32.mxu1 %v7268_v4 }
 0x3ed   : > { %4252 = vmatprep.subr.bf16.mxu0 %v4251_v62 }
 0x3f0   : > { %4254 = vmatpush3.bf16.msra.mxu0 %v4251_v62 }
 0x3f3   : > { %3980 = vmatmul.mubr.f32.vlgmr.msra.gmra.mrb[12].mxu0 %v6266_v2 }
 0x49a   : > { %v1492_v21 = vpop.f32.mrb[4].mxu1 }
 0x49b   : > { %v1494_v30 = vpop.f32.mrb[5].mxu1 }
 0x49e   : > { %v1498_v23 = vpop.f32.mrb[6].mxu1 }
 0x49f   : > { %v4261_v1 = vpack.c.bf16 %v1498_v23, %v1492_v21  ;;  %v1500_v16 = vpop.f32.mrb[7].mxu1 }
 0x4a0   : > { %v4259_v18 = vpack.c.bf16 %v1500_v16, %v1494_v30 }
 0x4a2   : > { %4260 = vmatprep.subr.bf16.mxu1 %v4259_v18 }
 0x4a3   : > { %4262 = vmatpush1.bf16.msra.mxu1 %v4261_v1  ;;  %v1788_v1 = vpop.permute.xlu0 %1787 }
 0x4a6   : > { %v3821_v53 = vpop.f32.mrb[8].mxu0  ;;  %3729 = vmatmul.mubr.msk.f32.vlgmr.msra.gmra.mrb[12].mxu1 %vm1790_vm15, %v1776_v52 }
 0x4a7   : > { %v3822_v39 = vpop.f32.mrb[9].mxu0  ;;  %1867 = vmatprep.mubr.f32.mxu1 %v7268_v4 }
 0x4a8   : > { %v3823_v45 = vadd.f32 %v3822_v39, %v3821_v53 }
 0x4aa   : > { %v3824_v37 = vpop.f32.mrb[10].mxu0  ;;  %3730 = vmatmul.mubr.msk.f32.gmra.mrb[14].mxu1 %vm1790_vm15, %v1777_v17 }
 0x4ab   : > { %v3825_v34 = vpop.f32.mrb[11].mxu0  ;;  %1938 = vmatprep.mubr.f32.mxu1 %v7268_v4 }
 0x4ac   : > { %v3826_v40 = vadd.f32 %v3825_v34, %v3824_v37 }
 0x4ae   : > { %v4265_v28 = vpack.c.bf16 %v3826_v40, %v3823_v45 }
 0x4ba   : > { %v3859_v38 = vpop.f32.mrb[8].mxu1 }
 0x4bb   : > { %v3860_v32 = vpop.f32.mrb[9].mxu1 }
 0x4bc   : > { %v3861_v11 = vadd.f32 %v3860_v32, %v3859_v38 }
 0x4be   : > { %v3862_v9 = vpop.f32.mrb[10].mxu1 }
 0x4bf   : > { %v3863_v57 = vpop.f32.mrb[11].mxu1 }
 0x4c0   : > { %v3864_v10 = vadd.f32 %v3863_v57, %v3862_v9 }
 0x4c2   : > { %v4263_v44 = vpack.c.bf16 %v3864_v10, %v3861_v11 }
 0x4c4   : > { %4264 = vmatprep.subr.bf16.mxu1 %v4263_v44 }
 0x4c5   : > { %4266 = vmatpush1.bf16.msra.mxu1 %v4265_v28 }
 0x4c6   : > { %v3981_v63 = vpop.f32.mrb[12].mxu0 }
 0x4c7   : > { %v1767_v59 = vpop.f32.mrb[13].mxu0 }
 0x4c8   : > { %v4267_v26 = vpack.c.bf16 %v3981_v63, %v1767_v59 }
 0x4ca   : > { %4268 = vmatprep.subr.bf16.mxu1 %v4267_v26 }
 0x4cb   : > { %4270 = vmatpush1.bf16.msra.mxu1 %v4269_v31 }
 0x4ce   : > { %3731 = vmatmul.mubr.msk.f32.vlgmr.msra.gmra.mrb[16].mxu1 %vm1790_vm15, %v1776_v52 }
 0x4cf   : > { %1944 = vmatprep.mubr.f32.mxu1 %v7268_v4  ;;  %v4751_v4 = vld [vmem:[%s7215_s19 + $0x18] sm:$0xff] }
 0x4d2   : > { %3732 = vmatmul.mubr.msk.f32.gmra.mrb[18].mxu1 %vm1790_vm15, %v1777_v17 }
 0x579   : > { %v1863_v62 = vpop.f32.mrb[12].mxu1 }
 0x57a   : > { %v1864_v21 = vadd.f32 %v1863_v62, %v1783_v49  ;;  %v1865_v30 = vpop.f32.mrb[13].mxu1 }
 0x57b   : > { %v1866_v31 = vadd.f32 %v1865_v30, %v1783_v49  ;;  %v2197_v30 = vld [vmem:[#allocation18 + $0x40] sm:$0xff] }
 0x57c   : > { %vm1951_vm9 = vcmp.ge.f32.partialorder %v1864_v21, 0.0  ;;  %v1959_v23 = vmul.f32 0.2, %v1864_v21 }
 0x57d   : > { %v1869_v16 = vpop.f32.mrb[14].mxu1  ;;  %v1960_v52 = vmul.f32 0.2, %v1866_v31  ;;  %vm1952_vm11 = vcmp.ge.f32.partialorder %v1866_v31, 0.0 }
 0x57e   : > { %v6300_v18 = vsel %vm1951_vm9, %v1864_v21, %v1959_v23  ;;  %v1870_v53 = vadd.f32 %v1869_v16, %v1788_v1  ;;  %v1871_v39 = vpop.f32.mrb[15].mxu1  ;;  %v2198_v23 = vld [vmem:[#allocation18 + $0x48] sm:$0xff] }
 0x57f   : > { %1975 = vrot.lane.b32.xlu1 %v6300_v18, %s7257_s5  ;;  %v1872_v17 = vadd.f32 %v1871_v39, %v1788_v1  ;;  %v6318_v45 = vsel %vm1952_vm11, %v1866_v31, %v1960_v52  ;;  %v4747_v39 = vld [vmem:[%s7216_s20 + $0x48] sm:$0xff] }
 0x580   : > { %vm1955_vm10 = vcmp.ge.f32.partialorder %v1870_v53, 0.0  ;;  %v1963_v58 = vmul.f32 0.2, %v1870_v53 }
 0x581   : > { %v1964_v37 = vmul.f32 0.2, %v1872_v17  ;;  %vm1956_vm12 = vcmp.ge.f32.partialorder %v1872_v17, 0.0 }
 0x582   : > { %v6304_v2 = vsel %vm1955_vm10, %v1870_v53, %v1963_v58  ;;  %v4746_v53 = vld [vmem:[%s7216_s20 + $0x40] sm:$0xff] }
 0x583   : > { %1977 = vrot.lane.b32.xlu0 %v6304_v2, %s7257_s5  ;;  %1987 = vrot.lane.b32.xlu1 %v6300_v18, %s7255_s23  ;;  %v6324_v34 = vsel %vm1956_vm12, %v1872_v17, %v1964_v37 }
 0x587   : > { %1989 = vrot.lane.b32.xlu0 %v6304_v2, %s7255_s23  ;;  %1999 = vrot.lane.b32.xlu1 %v6300_v18, %s7253_s27 }
 0x58b   : > { %2001 = vrot.lane.b32.xlu0 %v6304_v2, %s7253_s27  ;;  %2011 = vrot.lane.b32.xlu1 %v6300_v18, %s7259_s7 }
 0x58f   : > { %2013 = vrot.lane.b32.xlu0 %v6304_v2, %s7259_s7  ;;  %1979 = vrot.lane.b32.xlu1 %v6318_v45, %s7257_s5 }
 0x593   : > { %1981 = vrot.lane.b32.xlu0 %v6324_v34, %s7257_s5  ;;  %1991 = vrot.lane.b32.xlu1 %v6318_v45, %s7255_s23 }
 0x597   : > { %1993 = vrot.lane.b32.xlu0 %v6324_v34, %s7255_s23  ;;  %2003 = vrot.lane.b32.xlu1 %v6318_v45, %s7253_s27  ;;  %s7342_s23 = sld [smem:[#allocation51_spill]] }
 0x59b   : > { %2005 = vrot.lane.b32.xlu0 %v6324_v34, %s7253_s27  ;;  %2015 = vrot.lane.b32.xlu1 %v6318_v45, %s7259_s7  ;;  %s7340_s27 = smov 113  }
 0x59f   : > { %2017 = vrot.lane.b32.xlu0 %v6324_v34, %s7259_s7 }
 0x5a1   : > { %v1940_v40 = vpop.f32.mrb[16].mxu1 }
 0x5a2   : > { %v1941_v28 = vadd.f32 %v1940_v40, %v1783_v49  ;;  %v1942_v38 = vpop.f32.mrb[17].mxu1  ;;  %v2226_v40 = vld [vmem:[#allocation6 + $0x8] sm:$0xff] }
 0x5a3   : > { %v1943_v32 = vadd.f32 %v1942_v38, %v1783_v49  ;;  %3735 = vmatprep.mubr.msk.f32.mxu0 %vm1217_vm4, %v2226_v40  ;;  %3733 = vmatprep.mubr.msk.f32.mxu1 %vm1217_vm4, %v2226_v40 }
 0x5a4   : > { %vm1953_vm13 = vcmp.ge.f32.partialorder %v1941_v28, 0.0  ;;  %v1961_v11 = vmul.f32 0.2, %v1941_v28 }
 0x5a5   : > { %v1962_v9 = vmul.f32 0.2, %v1943_v32  ;;  %v1946_v57 = vpop.f32.mrb[18].mxu1  ;;  %vm1954_vm14 = vcmp.ge.f32.partialorder %v1943_v32, 0.0 }
 0x5a6   : > { %v1969_v10 = vsel %vm1953_vm13, %v1941_v28, %v1961_v11  ;;  %v1947_v44 = vadd.f32 %v1946_v57, %v1788_v1  ;;  %v1948_v63 = vpop.f32.mrb[19].mxu1 }
 0x5a7   : > { %v1949_v59 = vadd.f32 %v1948_v63, %v1788_v1  ;;  %2107 = vrot.lane.b32.xlu1 %v1969_v10, %s7263_s2  ;;  %v1970_v62 = vsel %vm1954_vm14, %v1943_v32, %v1962_v9  ;;  %v6346_v1 = vmul.f32 %v4746_v53, %v1969_v10 }
 0x5a8   : > { %vm1957_vm9 = vcmp.ge.f32.partialorder %v1947_v44, 0.0  ;;  %v1965_v26 = vmul.f32 0.2, %v1947_v44  ;;  %v6353_v31 = vmul.f32 %v2197_v30, %v1970_v62  ;;  %v2229_v30 = vld [vmem:[%s7342_s23] sm:$0xff] }
 0x5a9   : > { %vm1958_vm10 = vcmp.ge.f32.partialorder %v1949_v59, 0.0  ;;  %v1966_v21 = vmul.f32 0.2, %v1949_v59 }
 0x5aa   : > { %v1973_v16 = vsel %vm1957_vm9, %v1947_v44, %v1965_v26 }
 0x5ab   : > { %v1974_v49 = vsel %vm1958_vm10, %v1949_v59, %v1966_v21  ;;  %2109 = vrot.lane.b32.xlu0 %v1973_v16, %s7263_s2  ;;  %2111 = vrot.lane.b32.xlu1 %v1969_v10, %s7261_s6  ;;  %v6351_v58 = vmul.f32 %v4747_v39, %v1973_v16  ;;  %v4749_v39 = vld [vmem:[%s7215_s19 + $0x8] sm:$0xff]  ;;  %s7390_s2 = sld [smem:[#allocation56_spill]] }
 0x5ac   : > { %v6355_v52 = vmul.f32 %v2198_v23, %v1974_v49 }
 0x5af   : > { %2113 = vrot.lane.b32.xlu0 %v1973_v16, %s7261_s6  ;;  %2115 = vrot.lane.b32.xlu1 %v1969_v10, %s7335_s0  ;;  %s7369_s6 = smov 8  }
 0x5b3   : > { %2117 = vrot.lane.b32.xlu0 %v1973_v16, %s7335_s0  ;;  %2119 = vrot.lane.b32.xlu1 %v1969_v10, %s7259_s7 }
 0x5b7   : > { %2121 = vrot.lane.b32.xlu0 %v1973_v16, %s7259_s7  ;;  %2123 = vrot.lane.b32.xlu1 %v1969_v10, %s7336_s25 }
 0x5bb   : > { %2125 = vrot.lane.b32.xlu0 %v1973_v16, %s7336_s25  ;;  %2127 = vrot.lane.b32.xlu1 %v1969_v10, %s7337_s3 }
 0x5bf   : > { %2129 = vrot.lane.b32.xlu0 %v1973_v16, %s7337_s3  ;;  %2131 = vrot.lane.b32.xlu1 %v1969_v10, %s7338_s28 }
 0x5c3   : > { %2133 = vrot.lane.b32.xlu0 %v1973_v16, %s7338_s28  ;;  %2135 = vrot.lane.b32.xlu1 %v1969_v10, %s7339_s10 }
 0x5c7   : > { %2137 = vrot.lane.b32.xlu0 %v1973_v16, %s7339_s10  ;;  %2157 = vrot.lane.b32.xlu1 %v1970_v62, %s5200_s1 }
 0x5cb   : > { %2159 = vrot.lane.b32.xlu0 %v1974_v49, %s5200_s1  ;;  %2161 = vrot.lane.b32.xlu1 %v1970_v62, %s5201_s12  ;;  %s5203_s1 = smov 125  }
 0x5cf   : > { %2163 = vrot.lane.b32.xlu0 %v1974_v49, %s5201_s12  ;;  %2165 = vrot.lane.b32.xlu1 %v1970_v62, %s5202_s24  ;;  %s5204_s12 = smov 124  }
 0x5d3   : > { %2167 = vrot.lane.b32.xlu0 %v1974_v49, %s5202_s24  ;;  %2169 = vrot.lane.b32.xlu1 %v1970_v62, %s7259_s7  ;;  %s5205_s24 = smov 123  }
 0x5d7   : > { %2171 = vrot.lane.b32.xlu0 %v1974_v49, %s7259_s7  ;;  %2023 = vrot.lane.b32.xlu1 %v6300_v18, %s7336_s25 }
 0x5db   : > { %2025 = vrot.lane.b32.xlu0 %v6304_v2, %s7336_s25  ;;  %2173 = vrot.lane.b32.xlu1 %v1970_v62, %s7336_s25 }
 0x5df   : > { %2175 = vrot.lane.b32.xlu0 %v1974_v49, %s7336_s25  ;;  %2177 = vrot.lane.b32.xlu1 %v1970_v62, %s5203_s1 }
 0x5e3   : > { %2179 = vrot.lane.b32.xlu0 %v1974_v49, %s5203_s1  ;;  %2181 = vrot.lane.b32.xlu1 %v1970_v62, %s5204_s12  ;;  %s7341_s1 = smov 112  }
 0x5e7   : > { %2183 = vrot.lane.b32.xlu0 %v1974_v49, %s5204_s12  ;;  %2185 = vrot.lane.b32.xlu1 %v1970_v62, %s5205_s24  ;;  %s7375_s12 = sld [smem:[#allocation57_spill]] }
 0x5eb   : > { %2187 = vrot.lane.b32.xlu0 %v1974_v49, %s5205_s24  ;;  %2027 = vrot.lane.b32.xlu1 %v6318_v45, %s7336_s25  ;;  %v4748_v49 = vld [vmem:[%s7215_s19] sm:$0xff] }
 0x5ef   : > { %2029 = vrot.lane.b32.xlu0 %v6324_v34, %s7336_s25  ;;  %2035 = vrot.lane.b32.xlu1 %v6300_v18, %s7340_s27 }
 0x5f1   : > { %v1976_v28 = vpop.permute.xlu1 %1975 }
 0x5f3   : > { %2037 = vrot.lane.b32.xlu0 %v6304_v2, %s7340_s27  ;;  %2039 = vrot.lane.b32.xlu1 %v6318_v45, %s7340_s27 }
 0x5f5   : > { %v1978_v38 = vpop.permute.xlu0 %1977  ;;  %v1988_v32 = vpop.permute.xlu1 %1987 }
 0x5f7   : > { %2041 = vrot.lane.b32.xlu0 %v6324_v34, %s7340_s27  ;;  %2047 = vrot.lane.b32.xlu1 %v6300_v18, %s7341_s1 }
 0x5f9   : > { %v1990_v11 = vpop.permute.xlu0 %1989  ;;  %v2000_v9 = vpop.permute.xlu1 %1999 }
 0x5fb   : > { %2049 = vrot.lane.b32.xlu0 %v6304_v2, %s7341_s1  ;;  %2051 = vrot.lane.b32.xlu1 %v6318_v45, %s7341_s1 }
 0x5fd   : > { %v2002_v57 = vpop.permute.xlu0 %2001  ;;  %v6402_v10 = vpop.permute.xlu1 %2011 }
 0x5ff   : > { %2053 = vrot.lane.b32.xlu0 %v6324_v34, %s7341_s1  ;;  %2059 = vrot.lane.b32.xlu1 %v6300_v18, %s7265_s11 }
 0x601   : > { %v6408_v44 = vpop.permute.xlu0 %2013  ;;  %v1980_v63 = vpop.permute.xlu1 %1979 }
 0x602   : > { %v1983_v59 = vsel %vm858_vm0, %v1976_v28, %v1980_v63  ;;  %v1985_v26 = vsel %vm858_vm0, %v1980_v63, %v1976_v28  ;;  %v4750_v28 = vld [vmem:[%s7215_s19 + $0x10] sm:$0xff] }
 0x603   : > { %2061 = vrot.lane.b32.xlu0 %v6304_v2, %s7265_s11  ;;  %2063 = vrot.lane.b32.xlu1 %v6318_v45, %s7265_s11  ;;  %v2071_v53 = vmul.f32 %v4748_v49, %v1985_v26  ;;  %v2072_v40 = vmul.f32 %v4749_v39, %v1983_v59  ;;  %v2230_v59 = vld [vmem:[%s7342_s23 + $0x8] sm:$0xff]  ;;  %s7368_s11 = smov 9  }
 0x605   : > { %v1982_v62 = vpop.permute.xlu0 %1981  ;;  %v1992_v21 = vpop.permute.xlu1 %1991 }
 0x606   : > { %v1984_v23 = vsel %vm858_vm0, %v1978_v38, %v1982_v62  ;;  %v1986_v16 = vsel %vm858_vm0, %v1982_v62, %v1978_v38  ;;  %v1995_v26 = vsel %vm871_vm1, %v1988_v32, %v1992_v21  ;;  %v1997_v62 = vsel %vm871_vm1, %v1992_v21, %v1988_v32  ;;  %v4752_v32 = vld [vmem:[%s7215_s19 + $0x20] sm:$0xff] }
 0x607   : > { %v2073_v63 = vmul.f32 %v4750_v28, %v1986_v16  ;;  %v2074_v38 = vmul.f32 %v4751_v4, %v1984_v23  ;;  %2065 = vrot.lane.b32.xlu0 %v6324_v34, %s7343_s9  ;;  %2233 = vperm.xlu1 %4745, %v2229_v30   ;;  %v2779_v4 = vld [vmem:[%s7344_s8] sm:$0xff]  ;;  %v2075_v21 = vmul.f32 %v4752_v32, %v1997_v62  ;;  %v4753_v30 = vld [vmem:[%s7215_s19 + $0x28] sm:$0xff] }
 0x609   : > { %v4273_v16 = vpack.c.bf16 %v2073_v63, %v2071_v53  ;;  %v1994_v49 = vpop.permute.xlu0 %1993  ;;  %v2004_v39 = vpop.permute.xlu1 %2003  ;;  %v4271_v23 = vpack.c.bf16 %v2074_v38, %v2072_v40  ;;  %v2076_v53 = vmul.f32 %v4753_v30, %v1995_v26  ;;  %v4754_v40 = vld [vmem:[%s7215_s19 + $0x30] sm:$0xff]  ;;  %v4755_v38 = vld [vmem:[%s7215_s19 + $0x38] sm:$0xff]  ;;  %v2780_v26 = vld [vmem:[%s7344_s8 + $0x8] sm:$0xff]  ;;  %s7370_s8 = smov 1  }
 0x60a   : > { %v1996_v28 = vsel %vm871_vm1, %v1990_v11, %v1994_v49  ;;  %v1998_v17 = vsel %vm871_vm1, %v1994_v49, %v1990_v11  ;;  %v2007_v49 = vsel %vm884_vm2, %v2000_v9, %v2004_v39  ;;  %v2009_v62 = vsel %vm884_vm2, %v2004_v39, %v2000_v9  ;;  %v4756_v9 = vld [vmem:[%s7215_s19 + $0x40] sm:$0xff] }
 0x60b   : > { %v2077_v63 = vmul.f32 %v4754_v40, %v1998_v17  ;;  %v2078_v11 = vmul.f32 %v4755_v38, %v1996_v28  ;;  %2238 = vperm.xlu0 %4744, %v2230_v59   ;;  %2783 = vperm.xlu1 %4745, %v2779_v4   ;;  %v2079_v39 = vmul.f32 %v4756_v9, %v2009_v62  ;;  %v4757_v4 = vld [vmem:[%s7215_s19 + $0x48] sm:$0xff]  ;;  %v4763_v9 = vld [vmem:[%s7215_s19 + $0x78] sm:$0xff] }
 0x60c   : > { %4272 = vmatprep.subr.bf16.mxu1 %v4271_v23  ;;  %v2080_v23 = vmul.f32 %v4757_v4, %v2007_v49 }
 0x60d   : > { %v4277_v32 = vpack.c.bf16 %v2077_v63, %v2075_v21  ;;  %4274 = vmatpush1.bf16.msra.mxu1 %v4273_v16  ;;  %v2006_v17 = vpop.permute.xlu0 %2005  ;;  %v2016_v30 = vpop.permute.xlu1 %2015  ;;  %v4275_v40 = vpack.c.bf16 %v2078_v11, %v2076_v53  ;;  %v4758_v16 = vld [vmem:[%s7215_s19 + $0x50] sm:$0xff]  ;;  %v4759_v53 = vld [vmem:[%s7215_s19 + $0x58] sm:$0xff] }
 0x60e   : > { %v2008_v59 = vsel %vm884_vm2, %v2002_v57, %v2006_v17  ;;  %v2010_v28 = vsel %vm884_vm2, %v2006_v17, %v2002_v57  ;;  %v2019_v63 = vsel %vm897_vm3, %v6402_v10, %v2016_v30  ;;  %v2021_v38 = vsel %vm897_vm3, %v2016_v30, %v6402_v10  ;;  %v4761_v10 = vld [vmem:[%s7215_s19 + $0x68] sm:$0xff]  ;;  %v4762_v30 = vld [vmem:[%s7215_s19 + $0x70] sm:$0xff] }
 0x60f   : > { %v2081_v21 = vmul.f32 %v4758_v16, %v2010_v28  ;;  %v2082_v57 = vmul.f32 %v4759_v53, %v2008_v59  ;;  %2788 = vperm.xlu0 %4744, %v2780_v26   ;;  %4276 = vmatprep.subr.bf16.mxu1 %v4275_v40  ;;  %v4760_v59 = vld [vmem:[%s7215_s19 + $0x60] sm:$0xff] }
 0x610   : > { %v2083_v28 = vmul.f32 %v4760_v59, %v2021_v38 }
 0x611   : > { %v4281_v11 = vpack.c.bf16 %v2081_v21, %v2079_v39  ;;  %4278 = vmatpush1.bf16.msra.mxu1 %v4277_v32  ;;  %v2018_v49 = vpop.permute.xlu0 %2017  ;;  %v4279_v62 = vpack.c.bf16 %v2082_v57, %v2080_v23  ;;  %v2084_v32 = vmul.f32 %v4761_v10, %v2019_v63  ;;  %v4764_v39 = vld [vmem:[%s7215_s19 + $0x98] sm:$0xff]  ;;  %v4765_v21 = vld [vmem:[%s7215_s19 + $0x88] sm:$0xff]  ;;  %v4766_v57 = vld [vmem:[%s7215_s19 + $0x90] sm:$0xff] }
 0x612   : > { %v2020_v17 = vsel %vm897_vm3, %v6408_v44, %v2018_v49  ;;  %v2022_v26 = vsel %vm897_vm3, %v2018_v49, %v6408_v44  ;;  %v2090_v4 = vmul.f32 %v4764_v39, %v6324_v34  ;;  %v2088_v53 = vmul.f32 %v4765_v21, %v6318_v45  ;;  %v4767_v34 = vld [vmem:[%s7215_s19 + $0x80] sm:$0xff]  ;;  %v2190_v21 = vld [vmem:[#allocation18 + $0x8] sm:$0xff] }
 0x613   : > { %v2085_v40 = vmul.f32 %v4762_v30, %v2022_v26  ;;  %v2086_v44 = vmul.f32 %v4763_v9, %v2020_v17  ;;  %4280 = vmatprep.subr.bf16.mxu1 %v4279_v62  ;;  %v2089_v63 = vmul.f32 %v4766_v57, %v6304_v2 }
 0x614   : > { %v4287_v38 = vpack.c.bf16 %v2090_v4, %v2088_v53  ;;  %v6547_v53 = vld [vmem:[%s7216_s20 + $0x8] sm:$0xff] }
 0x615   : > { %v4285_v23 = vpack.c.bf16 %v2085_v40, %v2083_v28  ;;  %4282 = vmatpush1.bf16.msra.mxu1 %v4281_v11  ;;  %v4283_v16 = vpack.c.bf16 %v2086_v44, %v2084_v32  ;;  %v2087_v11 = vmul.f32 %v4767_v34, %v6300_v18 }
 0x617   : > { %4284 = vmatprep.subr.bf16.mxu1 %v4283_v16  ;;  %v4289_v62 = vpack.c.bf16 %v2089_v63, %v2087_v11  ;;  %v2189_v16 = vld [vmem:[#allocation18] sm:$0xff] }
 0x619   : > { %4286 = vmatpush1.bf16.msra.mxu1 %v4285_v23  ;;  %v2108_v49 = vpop.permute.xlu1 %2107 }
 0x61a   : > { %4288 = vmatprep.subr.bf16.mxu1 %v4287_v38 }
 0x61d   : > { %4290 = vmatpush1.bf16.msra.mxu1 %v4289_v62  ;;  %v2110_v45 = vpop.permute.xlu0 %2109  ;;  %v2112_v17 = vpop.permute.xlu1 %2111  ;;  %v6553_v62 = vld [vmem:[%s7216_s20] sm:$0xff] }
 0x61e   : > { %v2140_v57 = vmul.f32 %v6547_v53, %v2110_v45  ;;  %7345 = vst [vmem:[#allocation31_spill] sm:$0xff] %v6553_v62  ;;  %v2139_v37 = vmul.f32 %v6553_v62, %v2108_v49  ;;  %v6565_v49 = vld [vmem:[%s7216_s20 + $0x10] sm:$0xff] }
 0x620   : > { %v4309_v42 = vpack.c.bf16 %v2140_v57, %v2139_v37  ;;  %v2193_v37 = vld [vmem:[#allocation18 + $0x20] sm:$0xff]  ;;  %v2194_v57 = vld [vmem:[#allocation18 + $0x28] sm:$0xff] }
 0x621   : > { %v2114_v26 = vpop.permute.xlu0 %2113  ;;  %v2116_v59 = vpop.permute.xlu1 %2115 }
 0x622   : > { %v2142_v45 = vmul.f32 %v6559_v41, %v2114_v26  ;;  %v6571_v26 = vld [vmem:[%s7216_s20 + $0x28] sm:$0xff] }
 0x625   : > { %v2118_v28 = vpop.permute.xlu0 %2117  ;;  %v2120_v10 = vpop.permute.xlu1 %2119 }
 0x629   : > { %v2122_v32 = vpop.permute.xlu0 %2121  ;;  %v6528_v2 = vpop.permute.xlu1 %2123 }
 0x62d   : > { %v6530_v30 = vpop.permute.xlu0 %2125  ;;  %v6532_v40 = vpop.permute.xlu1 %2127 }
 0x631   : > { %v6534_v9 = vpop.permute.xlu0 %2129  ;;  %v6536_v44 = vpop.permute.xlu1 %2131 }
 0x635   : > { %v6538_v18 = vpop.permute.xlu0 %2133  ;;  %v6540_v39 = vpop.permute.xlu1 %2135 }
 0x639   : > { %v6542_v4 = vpop.permute.xlu0 %2137  ;;  %v2158_v23 = vpop.permute.xlu1 %2157 }
 0x63a   : > { %v2207_v34 = vmul.f32 %v2189_v16, %v2158_v23 }
 0x63d   : > { %v2160_v63 = vpop.permute.xlu0 %2159  ;;  %v2162_v38 = vpop.permute.xlu1 %2161 }
 0x63e   : > { %v2208_v11 = vmul.f32 %v2190_v21, %v2160_v63  ;;  %v2209_v21 = vmul.f32 %v2191_v51, %v2162_v38 }
 0x640   : > { %v4307_v47 = vpack.c.bf16 %v2208_v11, %v2207_v34  ;;  %v2141_v34 = vmul.f32 %v6565_v49, %v2112_v17  ;;  %v6577_v17 = vld [vmem:[%s7216_s20 + $0x20] sm:$0xff] }
 0x641   : > { %v2164_v23 = vpop.permute.xlu0 %2163  ;;  %v2166_v16 = vpop.permute.xlu1 %2165 }
 0x642   : > { %v2210_v63 = vmul.f32 %v2192_v48, %v2164_v23  ;;  %4308 = vmatprep.subr.bf16.mxu0 %v4307_v47  ;;  %v4313_v62 = vpack.c.bf16 %v2142_v45, %v2141_v34  ;;  %v2144_v48 = vmul.f32 %v6571_v26, %v2118_v28  ;;  %v2211_v38 = vmul.f32 %v2193_v37, %v2166_v16  ;;  %v2195_v45 = vld [vmem:[#allocation18 + $0x30] sm:$0xff]  ;;  %v6583_v28 = vld [vmem:[%s7216_s20 + $0x38] sm:$0xff] }
 0x643   : > { %4310 = vmatpush1.bf16.msra.mxu0 %v4309_v42  ;;  %v2143_v42 = vmul.f32 %v6577_v17, %v2116_v59  ;;  %7346 = vst [vmem:[#allocation32_spill] sm:$0xff] %v6583_v28  ;;  %v2146_v16 = vmul.f32 %v6583_v28, %v2122_v32  ;;  %v6591_v59 = vld [vmem:[%s7216_s20 + $0x30] sm:$0xff]  ;;  %v2200_v28 = vld [vmem:[#allocation18 + $0x58] sm:$0xff] }
 0x644   : > { %v4311_v11 = vpack.c.bf16 %v2210_v63, %v2209_v21  ;;  %v2196_v21 = vld [vmem:[#allocation18 + $0x38] sm:$0xff]  ;;  %v2199_v32 = vld [vmem:[#allocation18 + $0x50] sm:$0xff] }
 0x645   : > { %v2168_v47 = vpop.permute.xlu0 %2167  ;;  %v2170_v51 = vpop.permute.xlu1 %2169  ;;  %v4317_v34 = vpack.c.bf16 %v2144_v48, %v2143_v42 }
 0x646   : > { %v2212_v23 = vmul.f32 %v2194_v57, %v2168_v47  ;;  %4312 = vmatprep.subr.bf16.mxu0 %v4311_v11  ;;  %v2213_v11 = vmul.f32 %v2195_v45, %v2170_v51  ;;  %v7347_v51 = vpack.c.bf16 %v6355_v52, %v6353_v31  ;;  %v6602_v45 = vld [vmem:[%s7216_s20 + $0x58] sm:$0xff]  ;;  %v2201_v52 = vld [vmem:[#allocation18 + $0x60] sm:$0xff] }
 0x647   : > { %4314 = vmatpush1.bf16.msra.mxu0 %v4313_v62  ;;  %v2145_v62 = vmul.f32 %v6591_v59, %v2120_v10  ;;  %v2150_v10 = vmul.f32 %v6602_v45, %v6530_v30 }
 0x648   : > { %v4315_v63 = vpack.c.bf16 %v2212_v23, %v2211_v38 }
 0x649   : > { %v2172_v37 = vpop.permute.xlu0 %2171  ;;  %v6586_v57 = vpop.permute.xlu1 %2023  ;;  %v4321_v38 = vpack.c.bf16 %v2146_v16, %v2145_v62 }
 0x64a   : > { %v2214_v47 = vmul.f32 %v2196_v21, %v2172_v37  ;;  %4316 = vmatprep.subr.bf16.mxu0 %v4315_v63  ;;  %v6609_v37 = vld [vmem:[%s7216_s20 + $0x50] sm:$0xff] }
 0x64b   : > { %4318 = vmatpush1.bf16.msra.mxu0 %v4317_v34  ;;  %7348 = vst [vmem:[#allocation33_spill] sm:$0xff] %v6609_v37  ;;  %v2149_v31 = vmul.f32 %v6609_v37, %v6528_v2  ;;  %v2529_v37 = vld [vmem:[#allocation16 + $0xd8] sm:$0xff] }
 0x64c   : > { %v4319_v48 = vpack.c.bf16 %v2214_v47, %v2213_v11  ;;  %v7349_v11 = vpack.c.bf16 %v6351_v58, %v6346_v1  ;;  %v2202_v47 = vld [vmem:[#allocation18 + $0x68] sm:$0xff]  ;;  %v6626_v1 = vld [vmem:[%s7216_s20 + $0x60] sm:$0xff] }
 0x64d   : > { %v6594_v23 = vpop.permute.xlu0 %2025  ;;  %v2174_v42 = vpop.permute.xlu1 %2173  ;;  %v4329_v30 = vpack.c.bf16 %v2150_v10, %v2149_v31  ;;  %7351 = vst [vmem:[#allocation35_spill] sm:$0xff] %v6626_v1  ;;  %v2151_v58 = vmul.f32 %v6626_v1, %v6532_v40  ;;  %v2204_v10 = vld [vmem:[#allocation18 + $0x78] sm:$0xff]  ;;  %v6640_v40 = vld [vmem:[%s7216_s20 + $0x70] sm:$0xff] }
 0x64e   : > { %4320 = vmatprep.subr.bf16.mxu0 %v4319_v48  ;;  %v2217_v34 = vmul.f32 %v2199_v32, %v2174_v42  ;;  %7353 = vst [vmem:[#allocation37_spill] sm:$0xff] %v6640_v40  ;;  %v2516_v1 = vld [vmem:[#allocation16 + $0x70] sm:$0xff] }
 0x64f   : > { %4322 = vmatpush1.bf16.msra.mxu0 %v4321_v38 }
 0x650   : > { %4324 = vmatprep.subr.bf16.mxu0 %v7347_v51  ;;  %v2203_v51 = vld [vmem:[#allocation18 + $0x70] sm:$0xff] }
 0x651   : > { %v2176_v21 = vpop.permute.xlu0 %2175  ;;  %v2178_v63 = vpop.permute.xlu1 %2177 }
 0x652   : > { %v2218_v16 = vmul.f32 %v2200_v28, %v2176_v21  ;;  %v6619_v28 = vld [vmem:[%s7216_s20 + $0x68] sm:$0xff]  ;;  %v2219_v32 = vmul.f32 %v2201_v52, %v2178_v63 }
 0x653   : > { %4326 = vmatpush1.bf16.msra.mxu0 %v7349_v11  ;;  %7350 = vst [vmem:[#allocation34_spill] sm:$0xff] %v6619_v28  ;;  %v2152_v48 = vmul.f32 %v6619_v28, %v6534_v9  ;;  %v6633_v9 = vld [vmem:[%s7216_s20 + $0x78] sm:$0xff] }
 0x654   : > { %v4327_v62 = vpack.c.bf16 %v2218_v16, %v2217_v34  ;;  %7352 = vst [vmem:[#allocation36_spill] sm:$0xff] %v6633_v9  ;;  %v2154_v63 = vmul.f32 %v6633_v9, %v6538_v18  ;;  %v6647_v18 = vld [vmem:[%s7216_s20 + $0x88] sm:$0xff]  ;;  %v2514_v9 = vld [vmem:[#allocation16 + $0x60] sm:$0xff] }
 0x655   : > { %v2180_v38 = vpop.permute.xlu0 %2179  ;;  %v2182_v42 = vpop.permute.xlu1 %2181  ;;  %v4333_v34 = vpack.c.bf16 %v2152_v48, %v2151_v58  ;;  %7354 = vst [vmem:[#allocation38_spill] sm:$0xff] %v6647_v18  ;;  %v2503_v58 = vld [vmem:[#allocation16 + $0x8] sm:$0xff] }
 0x656   : > { %v2220_v2 = vmul.f32 %v2202_v47, %v2180_v38  ;;  %4328 = vmatprep.subr.bf16.mxu0 %v4327_v62  ;;  %v2221_v52 = vmul.f32 %v2203_v51, %v2182_v42  ;;  %v2153_v47 = vmul.f32 %v6640_v40, %v6536_v44  ;;  %v2205_v62 = vld [vmem:[#allocation18 + $0x80] sm:$0xff]  ;;  %v2156_v42 = vmul.f32 %v6647_v18, %v6542_v4  ;;  %v2505_v51 = vld [vmem:[#allocation16 + $0x18] sm:$0xff]  ;;  %v2508_v40 = vld [vmem:[#allocation16 + $0x30] sm:$0xff] }
 0x657   : > { %4330 = vmatpush1.bf16.msra.mxu0 %v4329_v30  ;;  %v2206_v30 = vld [vmem:[#allocation18 + $0x88] sm:$0xff]  ;;  %v6654_v44 = vld [vmem:[%s7216_s20 + $0x80] sm:$0xff] }
 0x658   : > { %v4331_v21 = vpack.c.bf16 %v2220_v2, %v2219_v32  ;;  %v4337_v38 = vpack.c.bf16 %v2154_v63, %v2153_v47  ;;  %7355 = vst [vmem:[#allocation39_spill] sm:$0xff] %v6654_v44  ;;  %v2506_v18 = vld [vmem:[#allocation16 + $0x20] sm:$0xff] }
 0x659   : > { %v2184_v16 = vpop.permute.xlu0 %2183  ;;  %v2186_v31 = vpop.permute.xlu1 %2185 }
 0x65a   : > { %v2222_v11 = vmul.f32 %v2204_v10, %v2184_v16  ;;  %4332 = vmatprep.subr.bf16.mxu0 %v4331_v21  ;;  %v2223_v10 = vmul.f32 %v2205_v62, %v2186_v31  ;;  %v4375_v31 = vpack.c.bf16 %v2505_v51, %v2503_v58  ;;  %v2502_v62 = vld [vmem:[#allocation16] sm:$0xff]  ;;  %v4786_v51 = vld [vmem:[%s7215_s19 + $0xb0] sm:$0xff] }
 0x65b   : > { %4334 = vmatpush1.bf16.msra.mxu0 %v4333_v34  ;;  %v2155_v34 = vmul.f32 %v6654_v44, %v6540_v39 }
 0x65c   : > { %v4335_v48 = vpack.c.bf16 %v2222_v11, %v2221_v52 }
 0x65d   : > { %v2188_v32 = vpop.permute.xlu0 %2187  ;;  %v2028_v2 = vpop.permute.xlu1 %2027  ;;  %v4341_v52 = vpack.c.bf16 %v2156_v42, %v2155_v34  ;;  %v6682_v34 = vld [vmem:[#allocation6] sm:$0xff] }
 0x65e   : > { %v2224_v21 = vmul.f32 %v2206_v30, %v2188_v32  ;;  %4336 = vmatprep.subr.bf16.mxu0 %v4335_v48  ;;  %v2031_v4 = vsel %vm910_vm5, %v6586_v57, %v2028_v2  ;;  %v2033_v16 = vsel %vm910_vm5, %v2028_v2, %v6586_v57  ;;  %v2504_v30 = vld [vmem:[#allocation16 + $0x10] sm:$0xff]  ;;  %v2509_v32 = vld [vmem:[#allocation16 + $0x38] sm:$0xff]  ;;  %v4784_v57 = vld [vmem:[%s7215_s19 + $0xa0] sm:$0xff] }
 0x65f   : > { %4338 = vmatpush1.bf16.msra.mxu0 %v4337_v38  ;;  %v2507_v38 = vld [vmem:[#allocation16 + $0x28] sm:$0xff]  ;;  %v2091_v42 = vmul.f32 %v4784_v57, %v2031_v4  ;;  %v4377_v4 = vpack.c.bf16 %v2504_v30, %v2502_v62  ;;  %v4381_v30 = vpack.c.bf16 %v2508_v40, %v2506_v18  ;;  %v4788_v40 = vld [vmem:[%s7215_s19 + $0xc0] sm:$0xff] }
 0x660   : > { %v4339_v63 = vpack.c.bf16 %v2224_v21, %v2223_v10  ;;  %v4785_v2 = vld [vmem:[%s7215_s19 + $0xa8] sm:$0xff]  ;;  %v4379_v44 = vpack.c.bf16 %v2509_v32, %v2507_v38 }
 0x661   : > { %v2030_v11 = vpop.permute.xlu0 %2029  ;;  %v2036_v47 = vpop.permute.xlu1 %2035  ;;  %v2092_v58 = vmul.f32 %v4785_v2, %v2033_v16 }
 0x662   : > { %v2032_v39 = vsel %vm910_vm5, %v6594_v23, %v2030_v11  ;;  %v2034_v48 = vsel %vm910_vm5, %v2030_v11, %v6594_v23  ;;  %4340 = vmatprep.subr.bf16.mxu0 %v4339_v63  ;;  %v4787_v23 = vld [vmem:[%s7215_s19 + $0xb8] sm:$0xff]  ;;  %v6684_v63 = vld [vmem:[#allocation6 + $0x18] sm:$0xff] }
 0x663   : > { %v2093_v10 = vmul.f32 %v4786_v51, %v2032_v39  ;;  %v2094_v21 = vmul.f32 %v4787_v23, %v2034_v48  ;;  %4342 = vmatpush1.bf16.msra.mxu0 %v4341_v52  ;;  %v2511_v39 = vld [vmem:[#allocation16 + $0x48] sm:$0xff]  ;;  %v2513_v51 = vld [vmem:[#allocation16 + $0x58] sm:$0xff]  ;;  %v6689_v52 = vld [vmem:[#allocation6 + $0x10] sm:$0xff] }
 0x664   : > { %4376 = vmatprep.subr.bf16.mxu0 %v4375_v31  ;;  %v4383_v32 = vpack.c.bf16 %v2513_v51, %v2511_v39  ;;  %v7358_v39 = vmov 0.0  }
 0x665   : > { %v4293_v11 = vpack.c.bf16 %v2093_v10, %v2091_v42  ;;  %v2038_v57 = vpop.permute.xlu0 %2037  ;;  %v2040_v16 = vpop.permute.xlu1 %2039  ;;  %v4291_v2 = vpack.c.bf16 %v2094_v21, %v2092_v58  ;;  %v2510_v42 = vld [vmem:[#allocation16 + $0x40] sm:$0xff]  ;;  %v2512_v58 = vld [vmem:[#allocation16 + $0x50] sm:$0xff]  ;;  %v2515_v21 = vld [vmem:[#allocation16 + $0x68] sm:$0xff] }
 0x666   : > { %2389 = vmatmul.mubr.f32.vlgmr.msra.gmra.mrb[14].mxu0 %v6682_v34  ;;  %v2043_v31 = vsel %vm923_vm6, %v2036_v47, %v2040_v16  ;;  %v2045_v62 = vsel %vm923_vm6, %v2040_v16, %v2036_v47  ;;  %v4385_v51 = vpack.c.bf16 %v2512_v58, %v2510_v42 }
 0x667   : > { %4292 = vmatprep.subr.bf16.mxu1 %v4291_v2  ;;  %3736 = vmatprep.mubr.msk.f32.mxu0 %vm1217_vm4, %v6684_v63  ;;  %v2517_v2 = vld [vmem:[#allocation16 + $0x78] sm:$0xff]  ;;  %v2095_v18 = vmul.f32 %v4788_v40, %v2043_v31 }
 0x668   : > { %4294 = vmatpush1.bf16.msra.mxu1 %v4293_v11  ;;  %4378 = vmatpush1.bf16.msra.mxu0 %v4377_v4  ;;  %v6709_v4 = vld [vmem:[%s7215_s19 + $0xd0] sm:$0xff] }
 0x669   : > { %v2042_v48 = vpop.permute.xlu0 %2041  ;;  %v2048_v38 = vpop.permute.xlu1 %2047  ;;  %4380 = vmatprep.subr.bf16.mxu0 %v4379_v44  ;;  %v4789_v44 = vld [vmem:[%s7215_s19 + $0xc8] sm:$0xff]  ;;  %7356 = vst [vmem:[#allocation40_spill] sm:$0xff] %v6709_v4 }
 0x66a   : > { %v2044_v10 = vsel %vm923_vm6, %v2038_v57, %v2042_v48  ;;  %v2046_v23 = vsel %vm923_vm6, %v2042_v48, %v2038_v57  ;;  %2395 = vmatmul.mubr.f32.gmra.mrb[16].mxu0 %v6689_v52  ;;  %v2096_v47 = vmul.f32 %v4789_v44, %v2045_v62  ;;  %v6715_v57 = vld [vmem:[%s7215_s19 + $0xd8] sm:$0xff]  ;;  %v4387_v44 = vpack.c.bf16 %v2517_v2, %v2515_v21  ;;  %v2520_v21 = vld [vmem:[#allocation16 + $0x90] sm:$0xff] }
 0x66b   : > { %v2097_v11 = vmul.f32 %v6709_v4, %v2044_v10  ;;  %7357 = vst [vmem:[#allocation41_spill] sm:$0xff] %v6715_v57  ;;  %v2098_v16 = vmul.f32 %v6715_v57, %v2046_v23  ;;  %2598 = vmatprep.mubr.f32.mxu0 %v7358_v39  ;;  %v2519_v10 = vld [vmem:[#allocation16 + $0x88] sm:$0xff]  ;;  %v2521_v4 = vld [vmem:[#allocation16 + $0x98] sm:$0xff] }
 0x66c   : > { %4382 = vmatpush1.bf16.msra.mxu0 %v4381_v30  ;;  %v4389_v30 = vpack.c.bf16 %v2516_v1, %v2514_v9  ;;  %v6736_v9 = vld [vmem:[%s7215_s19 + $0xe8] sm:$0xff] }
 0x66d   : > { %v4297_v31 = vpack.c.bf16 %v2097_v11, %v2095_v18  ;;  %v2050_v62 = vpop.permute.xlu0 %2049  ;;  %v2052_v48 = vpop.permute.xlu1 %2051  ;;  %v4295_v40 = vpack.c.bf16 %v2098_v16, %v2096_v47  ;;  %4384 = vmatprep.subr.bf16.mxu0 %v4383_v32  ;;  %v4391_v18 = vpack.c.bf16 %v2521_v4, %v2519_v10  ;;  %v2518_v32 = vld [vmem:[#allocation16 + $0x80] sm:$0xff]  ;;  %v2523_v11 = vld [vmem:[#allocation16 + $0xa8] sm:$0xff]  ;;  %v2525_v16 = vld [vmem:[#allocation16 + $0xb8] sm:$0xff]  ;;  %7360 = vst [vmem:[#allocation43_spill] sm:$0xff] %v6736_v9 }
 0x66e   : > { %v2055_v28 = vsel %vm936_vm7, %v2048_v38, %v2052_v48  ;;  %v2057_v23 = vsel %vm936_vm7, %v2052_v48, %v2048_v38  ;;  %v6730_v38 = vld [vmem:[%s7215_s19 + $0xe0] sm:$0xff]  ;;  %v4393_v48 = vpack.c.bf16 %v2520_v21, %v2518_v32  ;;  %v2527_v57 = vld [vmem:[#allocation16 + $0xc8] sm:$0xff] }
 0x66f   : > { %4296 = vmatprep.subr.bf16.mxu1 %v4295_v40  ;;  %7359 = vst [vmem:[#allocation42_spill] sm:$0xff] %v6730_v38  ;;  %v2099_v1 = vmul.f32 %v6730_v38, %v2055_v28  ;;  %v2100_v4 = vmul.f32 %v6736_v9, %v2057_v23  ;;  %v2522_v9 = vld [vmem:[#allocation16 + $0xa0] sm:$0xff]  ;;  %v2524_v38 = vld [vmem:[#allocation16 + $0xb0] sm:$0xff]  ;;  %v4399_v21 = vpack.c.bf16 %v2529_v37, %v2527_v57 }
 0x670   : > { %4298 = vmatpush1.bf16.msra.mxu1 %v4297_v31  ;;  %4386 = vmatpush1.bf16.msra.mxu0 %v4385_v51  ;;  %v6742_v51 = vld [vmem:[%s7215_s19 + $0xf0] sm:$0xff] }
 0x671   : > { %v2054_v42 = vpop.permute.xlu0 %2053  ;;  %v2060_v58 = vpop.permute.xlu1 %2059  ;;  %4388 = vmatprep.subr.bf16.mxu0 %v4387_v44  ;;  %7361 = vst [vmem:[#allocation44_spill] sm:$0xff] %v6742_v51  ;;  %v6774_v57 = vld [vmem:[%s7215_s19 + $0x110] sm:$0xff] }
 0x672   : > { %v2056_v2 = vsel %vm936_vm7, %v2050_v62, %v2054_v42  ;;  %v2058_v47 = vsel %vm936_vm7, %v2054_v42, %v2050_v62  ;;  %v6748_v62 = vld [vmem:[%s7215_s19 + $0xf8] sm:$0xff]  ;;  %v4395_v42 = vpack.c.bf16 %v2525_v16, %v2523_v11 }
 0x673   : > { %v2101_v31 = vmul.f32 %v6742_v51, %v2056_v2  ;;  %v2102_v28 = vmul.f32 %v6748_v62, %v2058_v47  ;;  %v2526_v47 = vld [vmem:[#allocation16 + $0xc0] sm:$0xff] }
 0x674   : > { %4390 = vmatpush1.bf16.msra.mxu0 %v4389_v30  ;;  %v4397_v30 = vpack.c.bf16 %v2524_v38, %v2522_v9  ;;  %v6768_v38 = vld [vmem:[%s7215_s19 + $0x108] sm:$0xff] }
 0x675   : > { %v4301_v40 = vpack.c.bf16 %v2101_v31, %v2099_v1  ;;  %v2062_v44 = vpop.permute.xlu0 %2061  ;;  %v2064_v10 = vpop.permute.xlu1 %2063  ;;  %v4299_v23 = vpack.c.bf16 %v2102_v28, %v2100_v4  ;;  %4392 = vmatprep.subr.bf16.mxu0 %v4391_v18  ;;  %v2528_v18 = vld [vmem:[#allocation16 + $0xd0] sm:$0xff]  ;;  %v6762_v1 = vld [vmem:[%s7215_s19 + $0x100] sm:$0xff]  ;;  %v6780_v4 = vld [vmem:[%s7215_s19 + $0x118] sm:$0xff] }
 0x676   : > { %v2067_v2 = vsel %vm949_vm8, %v2060_v58, %v2064_v10  ;;  %v2069_v51 = vsel %vm949_vm8, %v2064_v10, %v2060_v58  ;;  %v4401_v28 = vpack.c.bf16 %v2528_v18, %v2526_v47 }
 0x677   : > { %4300 = vmatprep.subr.bf16.mxu1 %v4299_v23  ;;  %v2103_v58 = vmul.f32 %v6762_v1, %v2067_v2  ;;  %v2104_v37 = vmul.f32 %v6768_v38, %v2069_v51  ;;  %v2530_v51 = vld [vmem:[#allocation16 + $0xe0] sm:$0xff] }
 0x678   : > { %4302 = vmatpush1.bf16.msra.mxu1 %v4301_v40  ;;  %4394 = vmatpush1.bf16.msra.mxu0 %v4393_v48  ;;  %v2686_v23 = vld [vmem:[#allocation15] sm:$0xff] }
 0x679   : > { %v2066_v32 = vpop.permute.xlu0 %2065  ;;  %4396 = vmatprep.subr.bf16.mxu0 %v4395_v42  ;;  %v2687_v42 = vld [vmem:[#allocation15 + $0x8] sm:$0xff] }
 0x67a   : > { %v2068_v11 = vsel %vm949_vm8, %v2062_v44, %v2066_v32  ;;  %v2070_v16 = vsel %vm949_vm8, %v2066_v32, %v2062_v44  ;;  %v2532_v44 = vld [vmem:[#allocation16 + $0xf0] sm:$0xff]  ;;  %v4439_v2 = vpack.c.bf16 %v2687_v42, %v2686_v23 }
 0x67b   : > { %v2105_v9 = vmul.f32 %v6774_v57, %v2068_v11  ;;  %v2106_v31 = vmul.f32 %v6780_v4, %v2070_v16  ;;  %v4405_v10 = vpack.c.bf16 %v2532_v44, %v2530_v51  ;;  %v2688_v11 = vld [vmem:[#allocation15 + $0x10] sm:$0xff]  ;;  %v2689_v16 = vld [vmem:[#allocation15 + $0x18] sm:$0xff]  ;;  %v2691_v51 = vld [vmem:[#allocation15 + $0x28] sm:$0xff] }
 0x67c   : > { %4398 = vmatpush1.bf16.msra.mxu0 %v4397_v30 }
 0x67d   : > { %v4305_v48 = vpack.c.bf16 %v2105_v9, %v2103_v58  ;;  %v4303_v40 = vpack.c.bf16 %v2106_v31, %v2104_v37  ;;  %4400 = vmatprep.subr.bf16.mxu0 %v4399_v21 }
 0x67f   : > { %4304 = vmatprep.subr.bf16.mxu1 %v4303_v40 }
 0x680   : > { %4306 = vmatpush1.bf16.msra.mxu1 %v4305_v48  ;;  %4402 = vmatpush1.bf16.msra.mxu0 %v4401_v28 }
 0x681   : > { %4344 = vmatprep.subr.bf16.mxu1 %v6196_v25 }
 0x683   : > { %2312 = vmatmul.mubr.f32.vlgmr.msra.gmra.mrb[20].mxu1 %v6682_v34  ;;  %v2531_v34 = vld [vmem:[#allocation16 + $0xe8] sm:$0xff] }
 0x684   : > { %3734 = vmatprep.mubr.msk.f32.mxu1 %vm1217_vm4, %v6684_v63  ;;  %4346 = vmatpush1.bf16.msra.mxu1 %v6199_v5  ;;  %v2533_v63 = vld [vmem:[#allocation16 + $0xf8] sm:$0xff] }
 0x685   : > { %4348 = vmatprep.subr.bf16.mxu1 %v6203_v15 }
 0x686   : > { %v6805_v30 = vpop.permute.xlu1 %2233 }
 0x687   : > { %2318 = vmatmul.mubr.f32.gmra.mrb[22].mxu1 %v6689_v52  ;;  %v4403_v52 = vpack.c.bf16 %v2533_v63, %v2531_v34  ;;  %v4443_v63 = vpack.c.bf16 %v2689_v16, %v2688_v11  ;;  %v2696_v11 = vld [vmem:[#allocation15 + $0x50] sm:$0xff]  ;;  %v2697_v16 = vld [vmem:[#allocation15 + $0x58] sm:$0xff] }
 0x688   : > { %4350 = vmatpush1.bf16.msra.mxu1 %v6208_v24  ;;  %2489 = vmatprep.mubr.f32.mxu1 %v7358_v39 }
 0x689   : > { %4352 = vmatprep.subr.bf16.mxu1 %v6211_v6  ;;  %4404 = vmatprep.subr.bf16.mxu0 %v4403_v52  ;;  %v2690_v52 = vld [vmem:[#allocation15 + $0x20] sm:$0xff] }
 0x68a   : > { %4406 = vmatpush1.bf16.msra.mxu0 %v4405_v10  ;;  %v6809_v58 = vpop.permute.xlu0 %2238  ;;  %v4447_v42 = vpack.c.bf16 %v2691_v51, %v2690_v52 }
 0x68b   : > { %4440 = vmatprep.subr.bf16.mxu0 %v4439_v2 }
 0x68c   : > { %4354 = vmatpush1.bf16.msra.mxu1 %v6216_v22 }
 0x68d   : > { %4356 = vmatprep.subr.bf16.mxu1 %v6220_v33 }
 0x690   : > { %4358 = vmatpush1.bf16.msra.mxu1 %v6224_v43 }
 0x691   : > { %4360 = vmatprep.subr.bf16.mxu1 %v6228_v50 }
 0x694   : > { %4362 = vmatpush1.bf16.msra.mxu1 %v6232_v54 }
 0x695   : > { %4364 = vmatprep.subr.bf16.mxu1 %v6236_v56 }
 0x698   : > { %4366 = vmatpush1.bf16.msra.mxu1 %v6240_v60 }
 0x699   : > { %4368 = vmatprep.subr.bf16.mxu1 %v6244_v61 }
 0x69c   : > { %4370 = vmatpush1.bf16.msra.mxu1 %v6248_v46 }
 0x69d   : > { %4372 = vmatprep.subr.bf16.mxu1 %v6252_v0 }
 0x6a0   : > { %4374 = vmatpush1.bf16.msra.mxu1 %v6254_v12 }
 0x6a1   : > { %4408 = vmatprep.subr.bf16.mxu1 %v5669_v3 }
 0x739   : > { %v2390_v32 = vpop.f32.mrb[14].mxu0 }
 0x73a   : > { %v2391_v21 = vadd.f32 %v2390_v32, %v6805_v30  ;;  %v2392_v47 = vpop.f32.mrb[15].mxu0 }
 0x73b   : > { %v2393_v3 = vadd.f32 %v2392_v47, %v6805_v30  ;;  %v2693_v47 = vld [vmem:[#allocation15 + $0x38] sm:$0xff] }
 0x73c   : > { %vm2403_vm11 = vcmp.ge.f32.partialorder %v2391_v21, 0.0  ;;  %v2411_v18 = vmul.f32 0.2, %v2391_v21 }
 0x73d   : > { %vm2404_vm12 = vcmp.ge.f32.partialorder %v2393_v3, 0.0  ;;  %v2412_v37 = vmul.f32 0.2, %v2393_v3  ;;  %v2396_v9 = vpop.f32.mrb[16].mxu0 }
 0x73e   : > { %v2419_v31 = vsel %vm2403_vm11, %v2391_v21, %v2411_v18  ;;  %v2397_v28 = vadd.f32 %v2396_v9, %v6809_v58  ;;  %v2398_v48 = vpop.f32.mrb[17].mxu0  ;;  %v2701_v9 = vld [vmem:[#allocation15 + $0x78] sm:$0xff] }
 0x73f   : > { %v2420_v40 = vsel %vm2404_vm12, %v2393_v3, %v2412_v37  ;;  %v2399_v34 = vadd.f32 %v2398_v48, %v6809_v58  ;;  %2490 = vmatmul.mubr.f32.vlgmr.msra.gmra.mrb[24].mxu1 %v2419_v31  ;;  %v2695_v3 = vld [vmem:[#allocation15 + $0x48] sm:$0xff] }
 0x740   : > { %v2415_v44 = vmul.f32 0.2, %v2397_v28  ;;  %4410 = vmatpush3.bf16.msra.mxu1 %v5680_v7  ;;  %2599 = vmatmul.mubr.f32.vlgmr.msra.gmra.mrb[18].mxu0 %v2420_v40  ;;  %vm2407_vm13 = vcmp.ge.f32.partialorder %v2397_v28, 0.0  ;;  %v2692_v7 = vld [vmem:[#allocation15 + $0x30] sm:$0xff]  ;;  %v2699_v37 = vld [vmem:[#allocation15 + $0x68] sm:$0xff] }
 0x741   : > { %v2416_v10 = vmul.f32 0.2, %v2399_v34  ;;  %4442 = vmatpush3.bf16.msra.mxu0 %v4439_v2  ;;  %2495 = vmatprep.mubr.f32.mxu1 %v7358_v39  ;;  %vm2408_vm14 = vcmp.ge.f32.partialorder %v2399_v34, 0.0  ;;  %v2694_v2 = vld [vmem:[#allocation15 + $0x40] sm:$0xff] }
 0x742   : > { %4412 = vmatprep.subr.bf16.mxu1 %v5682_v8  ;;  %v2423_v23 = vsel %vm2407_vm13, %v2397_v28, %v2415_v44  ;;  %2604 = vmatprep.mubr.f32.mxu0 %v7358_v39  ;;  %v4451_v8 = vpack.c.bf16 %v2693_v47, %v2692_v7  ;;  %v4455_v18 = vpack.c.bf16 %v2695_v3, %v2694_v2  ;;  %vm2791_vm13 = vcmask 392192  }
 0x743   : > { %2496 = vmatmul.mubr.f32.gmra.mrb[26].mxu1 %v2423_v23  ;;  %v6817_v32 = vpack.c.bf16 %v2423_v23, %v2419_v31  ;;  %4444 = vmatprep.subr.bf16.mxu0 %v4443_v63  ;;  %v6819_v21 = vsel %vm2408_vm14, %v2399_v34, %v2416_v10  ;;  %v7362_v31 = vld [vmem:[#allocation26_spill] sm:$0xff]  ;;  %v7364_v34 = vld [vmem:[#allocation28_spill] sm:$0xff] }
 0x744   : > { %4414 = vmatpush3.bf16.msra.mxu1 %v5698_v13  ;;  %2605 = vmatmul.mubr.f32.gmra.mrb[20].mxu0 %v6819_v21  ;;  %v4459_v13 = vpack.c.bf16 %v2697_v16, %v2696_v11 }
 0x745   : > { %4446 = vmatpush3.bf16.msra.mxu0 %v4443_v63  ;;  %4014 = vmatprep.mubr.f32.mxu0 %v2420_v40 }
 0x746   : > { %4416 = vmatprep.subr.bf16.mxu1 %v5702_v14  ;;  %4448 = vmatprep.subr.bf16.mxu0 %v4447_v42  ;;  %v2698_v14 = vld [vmem:[#allocation15 + $0x60] sm:$0xff] }
 0x748   : > { %4418 = vmatpush3.bf16.msra.mxu1 %v5722_v19  ;;  %v4463_v19 = vpack.c.bf16 %v2699_v37, %v2698_v14 }
 0x749   : > { %4450 = vmatpush3.bf16.msra.mxu0 %v4447_v42  ;;  %4420 = vmatprep.subr.bf16.mxu1 %v5725_v20  ;;  %v2700_v20 = vld [vmem:[#allocation15 + $0x70] sm:$0xff] }
 0x74a   : > { %4452 = vmatprep.subr.bf16.mxu0 %v4451_v8  ;;  %v7366_v42 = vld [vmem:[#allocation30_spill] sm:$0xff] }
 0x74c   : > { %4422 = vmatpush3.bf16.msra.mxu1 %v5745_v27  ;;  %v7363_v27 = vld [vmem:[#allocation27_spill] sm:$0xff] }
 0x74d   : > { %4454 = vmatpush3.bf16.msra.mxu0 %v4451_v8  ;;  %4424 = vmatprep.subr.bf16.mxu1 %v5752_v29  ;;  %v4467_v29 = vpack.c.bf16 %v2701_v9, %v2700_v20 }
 0x74e   : > { %4456 = vmatprep.subr.bf16.mxu0 %v4455_v18 }
 0x750   : > { %4426 = vmatpush3.bf16.msra.mxu1 %v5771_v35 }
 0x751   : > { %4458 = vmatpush3.bf16.msra.mxu0 %v4455_v18  ;;  %4428 = vmatprep.subr.bf16.mxu1 %v5776_v36  ;;  %v7365_v36 = vld [vmem:[#allocation29_spill] sm:$0xff] }
 0x752   : > { %4460 = vmatprep.subr.bf16.mxu0 %v4459_v13 }
 0x754   : > { %4430 = vmatpush3.bf16.msra.mxu1 %v7362_v31 }
 0x755   : > { %4462 = vmatpush3.bf16.msra.mxu0 %v4459_v13  ;;  %4432 = vmatprep.subr.bf16.mxu1 %v7363_v27 }
 0x756   : > { %v2313_v28 = vpop.f32.mrb[20].mxu1  ;;  %4464 = vmatprep.subr.bf16.mxu0 %v4463_v19 }
 0x757   : > { %v2314_v48 = vadd.f32 %v2313_v28, %v6805_v30  ;;  %v2315_v40 = vpop.f32.mrb[21].mxu1 }
 0x758   : > { %v2316_v35 = vadd.f32 %v2315_v40, %v6805_v30  ;;  %4434 = vmatpush3.bf16.msra.mxu1 %v7364_v34 }
 0x759   : > { %4466 = vmatpush3.bf16.msra.mxu0 %v4463_v19  ;;  %4436 = vmatprep.subr.bf16.mxu1 %v7365_v36  ;;  %v2409_v63 = vmul.f32 0.2, %v2314_v48  ;;  %vm2401_vm10 = vcmp.ge.f32.partialorder %v2314_v48, 0.0 }
 0x75a   : > { %v2410_v52 = vmul.f32 0.2, %v2316_v35  ;;  %v2319_v51 = vpop.f32.mrb[22].mxu1  ;;  %4468 = vmatprep.subr.bf16.mxu0 %v4467_v29  ;;  %vm2402_vm9 = vcmp.ge.f32.partialorder %v2316_v35, 0.0 }
 0x75b   : > { %v2320_v44 = vadd.f32 %v2319_v51, %v6809_v58  ;;  %v2321_v10 = vpop.f32.mrb[23].mxu1  ;;  %v2417_v47 = vsel %vm2401_vm10, %v2314_v48, %v2409_v63  ;;  %v2778_v48 = vld [vmem:[#allocation7 + $0x8] sm:$0xff] }
 0x75c   : > { %v2322_v23 = vadd.f32 %v2321_v10, %v6809_v58  ;;  %4438 = vmatpush3.bf16.msra.mxu1 %v7366_v42  ;;  %v2418_v7 = vsel %vm2402_vm9, %v2316_v35, %v2410_v52  ;;  %v7367_v42 = vmov 0.0|0.0  }
 0x75d   : > { %v2413_v30 = vmul.f32 0.2, %v2320_v44  ;;  %4470 = vmatpush3.bf16.msra.mxu0 %v4467_v29  ;;  %2675 = vmatprep.mubr.f32.mxu1 %v2418_v7  ;;  %vm2405_vm11 = vcmp.ge.f32.partialorder %v2320_v44, 0.0  ;;  %v2777_v29 = vld [vmem:[#allocation7] sm:$0xff] }
 0x75e   : > { %v2414_v8 = vmul.f32 0.2, %v2322_v23  ;;  %vm2406_vm12 = vcmp.ge.f32.partialorder %v2322_v23, 0.0 }
 0x75f   : > { %2676 = vmatmul.mubr.f32.vlgmr.msra.gmra.mrb[28].mxu1 %v2417_v47  ;;  %v2421_v2 = vsel %vm2405_vm11, %v2320_v44, %v2413_v30 }
 0x760   : > { %4015 = vmatmul.mubr.f32.vlgmr.msra.gmra.mrb[22].mxu0 %v6819_v21  ;;  %v2422_v3 = vsel %vm2406_vm12, %v2322_v23, %v2414_v8  ;;  %v4473_v18 = vpack.c.bf16 %v2421_v2, %v2417_v47 }
 0x761   : > { %2680 = vmatprep.mubr.f32.mxu1 %v2422_v3  ;;  %v4471_v11 = vpack.c.bf16 %v2422_v3, %v2418_v7 }
 0x763   : > { %2681 = vmatmul.mubr.f32.gmra.mrb[30].mxu1 %v2421_v2  ;;  %4472 = vmatprep.subr.bf16.mxu1 %v4471_v11  ;;  %v2789_v2 = vpop.permute.xlu0 %2788 }
 0x764   : > { %4474 = vmatpush1.bf16.msra.mxu1 %v4473_v18  ;;  %2862 = vmatprep.mubr.f32.mxu1 %v7358_v39  ;;  %v2784_v18 = vpop.permute.xlu1 %2783 }
 0x812   : > { %v2491_v58 = vpop.f32.mrb[24].mxu1 }
 0x813   : > { %v2493_v16 = vpop.f32.mrb[25].mxu1  ;;  %v2600_v13 = vpop.f32.mrb[18].mxu0 }
 0x814   : > { %v2602_v14 = vpop.f32.mrb[19].mxu0 }
 0x816   : > { %v2497_v37 = vpop.f32.mrb[26].mxu1 }
 0x817   : > { %v4477_v19 = vpack.c.bf16 %v2497_v37, %v2491_v58  ;;  %v2499_v20 = vpop.f32.mrb[27].mxu1  ;;  %v2606_v9 = vpop.f32.mrb[20].mxu0 }
 0x818   : > { %v4475_v31 = vpack.c.bf16 %v2499_v20, %v2493_v16  ;;  %v4481_v27 = vpack.c.bf16 %v2606_v9, %v2600_v13  ;;  %v2608_v21 = vpop.f32.mrb[21].mxu0  ;;  %v4801_v9 = vld [vmem:[%s7216_s20 + $0x40] sm:$0xff] }
 0x819   : > { %v4479_v28 = vpack.c.bf16 %v2608_v21, %v2602_v14 }
 0x81a   : > { %4476 = vmatprep.subr.bf16.mxu1 %v4475_v31 }
 0x81b   : > { %4478 = vmatpush1.bf16.msra.mxu1 %v4477_v19  ;;  %v4800_v19 = vld [vmem:[%s7216_s20 + $0x48] sm:$0xff] }
 0x81c   : > { %4480 = vmatprep.subr.bf16.mxu1 %v4479_v28 }
 0x81f   : > { %4482 = vmatpush1.bf16.msra.mxu1 %v4481_v27 }
 0x822   : > { %3737 = vmatmul.mubr.msk.f32.vlgmr.msra.gmra.mrb[32].mxu1 %vm2791_vm13, %v2777_v29 }
 0x823   : > { %2868 = vmatprep.mubr.f32.mxu1 %v7358_v39 }
 0x826   : > { %3738 = vmatmul.mubr.msk.f32.gmra.mrb[34].mxu1 %vm2791_vm13, %v2778_v48 }
 0x827   : > { %4029 = vmatprep.mubr.msk.f32.mxu1 %vm2791_vm13, %v2777_v29  ;;  %v3151_v29 = vld [vmem:[#allocation9 + $0x8] sm:$0xff] }
 0x828   : > { %3741 = vmatprep.mubr.msk.f32.mxu0 %vm1217_vm4, %v3151_v29 }
 0x832   : > { %v3915_v40 = vpop.f32.mrb[28].mxu1 }
 0x833   : > { %v3916_v35 = vpop.f32.mrb[29].mxu1  ;;  %v4016_v34 = vpop.f32.mrb[22].mxu0 }
 0x834   : > { %v3917_v36 = vadd.f32 %v3916_v35, %v3915_v40  ;;  %v2768_v63 = vpop.f32.mrb[23].mxu0 }
 0x835   : > { %v4491_v52 = vpack.c.bf16 %v4016_v34, %v2768_v63 }
 0x836   : > { %v3918_v51 = vpop.f32.mrb[30].mxu1 }
 0x837   : > { %v3919_v44 = vpop.f32.mrb[31].mxu1 }
 0x838   : > { %v3920_v10 = vadd.f32 %v3919_v44, %v3918_v51 }
 0x83a   : > { %v4483_v23 = vpack.c.bf16 %v3920_v10, %v3917_v36 }
 0x83c   : > { %4484 = vmatprep.subr.bf16.mxu1 %v4483_v23 }
 0x83d   : > { %4486 = vmatpush3.bf16.msra.mxu1 %v4483_v23 }
 0x83e   : > { %4488 = vmatprep.subr.bf16.mxu1 %v6817_v32 }
 0x841   : > { %4490 = vmatpush3.bf16.msra.mxu1 %v6817_v32 }
 0x842   : > { %4492 = vmatprep.subr.bf16.mxu1 %v4491_v52 }
 0x845   : > { %4494 = vmatpush3.bf16.msra.mxu1 %v4491_v52 }
 0x846   : > { %4531 = vmatprep.subr.bf16.mxu1 %v7367_v42 }
 0x848   : > { %4030 = vmatmul.mubr.msk.f32.vlgmr.msra.gmra.mrb[36].mxu1 %vm2791_vm13, %v2778_v48 }
 0x849   : > { %3743 = vmatprep.mubr.msk.f32.mxu1 %vm1217_vm4, %v3151_v29 }
 0x8f5   : > { %v2864_v7 = vpop.f32.mrb[32].mxu1 }
 0x8f6   : > { %v2866_v30 = vpop.f32.mrb[33].mxu1  ;;  %v2865_v28 = vadd.f32 %v2864_v7, %v2784_v18 }
 0x8f7   : > { %v2867_v34 = vadd.f32 %v2866_v30, %v2784_v18  ;;  %v3422_v30 = vld [vmem:[%s7375_s12 + $0x8] sm:$0xff] }
 0x8f8   : > { %v2956_v35 = vmul.f32 0.2, %v2865_v28  ;;  %vm2950_vm11 = vcmp.ge.f32.partialorder %v2865_v28, 0.0 }
 0x8f9   : > { %v2870_v47 = vpop.f32.mrb[34].mxu1  ;;  %v2957_v51 = vmul.f32 0.2, %v2867_v34  ;;  %vm2951_vm13 = vcmp.ge.f32.partialorder %v2867_v34, 0.0 }
 0x8fa   : > { %v2872_v8 = vpop.f32.mrb[35].mxu1  ;;  %v2871_v21 = vadd.f32 %v2870_v47, %v2789_v2  ;;  %v6881_v52 = vsel %vm2950_vm11, %v2865_v28, %v2956_v35  ;;  %v3421_v47 = vld [vmem:[%s7375_s12] sm:$0xff] }
 0x8fb   : > { %v2873_v40 = vadd.f32 %v2872_v8, %v2789_v2  ;;  %v6889_v10 = vsel %vm2951_vm13, %v2867_v34, %v2957_v51 }
 0x8fc   : > { %v2959_v48 = vmul.f32 0.2, %v2871_v21  ;;  %vm2953_vm10 = vcmp.ge.f32.partialorder %v2871_v21, 0.0 }
 0x8fd   : > { %v2960_v63 = vmul.f32 0.2, %v2873_v40  ;;  %vm2954_vm12 = vcmp.ge.f32.partialorder %v2873_v40, 0.0 }
 0x8fe   : > { %v6879_v36 = vsel %vm2953_vm10, %v2871_v21, %v2959_v48  ;;  %v7377_v48 = vld [vmem:[#allocation32_spill] sm:$0xff] }
 0x8ff   : > { %v6887_v44 = vsel %vm2954_vm12, %v2873_v40, %v2960_v63 }
 0x91b   : > { %v4031_v3 = vpop.f32.mrb[36].mxu1 }
 0x91c   : > { %v2947_v11 = vadd.f32 %v4031_v3, %v2789_v2  ;;  %v2941_v58 = vpop.f32.mrb[37].mxu1 }
 0x91d   : > { %v2942_v16 = vadd.f32 %v2941_v58, %v2784_v18  ;;  %v7376_v18 = vld [vmem:[#allocation31_spill] sm:$0xff] }
 0x91e   : > { %vm2955_vm14 = vcmp.ge.f32.partialorder %v2947_v11, 0.0  ;;  %v2961_v13 = vmul.f32 0.2, %v2947_v11 }
 0x91f   : > { %vm2952_vm9 = vcmp.ge.f32.partialorder %v2942_v16, 0.0  ;;  %v2958_v32 = vmul.f32 0.2, %v2942_v16 }
 0x920   : > { %v2967_v14 = vsel %vm2955_vm14, %v2947_v11, %v2961_v13 }
 0x921   : > { %v2964_v37 = vsel %vm2952_vm9, %v2942_v16, %v2958_v32  ;;  %3102 = vrot.lane.b32.xlu0 %v2967_v14, %s7368_s11  ;;  %v6853_v20 = vmul.f32 %v4800_v19, %v2967_v14 }
 0x922   : > { %3100 = vrot.lane.b32.xlu1 %v2964_v37, %s7368_s11  ;;  %v6859_v31 = vmul.f32 %v4801_v9, %v2964_v37  ;;  %s7391_s11 = sshll.u32 %s7395_s30, 5 }
 0x924   : > { %v4544_v27 = vpack.c.bf16 %v6853_v20, %v6859_v31 }
 0x925   : > { %3106 = vrot.lane.b32.xlu0 %v2967_v14, %s7369_s6 }
 0x926   : > { %3104 = vrot.lane.b32.xlu1 %v2964_v37, %s7369_s6 }
 0x929   : > { %3110 = vrot.lane.b32.xlu0 %v2967_v14, %s7335_s0 }
 0x92a   : > { %3108 = vrot.lane.b32.xlu1 %v2964_v37, %s7335_s0  ;;  %s7371_s0 = smov 17  }
 0x92d   : > { %3114 = vrot.lane.b32.xlu0 %v2967_v14, %s7370_s8 }
 0x92e   : > { %3112 = vrot.lane.b32.xlu1 %v2964_v37, %s7370_s8 }
 0x931   : > { %3118 = vrot.lane.b32.xlu0 %v2967_v14, %s7336_s25 }
 0x932   : > { %3116 = vrot.lane.b32.xlu1 %v2964_v37, %s7336_s25 }
 0x935   : > { %3122 = vrot.lane.b32.xlu0 %v2967_v14, %s7337_s3 }
 0x936   : > { %3120 = vrot.lane.b32.xlu1 %v2964_v37, %s7337_s3  ;;  %s7372_s3 = smov 16  }
 0x939   : > { %3126 = vrot.lane.b32.xlu0 %v2967_v14, %s7338_s28 }
 0x93a   : > { %3124 = vrot.lane.b32.xlu1 %v2964_v37, %s7338_s28  ;;  %s7373_s28 = smov 15  }
 0x93d   : > { %3130 = vrot.lane.b32.xlu0 %v2967_v14, %s7339_s10 }
 0x93e   : > { %3128 = vrot.lane.b32.xlu1 %v2964_v37, %s7339_s10  ;;  %s7374_s10 = sld [smem:[#allocation55_spill]] }
 0x941   : > { %2970 = vrot.lane.b32.xlu0 %v6879_v36, %s7371_s0 }
 0x942   : > { %2968 = vrot.lane.b32.xlu1 %v6881_v52, %s7371_s0 }
 0x944   : > { %v3155_v23 = vld [vmem:[%s7374_s10 + $0x8] sm:$0xff]  ;;  %v3154_v7 = vld [vmem:[%s7374_s10] sm:$0xff] }
 0x945   : > { %2974 = vrot.lane.b32.xlu0 %v6887_v44, %s7371_s0 }
 0x946   : > { %2972 = vrot.lane.b32.xlu1 %v6889_v10, %s7371_s0 }
 0x949   : > { %2982 = vrot.lane.b32.xlu0 %v6879_v36, %s7372_s3 }
 0x94a   : > { %2980 = vrot.lane.b32.xlu1 %v6881_v52, %s7372_s3 }
 0x94d   : > { %2986 = vrot.lane.b32.xlu0 %v6887_v44, %s7372_s3 }
 0x94e   : > { %2984 = vrot.lane.b32.xlu1 %v6889_v10, %s7372_s3 }
 0x951   : > { %2994 = vrot.lane.b32.xlu0 %v6879_v36, %s7373_s28 }
 0x952   : > { %2992 = vrot.lane.b32.xlu1 %v6881_v52, %s7373_s28 }
 0x955   : > { %2998 = vrot.lane.b32.xlu0 %v6887_v44, %s7373_s28 }
 0x956   : > { %2996 = vrot.lane.b32.xlu1 %v6889_v10, %s7373_s28 }
 0x959   : > { %3006 = vrot.lane.b32.xlu0 %v6879_v36, %s7370_s8 }
 0x95a   : > { %3004 = vrot.lane.b32.xlu1 %v6881_v52, %s7370_s8 }
 0x95d   : > { %3010 = vrot.lane.b32.xlu0 %v6887_v44, %s7370_s8 }
 0x95e   : > { %3008 = vrot.lane.b32.xlu1 %v6889_v10, %s7370_s8 }
 0x961   : > { %3018 = vrot.lane.b32.xlu0 %v6879_v36, %s7336_s25 }
 0x962   : > { %3016 = vrot.lane.b32.xlu1 %v6881_v52, %s7336_s25 }
 0x965   : > { %3022 = vrot.lane.b32.xlu0 %v6887_v44, %s7336_s25 }
 0x966   : > { %3020 = vrot.lane.b32.xlu1 %v6889_v10, %s7336_s25 }
 0x969   : > { %3030 = vrot.lane.b32.xlu0 %v6879_v36, %s7340_s27 }
 0x96a   : > { %3028 = vrot.lane.b32.xlu1 %v6881_v52, %s7340_s27 }
 0x96d   : > { %3034 = vrot.lane.b32.xlu0 %v6887_v44, %s7340_s27 }
 0x96e   : > { %3032 = vrot.lane.b32.xlu1 %v6889_v10, %s7340_s27 }
 0x971   : > { %3042 = vrot.lane.b32.xlu0 %v6879_v36, %s7341_s1 }
 0x972   : > { %3040 = vrot.lane.b32.xlu1 %v6881_v52, %s7341_s1 }
 0x975   : > { %3046 = vrot.lane.b32.xlu0 %v6887_v44, %s7341_s1 }
 0x976   : > { %3044 = vrot.lane.b32.xlu1 %v6889_v10, %s7341_s1 }
 0x979   : > { %3054 = vrot.lane.b32.xlu0 %v6879_v36, %s7343_s9 }
 0x97a   : > { %3052 = vrot.lane.b32.xlu1 %v6881_v52, %s7343_s9 }
 0x97d   : > { %3058 = vrot.lane.b32.xlu0 %v6887_v44, %s7343_s9 }
 0x97e   : > { %3056 = vrot.lane.b32.xlu1 %v6889_v10, %s7343_s9  ;;  %s7392_s9 = sld [smem:[#allocation58_spill]] }
 0x981   : > { %3163 = vperm.xlu0 %4744, %v3155_v23  }
 0x982   : > { %3158 = vperm.xlu1 %4745, %v3154_v7  }
 0x984   : > { %s843_s7 = scalar_lea.vmem %s7392_s9, %s7391_s11 }
 0x985   : > { %3430 = vperm.xlu0 %4744, %v3422_v30   ;;  %v7379_v30 = vld [vmem:[#allocation34_spill] sm:$0xff] }
 0x986   : > { %3425 = vperm.xlu1 %4745, %v3421_v47  }
 0x993   : > { %v3103_v8 = vpop.permute.xlu0 %3102 }
 0x994   : > { %v3133_v2 = vmul.f32 %v6547_v53, %v3103_v8  ;;  %v3101_v3 = vpop.permute.xlu1 %3100  ;;  %v7380_v8 = vld [vmem:[#allocation35_spill] sm:$0xff] }
 0x995   : > { %v3132_v11 = vmul.f32 %v7376_v18, %v3101_v3 }
 0x997   : > { %v4532_v58 = vpack.c.bf16 %v3133_v2, %v3132_v11  ;;  %v3107_v16 = vpop.permute.xlu0 %3106  ;;  %v7381_v11 = vld [vmem:[#allocation36_spill] sm:$0xff] }
 0x998   : > { %v3135_v13 = vmul.f32 %v6559_v41, %v3107_v16  ;;  %v3105_v32 = vpop.permute.xlu1 %3104  ;;  %v7382_v16 = vld [vmem:[#allocation37_spill] sm:$0xff] }
 0x999   : > { %v3134_v14 = vmul.f32 %v6565_v49, %v3105_v32  ;;  %4533 = vmatpush1.bf16.msra.mxu1 %v4532_v58 }
 0x99a   : > { %4534 = vmatprep.subr.bf16.mxu1 %v7367_v42 }
 0x99b   : > { %v4535_v37 = vpack.c.bf16 %v3135_v13, %v3134_v14  ;;  %v3111_v19 = vpop.permute.xlu0 %3110 }
 0x99c   : > { %v3137_v9 = vmul.f32 %v6571_v26, %v3111_v19  ;;  %v3109_v21 = vpop.permute.xlu1 %3108 }
 0x99d   : > { %v3136_v53 = vmul.f32 %v6577_v17, %v3109_v21  ;;  %4536 = vmatpush1.bf16.msra.mxu1 %v4535_v37  ;;  %v7378_v17 = vld [vmem:[#allocation33_spill] sm:$0xff]  ;;  %v7384_v37 = vld [vmem:[#allocation39_spill] sm:$0xff] }
 0x99e   : > { %4537 = vmatprep.subr.bf16.mxu1 %v7367_v42 }
 0x99f   : > { %v4538_v28 = vpack.c.bf16 %v3137_v9, %v3136_v53  ;;  %v3115_v29 = vpop.permute.xlu0 %3114 }
 0x9a0   : > { %v3139_v41 = vmul.f32 %v7377_v48, %v3115_v29  ;;  %v3113_v40 = vpop.permute.xlu1 %3112 }
 0x9a1   : > { %v3138_v49 = vmul.f32 %v6591_v59, %v3113_v40  ;;  %4539 = vmatpush1.bf16.msra.mxu1 %v4538_v28  ;;  %v4802_v40 = vld [vmem:[%s7215_s19 + $0x10] sm:$0xff] }
 0x9a2   : > { %4540 = vmatprep.subr.bf16.mxu1 %v7367_v42 }
 0x9a3   : > { %v4541_v35 = vpack.c.bf16 %v3139_v41, %v3138_v49  ;;  %v3119_v34 = vpop.permute.xlu0 %3118 }
 0x9a4   : > { %v3117_v63 = vpop.permute.xlu1 %3116  ;;  %v3143_v26 = vmul.f32 %v6602_v45, %v3119_v34 }
 0x9a5   : > { %4542 = vmatpush1.bf16.msra.mxu1 %v4541_v35  ;;  %v3142_v51 = vmul.f32 %v7378_v17, %v3117_v63  ;;  %v4803_v35 = vld [vmem:[%s7215_s19 + $0x18] sm:$0xff]  ;;  %v4804_v17 = vld [vmem:[%s7215_s19] sm:$0xff] }
 0x9a6   : > { %4543 = vmatprep.subr.bf16.mxu1 %v7367_v42 }
 0x9a7   : > { %v3123_v23 = vpop.permute.xlu0 %3122  ;;  %v4547_v59 = vpack.c.bf16 %v3143_v26, %v3142_v51  ;;  %v7004_v26 = vld [vmem:[#allocation9] sm:$0xff] }
 0x9a8   : > { %v3121_v7 = vpop.permute.xlu1 %3120  ;;  %v3145_v47 = vmul.f32 %v7379_v30, %v3123_v23  ;;  %v4805_v23 = vld [vmem:[%s7215_s19 + $0x8] sm:$0xff] }
 0x9a9   : > { %4545 = vmatpush1.bf16.msra.mxu1 %v4544_v27  ;;  %v3144_v2 = vmul.f32 %v7380_v8, %v3121_v7  ;;  %v7383_v27 = vld [vmem:[#allocation38_spill] sm:$0xff] }
 0x9aa   : > { %4546 = vmatprep.subr.bf16.mxu1 %v7367_v42 }
 0x9ab   : > { %v3127_v3 = vpop.permute.xlu0 %3126  ;;  %v4550_v45 = vpack.c.bf16 %v3145_v47, %v3144_v2 }
 0x9ac   : > { %v3125_v18 = vpop.permute.xlu1 %3124  ;;  %v3147_v58 = vmul.f32 %v7381_v11, %v3127_v3  ;;  %v7017_v3 = vld [vmem:[#allocation9 + $0x10] sm:$0xff] }
 0x9ad   : > { %4548 = vmatpush1.bf16.msra.mxu1 %v4547_v59  ;;  %v3146_v13 = vmul.f32 %v7382_v16, %v3125_v18  ;;  %v7012_v59 = vld [vmem:[#allocation9 + $0x18] sm:$0xff]  ;;  %v4806_v16 = vld [vmem:[%s7215_s19 + $0x30] sm:$0xff] }
 0x9ae   : > { %4549 = vmatprep.subr.bf16.mxu1 %v7367_v42 }
 0x9af   : > { %v3131_v32 = vpop.permute.xlu0 %3130  ;;  %v4553_v31 = vpack.c.bf16 %v3147_v58, %v3146_v13 }
 0x9b0   : > { %v3129_v20 = vpop.permute.xlu1 %3128  ;;  %v3149_v14 = vmul.f32 %v7383_v27, %v3131_v32  ;;  %v4807_v32 = vld [vmem:[%s7215_s19 + $0x38] sm:$0xff] }
 0x9b1   : > { %4551 = vmatpush1.bf16.msra.mxu1 %v4550_v45  ;;  %v3148_v19 = vmul.f32 %v7384_v37, %v3129_v20 }
 0x9b2   : > { %4552 = vmatprep.subr.bf16.mxu1 %v7367_v42 }
 0x9b3   : > { %v2971_v9 = vpop.permute.xlu0 %2970  ;;  %v4556_v53 = vpack.c.bf16 %v3149_v14, %v3148_v19  ;;  %v4808_v14 = vld [vmem:[%s7215_s19 + $0x20] sm:$0xff]  ;;  %v4809_v19 = vld [vmem:[%s7215_s19 + $0x28] sm:$0xff] }
 0x9b4   : > { %v2969_v21 = vpop.permute.xlu1 %2968 }
 0x9b5   : > { %4554 = vmatpush1.bf16.msra.mxu1 %v4553_v31 }
 0x9b6   : > { %4555 = vmatprep.subr.bf16.mxu1 %v7367_v42 }
 0x9b7   : > { %v2975_v28 = vpop.permute.xlu0 %2974 }
 0x9b8   : > { %v2977_v29 = vsel %vm858_vm0, %v2971_v9, %v2975_v28  ;;  %v2979_v48 = vsel %vm858_vm0, %v2975_v28, %v2971_v9  ;;  %v2973_v41 = vpop.permute.xlu1 %2972 }
 0x9b9   : > { %v3066_v49 = vmul.f32 %v4802_v40, %v2979_v48  ;;  %v3067_v34 = vmul.f32 %v4803_v35, %v2977_v29  ;;  %v2976_v42 = vsel %vm858_vm0, %v2969_v21, %v2973_v41  ;;  %v2978_v63 = vsel %vm858_vm0, %v2973_v41, %v2969_v21  ;;  %4557 = vmatpush1.bf16.msra.mxu1 %v4556_v53  ;;  %v4810_v35 = vld [vmem:[%s7215_s19 + $0x50] sm:$0xff] }
 0x9ba   : > { %v3064_v51 = vmul.f32 %v4804_v17, %v2978_v63  ;;  %v3065_v7 = vmul.f32 %v4805_v23, %v2976_v42  ;;  %v4811_v42 = vld [vmem:[%s7215_s19 + $0x58] sm:$0xff]  ;;  %v4812_v23 = vld [vmem:[%s7215_s19 + $0x40] sm:$0xff] }
 0x9bb   : > { %v2983_v30 = vpop.permute.xlu0 %2982 }
 0x9bc   : > { %v4497_v47 = vpack.c.bf16 %v3066_v49, %v3064_v51  ;;  %v2981_v8 = vpop.permute.xlu1 %2980  ;;  %3314 = vmatmul.mubr.f32.vlgmr.msra.gmra.mrb[38].mxu1 %v7004_v26  ;;  %v4495_v2 = vpack.c.bf16 %v3067_v34, %v3065_v7 }
 0x9bd   : > { %3744 = vmatprep.mubr.msk.f32.mxu1 %vm1217_vm4, %v7012_v59 }
 0x9be   : > { %4496 = vmatprep.subr.bf16.mxu0 %v4495_v2 }
 0x9bf   : > { %v2987_v18 = vpop.permute.xlu0 %2986  ;;  %4498 = vmatpush1.bf16.msra.mxu0 %v4497_v47 }
 0x9c0   : > { %v2989_v45 = vsel %vm871_vm1, %v2983_v30, %v2987_v18  ;;  %v2991_v11 = vsel %vm871_vm1, %v2987_v18, %v2983_v30  ;;  %v2985_v58 = vpop.permute.xlu1 %2984  ;;  %3319 = vmatmul.mubr.f32.gmra.mrb[40].mxu1 %v7017_v3  ;;  %v4813_v30 = vld [vmem:[%s7215_s19 + $0x48] sm:$0xff] }
 0x9c1   : > { %v3070_v13 = vmul.f32 %v4806_v16, %v2991_v11  ;;  %v3071_v20 = vmul.f32 %v4807_v32, %v2989_v45  ;;  %v2988_v31 = vsel %vm871_vm1, %v2981_v8, %v2985_v58  ;;  %v2990_v27 = vsel %vm871_vm1, %v2985_v58, %v2981_v8  ;;  %3503 = vmatprep.mubr.f32.mxu1 %v7358_v39  ;;  %v4814_v32 = vld [vmem:[%s7215_s19 + $0x70] sm:$0xff] }
 0x9c2   : > { %v3068_v37 = vmul.f32 %v4808_v14, %v2990_v27  ;;  %v3069_v9 = vmul.f32 %v4809_v19, %v2988_v31  ;;  %v4815_v31 = vld [vmem:[%s7215_s19 + $0x78] sm:$0xff]  ;;  %v4816_v19 = vld [vmem:[%s7215_s19 + $0x60] sm:$0xff] }
 0x9c3   : > { %v2995_v21 = vpop.permute.xlu0 %2994 }
 0x9c4   : > { %v4501_v53 = vpack.c.bf16 %v3070_v13, %v3068_v37  ;;  %v2993_v28 = vpop.permute.xlu1 %2992  ;;  %v4499_v29 = vpack.c.bf16 %v3071_v20, %v3069_v9 }
 0x9c6   : > { %4500 = vmatprep.subr.bf16.mxu0 %v4499_v29 }
 0x9c7   : > { %v2999_v48 = vpop.permute.xlu0 %2998  ;;  %4502 = vmatpush1.bf16.msra.mxu0 %v4501_v53 }
 0x9c8   : > { %v3001_v41 = vsel %vm884_vm2, %v2995_v21, %v2999_v48  ;;  %v3003_v40 = vsel %vm884_vm2, %v2999_v48, %v2995_v21  ;;  %v2997_v49 = vpop.permute.xlu1 %2996  ;;  %v4817_v21 = vld [vmem:[%s7215_s19 + $0x68] sm:$0xff] }
 0x9c9   : > { %v3074_v34 = vmul.f32 %v4810_v35, %v3003_v40  ;;  %v3075_v63 = vmul.f32 %v4811_v42, %v3001_v41  ;;  %v3000_v17 = vsel %vm884_vm2, %v2993_v28, %v2997_v49  ;;  %v3002_v51 = vsel %vm884_vm2, %v2997_v49, %v2993_v28  ;;  %v4818_v28 = vld [vmem:[%s7215_s19 + $0x98] sm:$0xff]  ;;  %v4819_v35 = vld [vmem:[%s7215_s19 + $0x88] sm:$0xff]  ;;  %v4820_v42 = vld [vmem:[%s7215_s19 + $0x90] sm:$0xff] }
 0x9ca   : > { %v3072_v7 = vmul.f32 %v4812_v23, %v3002_v51  ;;  %v3073_v47 = vmul.f32 %v4813_v30, %v3000_v17  ;;  %v3083_v29 = vmul.f32 %v4818_v28, %v6887_v44  ;;  %v4821_v44 = vld [vmem:[%s7215_s19 + $0x80] sm:$0xff]  ;;  %v7386_v28 = vld [vmem:[#allocation41_spill] sm:$0xff] }
 0x9cb   : > { %v3007_v8 = vpop.permute.xlu0 %3006  ;;  %v3080_v51 = vmul.f32 %v4821_v44, %v6881_v52  ;;  %v4823_v52 = vld [vmem:[%s7215_s19 + $0xb8] sm:$0xff] }
 0x9cc   : > { %v4505_v2 = vpack.c.bf16 %v3074_v34, %v3072_v7  ;;  %v3005_v18 = vpop.permute.xlu1 %3004  ;;  %v4503_v45 = vpack.c.bf16 %v3075_v63, %v3073_v47  ;;  %v3081_v34 = vmul.f32 %v4819_v35, %v6889_v10  ;;  %v3082_v63 = vmul.f32 %v4820_v42, %v6879_v36  ;;  %v4822_v36 = vld [vmem:[%s7215_s19 + $0xb0] sm:$0xff]  ;;  %v4827_v35 = vld [vmem:[%s7215_s19 + $0xc8] sm:$0xff] }
 0x9ce   : > { %4504 = vmatprep.subr.bf16.mxu0 %v4503_v45  ;;  %v4511_v17 = vpack.c.bf16 %v3083_v29, %v3081_v34  ;;  %v4513_v47 = vpack.c.bf16 %v3082_v63, %v3080_v51 }
 0x9cf   : > { %v3011_v11 = vpop.permute.xlu0 %3010  ;;  %4506 = vmatpush1.bf16.msra.mxu0 %v4505_v2 }
 0x9d0   : > { %v3013_v58 = vsel %vm897_vm3, %v3007_v8, %v3011_v11  ;;  %v3015_v16 = vsel %vm897_vm3, %v3011_v11, %v3007_v8  ;;  %v3009_v13 = vpop.permute.xlu1 %3008  ;;  %v4824_v11 = vld [vmem:[%s7215_s19 + $0xa0] sm:$0xff] }
 0x9d1   : > { %v3078_v20 = vmul.f32 %v4814_v32, %v3015_v16  ;;  %v3079_v27 = vmul.f32 %v4815_v31, %v3013_v58  ;;  %v3012_v14 = vsel %vm897_vm3, %v3005_v18, %v3009_v13  ;;  %v3014_v37 = vsel %vm897_vm3, %v3009_v13, %v3005_v18  ;;  %v4825_v16 = vld [vmem:[%s7215_s19 + $0xa8] sm:$0xff] }
 0x9d2   : > { %v3076_v9 = vmul.f32 %v4816_v19, %v3014_v37  ;;  %v3077_v53 = vmul.f32 %v4817_v21, %v3012_v14  ;;  %v7385_v21 = vld [vmem:[#allocation40_spill] sm:$0xff] }
 0x9d3   : > { %v3019_v48 = vpop.permute.xlu0 %3018 }
 0x9d4   : > { %v4509_v41 = vpack.c.bf16 %v3078_v20, %v3076_v9  ;;  %v3017_v40 = vpop.permute.xlu1 %3016  ;;  %v4507_v49 = vpack.c.bf16 %v3079_v27, %v3077_v53 }
 0x9d6   : > { %4508 = vmatprep.subr.bf16.mxu0 %v4507_v49 }
 0x9d7   : > { %v3023_v23 = vpop.permute.xlu0 %3022  ;;  %4510 = vmatpush1.bf16.msra.mxu0 %v4509_v41 }
 0x9d8   : > { %v3025_v7 = vsel %vm910_vm5, %v3019_v48, %v3023_v23  ;;  %v3027_v10 = vsel %vm910_vm5, %v3023_v23, %v3019_v48  ;;  %4512 = vmatprep.subr.bf16.mxu0 %v4511_v17  ;;  %v3021_v30 = vpop.permute.xlu1 %3020 }
 0x9d9   : > { %v3086_v8 = vmul.f32 %v4822_v36, %v3025_v7  ;;  %v3087_v2 = vmul.f32 %v4823_v52, %v3027_v10  ;;  %v3024_v18 = vsel %vm910_vm5, %v3017_v40, %v3021_v30  ;;  %v3026_v45 = vsel %vm910_vm5, %v3021_v30, %v3017_v40  ;;  %v4826_v40 = vld [vmem:[%s7215_s19 + $0xc0] sm:$0xff] }
 0x9da   : > { %v3084_v58 = vmul.f32 %v4824_v11, %v3024_v18  ;;  %v3085_v13 = vmul.f32 %v4825_v16, %v3026_v45  ;;  %v7387_v30 = vld [vmem:[#allocation44_spill] sm:$0xff]  ;;  %v7389_v45 = vld [vmem:[#allocation43_spill] sm:$0xff] }
 0x9db   : > { %v3031_v32 = vpop.permute.xlu0 %3030  ;;  %4514 = vmatpush1.bf16.msra.mxu0 %v4513_v47 }
 0x9dc   : > { %v4517_v20 = vpack.c.bf16 %v3086_v8, %v3084_v58  ;;  %v3029_v31 = vpop.permute.xlu1 %3028  ;;  %v4515_v27 = vpack.c.bf16 %v3087_v2, %v3085_v13  ;;  %v7388_v2 = vld [vmem:[#allocation42_spill] sm:$0xff] }
 0x9de   : > { %4516 = vmatprep.subr.bf16.mxu0 %v4515_v27 }
 0x9df   : > { %v3035_v14 = vpop.permute.xlu0 %3034  ;;  %4518 = vmatpush1.bf16.msra.mxu0 %v4517_v20 }
 0x9e0   : > { %v3037_v37 = vsel %vm923_vm6, %v3031_v32, %v3035_v14  ;;  %v3039_v19 = vsel %vm923_vm6, %v3035_v14, %v3031_v32  ;;  %v3033_v9 = vpop.permute.xlu1 %3032 }
 0x9e1   : > { %v3090_v53 = vmul.f32 %v7385_v21, %v3037_v37  ;;  %v3091_v29 = vmul.f32 %v7386_v28, %v3039_v19  ;;  %v3036_v48 = vsel %vm923_vm6, %v3029_v31, %v3033_v9  ;;  %v3038_v41 = vsel %vm923_vm6, %v3033_v9, %v3029_v31 }
 0x9e2   : > { %v3088_v49 = vmul.f32 %v4826_v40, %v3036_v48  ;;  %v3089_v34 = vmul.f32 %v4827_v35, %v3038_v41 }
 0x9e3   : > { %v3043_v42 = vpop.permute.xlu0 %3042 }
 0x9e4   : > { %v4521_v63 = vpack.c.bf16 %v3090_v53, %v3088_v49  ;;  %v3041_v17 = vpop.permute.xlu1 %3040  ;;  %v4519_v44 = vpack.c.bf16 %v3091_v29, %v3089_v34 }
 0x9e6   : > { %4520 = vmatprep.subr.bf16.mxu0 %v4519_v44 }
 0x9e7   : > { %v3047_v51 = vpop.permute.xlu0 %3046  ;;  %4522 = vmatpush1.bf16.msra.mxu0 %v4521_v63 }
 0x9e8   : > { %v3049_v23 = vsel %vm936_vm7, %v3043_v42, %v3047_v51  ;;  %v3051_v7 = vsel %vm936_vm7, %v3047_v51, %v3043_v42  ;;  %v3045_v10 = vpop.permute.xlu1 %3044 }
 0x9e9   : > { %v3094_v47 = vmul.f32 %v7387_v30, %v3049_v23  ;;  %v3095_v36 = vmul.f32 %v6748_v62, %v3051_v7  ;;  %v3048_v8 = vsel %vm936_vm7, %v3041_v17, %v3045_v10  ;;  %v3050_v52 = vsel %vm936_vm7, %v3045_v10, %v3041_v17  ;;  %v3419_v7 = vld [vmem:[%s7390_s2] sm:$0xff]  ;;  %v3420_v10 = vld [vmem:[%s7390_s2 + $0x8] sm:$0xff] }
 0x9ea   : > { %v3092_v18 = vmul.f32 %v7388_v2, %v3048_v8  ;;  %v3093_v11 = vmul.f32 %v7389_v45, %v3050_v52 }
 0x9eb   : > { %v3055_v58 = vpop.permute.xlu0 %3054 }
 0x9ec   : > { %v4525_v16 = vpack.c.bf16 %v3094_v47, %v3092_v18  ;;  %v3053_v13 = vpop.permute.xlu1 %3052  ;;  %v4523_v32 = vpack.c.bf16 %v3095_v36, %v3093_v11 }
 0x9ee   : > { %4524 = vmatprep.subr.bf16.mxu0 %v4523_v32 }
 0x9ef   : > { %v3059_v20 = vpop.permute.xlu0 %3058  ;;  %4526 = vmatpush1.bf16.msra.mxu0 %v4525_v16 }
 0x9f0   : > { %v3061_v62 = vsel %vm949_vm8, %v3055_v58, %v3059_v20  ;;  %v3063_v31 = vsel %vm949_vm8, %v3059_v20, %v3055_v58  ;;  %v3057_v27 = vpop.permute.xlu1 %3056 }
 0x9f1   : > { %v3098_v14 = vmul.f32 %v6774_v57, %v3061_v62  ;;  %v3099_v37 = vmul.f32 %v6780_v4, %v3063_v31  ;;  %v3060_v19 = vsel %vm949_vm8, %v3053_v13, %v3057_v27  ;;  %v3062_v9 = vsel %vm949_vm8, %v3057_v27, %v3053_v13 }
 0x9f2   : > { %v3096_v21 = vmul.f32 %v6762_v1, %v3060_v19  ;;  %v3097_v53 = vmul.f32 %v6768_v38, %v3062_v9 }
 0x9f4   : > { %v4529_v28 = vpack.c.bf16 %v3098_v14, %v3096_v21  ;;  %v4527_v29 = vpack.c.bf16 %v3099_v37, %v3097_v53 }
 0x9f6   : > { %4528 = vmatprep.subr.bf16.mxu0 %v4527_v29 }
 0x9f7   : > { %4530 = vmatpush1.bf16.msra.mxu0 %v4529_v28 }
 0x9f8   : > { %4559 = vmatprep.subr.bf16.mxu0 %v6196_v25 }
 0x9fa   : > { %3237 = vmatmul.mubr.f32.vlgmr.msra.gmra.mrb[24].mxu0 %v7004_v26 }
 0x9fb   : > { %3742 = vmatprep.mubr.msk.f32.mxu0 %vm1217_vm4, %v7012_v59  ;;  %4561 = vmatpush1.bf16.msra.mxu0 %v6199_v5 }
 0x9fc   : > { %4563 = vmatprep.subr.bf16.mxu0 %v6203_v15 }
 0x9fe   : > { %3243 = vmatmul.mubr.f32.gmra.mrb[26].mxu0 %v7017_v3 }
 0x9ff   : > { %4565 = vmatpush1.bf16.msra.mxu0 %v6208_v24  ;;  %3406 = vmatprep.mubr.f32.mxu0 %v7358_v39 }
 0xa00   : > { %4567 = vmatprep.subr.bf16.mxu0 %v6211_v6  ;;  %v3164_v6 = vpop.permute.xlu0 %3163 }
 0xa01   : > { %v3159_v55 = vpop.permute.xlu1 %3158 }
 0xa03   : > { %4569 = vmatpush1.bf16.msra.mxu0 %v6216_v22 }
 0xa04   : > { %4571 = vmatprep.subr.bf16.mxu0 %v6220_v33  ;;  %v3431_v18 = vpop.permute.xlu0 %3430 }
 0xa05   : > { %v3426_v30 = vpop.permute.xlu1 %3425 }
 0xa07   : > { %4573 = vmatpush1.bf16.msra.mxu0 %v6224_v43 }
 0xa08   : > { %4575 = vmatprep.subr.bf16.mxu0 %v6228_v50 }
 0xa0b   : > { %4577 = vmatpush1.bf16.msra.mxu0 %v6232_v54 }
 0xa0c   : > { %4579 = vmatprep.subr.bf16.mxu0 %v6236_v56 }
 0xa0f   : > { %4581 = vmatpush1.bf16.msra.mxu0 %v6240_v60 }
 0xa10   : > { %4583 = vmatprep.subr.bf16.mxu0 %v6244_v61 }
 0xa13   : > { %4585 = vmatpush1.bf16.msra.mxu0 %v6248_v46 }
 0xa14   : > { %4587 = vmatprep.subr.bf16.mxu0 %v6252_v0 }
 0xa17   : > { %4589 = vmatpush1.bf16.msra.mxu0 %v6254_v12 }
 0xa8f   : > { %v3315_v25 = vpop.f32.mrb[38].mxu1 }
 0xa90   : > { %v3316_v5 = vadd.f32 %v3315_v25, %v3159_v55  ;;  %v3317_v15 = vpop.f32.mrb[39].mxu1 }
 0xa92   : > { %vm3326_vm0 = vcmp.ge.f32.partialorder %v3316_v5, 0.0  ;;  %v3332_v24 = vmul.f32 0.2, %v3316_v5 }
 0xa93   : > { %v3320_v22 = vpop.f32.mrb[40].mxu1 }
 0xa94   : > { %v3338_v33 = vsel %vm3326_vm0, %v3316_v5, %v3332_v24  ;;  %v3321_v43 = vadd.f32 %v3320_v22, %v3164_v6  ;;  %v3322_v50 = vpop.f32.mrb[41].mxu1 }
 0xa95   : > { %3407 = vmatmul.mubr.f32.vlgmr.msra.gmra.mrb[28].mxu0 %v3338_v33 }
 0xa96   : > { %v3335_v54 = vmul.f32 0.2, %v3321_v43  ;;  %3412 = vmatprep.mubr.f32.mxu0 %v7358_v39  ;;  %vm3329_vm1 = vcmp.ge.f32.partialorder %v3321_v43, 0.0 }
 0xa98   : > { %v3341_v56 = vsel %vm3329_vm1, %v3321_v43, %v3335_v54 }
 0xa99   : > { %3413 = vmatmul.mubr.f32.gmra.mrb[30].mxu0 %v3341_v56 }
 0xacd   : > { %v3238_v60 = vpop.f32.mrb[24].mxu0 }
 0xace   : > { %v3239_v61 = vadd.f32 %v3238_v60, %v3159_v55  ;;  %v3240_v46 = vpop.f32.mrb[25].mxu0 }
 0xacf   : > { %v3241_v0 = vadd.f32 %v3240_v46, %v3159_v55 }
 0xad0   : > { %v3330_v1 = vmul.f32 0.2, %v3239_v61  ;;  %vm3324_vm2 = vcmp.ge.f32.partialorder %v3239_v61, 0.0 }
 0xad1   : > { %v3244_v12 = vpop.f32.mrb[26].mxu0  ;;  %v3331_v4 = vmul.f32 0.2, %v3241_v0  ;;  %vm3325_vm3 = vcmp.ge.f32.partialorder %v3241_v0, 0.0 }
 0xad2   : > { %v3245_v38 = vadd.f32 %v3244_v12, %v3164_v6  ;;  %v3246_v57 = vpop.f32.mrb[27].mxu0  ;;  %v3336_v48 = vsel %vm3324_vm2, %v3239_v61, %v3330_v1 }
 0xad3   : > { %v3247_v26 = vadd.f32 %v3246_v57, %v3164_v6  ;;  %v3337_v49 = vsel %vm3325_vm3, %v3241_v0, %v3331_v4 }
 0xad4   : > { %vm3327_vm4 = vcmp.ge.f32.partialorder %v3245_v38, 0.0  ;;  %v3333_v59 = vmul.f32 0.2, %v3245_v38 }
 0xad5   : > { %vm3328_vm5 = vcmp.ge.f32.partialorder %v3247_v26, 0.0  ;;  %v3334_v3 = vmul.f32 0.2, %v3247_v26 }
 0xad6   : > { %v3339_v41 = vsel %vm3327_vm4, %v3245_v38, %v3333_v59 }
 0xad7   : > { %v4592_v40 = vpack.c.bf16 %v3339_v41, %v3336_v48  ;;  %v3340_v35 = vsel %vm3328_vm5, %v3247_v26, %v3334_v3 }
 0xad8   : > { %v4590_v34 = vpack.c.bf16 %v3340_v35, %v3337_v49 }
 0xada   : > { %4591 = vmatprep.subr.bf16.mxu1 %v4590_v34 }
 0xadb   : > { %4593 = vmatpush1.bf16.msra.mxu1 %v4592_v40 }
 0xb68   : > { %v3408_v42 = vpop.f32.mrb[28].mxu0 }
 0xb69   : > { %v3410_v63 = vpop.f32.mrb[29].mxu0 }
 0xb6c   : > { %v3414_v17 = vpop.f32.mrb[30].mxu0 }
 0xb6d   : > { %v4596_v44 = vpack.c.bf16 %v3414_v17, %v3408_v42  ;;  %v3416_v51 = vpop.f32.mrb[31].mxu0 }
 0xb6e   : > { %v4594_v23 = vpack.c.bf16 %v3416_v51, %v3410_v63 }
 0xb70   : > { %4595 = vmatprep.subr.bf16.mxu1 %v4594_v23 }
 0xb71   : > { %4597 = vmatpush1.bf16.msra.mxu1 %v4596_v44 }
 0xb74   : > { %3745 = vmatmul.mubr.msk.f32.vlgmr.msra.gmra.mrb[42].mxu1 %vm1790_vm15, %v3419_v7 }
 0xb75   : > { %3509 = vmatprep.mubr.f32.mxu1 %v7358_v39 }
 0xb78   : > { %3746 = vmatmul.mubr.msk.f32.gmra.mrb[44].mxu1 %vm1790_vm15, %v3420_v10 }
 0xc47   : > { %v3505_v47 = vpop.f32.mrb[42].mxu1 }
 0xc48   : > { %v3506_v36 = vadd.f32 %v3505_v47, %v3426_v30  ;;  %v3507_v8 = vpop.f32.mrb[43].mxu1 }
 0xc49   : > { %v3508_v52 = vadd.f32 %v3507_v8, %v3426_v30 }
 0xc4a   : > { %vm3516_vm6 = vcmp.ge.f32.partialorder %v3506_v36, 0.0  ;;  %v3520_v2 = vmul.f32 0.2, %v3506_v36 }
 0xc4b   : > { %vm3517_vm7 = vcmp.ge.f32.partialorder %v3508_v52, 0.0  ;;  %v3521_v39 = vmul.f32 0.2, %v3508_v52  ;;  %v3511_v45 = vpop.f32.mrb[44].mxu1 }
 0xc4c   : > { %v3524_v11 = vsel %vm3516_vm6, %v3506_v36, %v3520_v2  ;;  %v3512_v58 = vadd.f32 %v3511_v45, %v3431_v18  ;;  %v3513_v16 = vpop.f32.mrb[45].mxu1 }
 0xc4d   : > { %3528 = vst [vmem:[%s843_s7] sm:$0xff] %v3524_v11  ;;  %v3525_v13 = vsel %vm3517_vm7, %v3508_v52, %v3521_v39  ;;  %v3514_v32 = vadd.f32 %v3513_v16, %v3431_v18 }
 0xc4e   : > { %3529 = vst [vmem:[%s843_s7 + $0x8] sm:$0xff] %v3525_v13  ;;  %vm3518_vm8 = vcmp.ge.f32.partialorder %v3512_v58, 0.0  ;;  %v3522_v20 = vmul.f32 0.2, %v3512_v58 }
 0xc4f   : > { %vm3519_vm15 = vcmp.ge.f32.partialorder %v3514_v32, 0.0  ;;  %v3523_v62 = vmul.f32 0.2, %v3514_v32 }
 0xc50   : > { %v3526_v31 = vsel %vm3518_vm8, %v3512_v58, %v3522_v20 }
 0xc51   : > { %3530 = vst [vmem:[%s843_s7 + $0x10] sm:$0xff] %v3526_v31  ;;  %v3527_v27 = vsel %vm3519_vm15, %v3514_v32, %v3523_v62 }
 0xc52   : > { %3531 = vst [vmem:[%s843_s7 + $0x18] sm:$0xff] %v3527_v27 }
 0xc53 PF: > { %s7393_s30 = sld [smem:[#allocation25_spill]] }
 0xc59   : > { %s38_s3 = sadd.s32 1, %s7393_s30  }
 0xc5a   : > { %p35_p2 = scmp.ge.s32.totalorder %s38_s3, 4  }
 0xc5c   :  { %37 = sbr.rel (!%p35_p2) target bundleno = 21 (0x15), region = 183 }
 0xc63   :  { %3553 = vsyncpa [#allocation3], 1 }
 0xc64   :  { %3555 = vsyncpa [#allocation3 + $0x1], 1 }
 0xc65   :  { %3556 = vsyncpa [#allocation5], 1 }
 0xc66   :  { %3557 = vsyncpa [#allocation8], 1 }
 0xc67   :  { %3558 = vsyncpa [#allocation11], 1 }
 0xc68   :  { %3559 = vsyncpa [#allocation14], 1 }
 0xc69   :  { %3560 = vsyncpa [#allocation17], 1 }

</bundles_post_ra>
